<compile_context>
chip_gen: v7x
topology: tpu7x:2x2x1
jax: 0.10.0
libtpu: 0.0.40
codegen_flags: <defaults>
</compile_context>

<pallas_src>
import jax
import jax.numpy as jnp
import numpy as np
from jax import lax
from jax.experimental import pallas as pl
from jax.experimental.pallas import tpu as pltpu

KH = KW = 3
DIL = 4
PAD = 4    # spatial zero padding on each side
LEAD = 4   # leading slack rows: makes res_off and the kw=1 taps 8-row aligned


def _round_up(v, m):
    return ((v + m - 1) // m) * m


# ---------------------------------------------------------------------------
# Fused kernel: pad+layout -> conv1(dil=4)+bias+ReLU -> conv2(dil=4)+bias -> +residual
# Everything per image happens on VMEM-resident flat padded layouts.
# ---------------------------------------------------------------------------
def _make_block_kernel(h, w, c, m_in):
    wp = w + 2 * PAD
    m_out = h * wp                      # conv output rows in the (H, Wp) junk-column layout
    res_off = LEAD + PAD * wp + PAD     # flat offset of pixel (0, 0)
    deltas = tuple(LEAD + kh * DIL * wp + kw * DIL
                   for kh in range(KH) for kw in range(KW))

    def tap(base_ref, shift_ref, d):
        # rows [d, d + m_out) of the padded image, always through an 8-aligned slice:
        # shift_ref[j] == base_ref[j + 4], so odd-phase taps read shift_ref at d - 4.
        if d % 8 == 0:
            return base_ref[d:d + m_out, :]
        return shift_ref[d - 4:d - 4 + m_out, :]

    def kernel(x_ref, w1_ref, b1_ref, w2_ref, b2_ref, o_ref,
               xp_ref, xq_ref, zp_ref, zq_ref):
        # x_ref : (c, h*w) f32   one image, channel-major (free reshape of NCHW)
        # w*    : (9, c, c) bf16 per-tap weights (I, O);   b*: (1, c) f32
        # o_ref : (c, h*w) f32   lane-dense output block
        # xp/zp : (m_in, c) bf16 zero-padded flat image / intermediate
        # xq/zq : (m_in, c) bf16 same, shifted down by 4 rows (phase-4 copies)

        # constants hoisted out of the loops (broadcasts are not CSE'd)
        zero_head = jnp.zeros((res_off, c), jnp.bfloat16)
        zero_tail = jnp.zeros((m_in - res_off - m_out, c), jnp.bfloat16)
        zero_gap = jnp.zeros((wp - w, c), jnp.bfloat16)

        # ---- build the zero-padded flat bf16 image in VMEM (single cast of x) ----
        xt_bf = jnp.transpose(x_ref[...], (1, 0)).astype(jnp.bfloat16)   # (h*w, c)
        xp_ref[0:res_off, :] = zero_head
        xp_ref[res_off + m_out:m_in, :] = zero_tail
        for r in range(h):
            off = res_off + r * wp
            xp_ref[off:off + w, :] = xt_bf[r * w:(r + 1) * w, :]
            xp_ref[off + w:off + wp, :] = zero_gap
        # phase-4 copy: xq[j] = xp[j + 4]  -> every tap slice below is 8-row aligned
        xq_ref[0:m_in - 4, :] = xp_ref[4:m_in, :]

        # ---- conv1: 9 shifted GEMMs on the MXU (bf16 inputs, f32 accumulation) ----
        acc = jnp.zeros((m_out, c), jnp.float32)
        for t, d in enumerate(deltas):
            acc = acc + jnp.dot(tap(xp_ref, xq_ref, d), w1_ref[t],
                                preferred_element_type=jnp.float32)
        y1 = jnp.maximum(acc + b1_ref[...], 0.0)

        # ---- re-padded intermediate: zero only the border, overwrite the interior ----
        zp_ref[0:res_off, :] = zero_head
        zp_ref[res_off + m_out:m_in, :] = zero_tail
        zp_ref[res_off:res_off + m_out, :] = y1.astype(jnp.bfloat16)
        # the 2*PAD junk columns per row are conv2's zero padding -> re-zero them
        for r in range(h):
            off = res_off + r * wp
            zp_ref[off + w:off + wp, :] = zero_gap
        zq_ref[0:m_in - 4, :] = zp_ref[4:m_in, :]

        # ---- conv2 (same 9 aligned taps) ----
        acc2 = jnp.zeros((m_out, c), jnp.float32)
        for t, d in enumerate(deltas):
            acc2 = acc2 + jnp.dot(tap(zp_ref, zq_ref, d), w2_ref[t],
                                  preferred_element_type=jnp.float32)

        # ---- drop junk columns, add bias, residual add in exact f32, lane-dense store ----
        yv = jnp.concatenate([acc2[r * wp:r * wp + w, :] for r in range(h)], axis=0)
        yv = yv + b2_ref[...]
        o_ref[...] = x_ref[...] + jnp.transpose(yv, (1, 0))

    return kernel


def resnet_block_dilation4_pallas(x_nchw, params):
    """Forward pass of ResnetBlock_Dilation4. Input/output NCHW (f32)."""
    n, c, h, w = x_nchw.shape
    hp, wp = h + 2 * PAD, w + 2 * PAD
    hw = h * w
    m_in = _round_up(LEAD + hp * wp + 2 * DIL, 8)   # padded flat rows + tap slack

    x2 = x_nchw.reshape(n, c, hw)                   # free reshape (no HBM copy)
    kernel = _make_block_kernel(h, w, c, m_in)

    flops = 2 * (2 * h * wp * KH * KW * c * c) * n           # two dilated 3x3 convs
    bytes_accessed = (n * 2 * c * hw * 4 +                    # x read + y write
                      2 * KH * KW * c * c * 2 + 2 * c * 4)    # weights + biases

    out = pl.pallas_call(
        kernel,
        out_shape=jax.ShapeDtypeStruct((n, c, hw), jnp.float32),
        grid=(n,),
        in_specs=[
            pl.BlockSpec((None, c, hw), lambda i: (i, 0, 0)),    # x (per image, lane-dense)
            pl.BlockSpec((KH * KW, c, c), lambda i: (0, 0, 0)),  # w1 taps (bf16)
            pl.BlockSpec((1, c), lambda i: (0, 0)),              # b1
            pl.BlockSpec((KH * KW, c, c), lambda i: (0, 0, 0)),  # w2 taps (bf16)
            pl.BlockSpec((1, c), lambda i: (0, 0)),              # b2
        ],
        out_specs=pl.BlockSpec((None, c, hw), lambda i: (i, 0, 0)),
        scratch_shapes=[pltpu.VMEM((m_in, c), jnp.bfloat16)] * 4,   # xp, xq, zp, zq
        compiler_params=pltpu.CompilerParams(
            dimension_semantics=("parallel",),
            vmem_limit_bytes=64 * 1024 * 1024),
        cost_estimate=pl.CostEstimate(flops=flops, transcendentals=0,
                                      bytes_accessed=bytes_accessed),
    )(x2, params["w1_taps"], params["b1_row"], params["w2_taps"], params["b2_row"])

    return out.reshape(n, c, h, w)                  # free reshape


# ---------------------------------------------------------------------------
# Parameters (deterministic).  Weights pre-packed ONCE for the kernel:
# (O, I, KH, KW) -> (KH*KW, I, O) in bf16.
# ---------------------------------------------------------------------------
def make_params(key, dim):
    k1, k2, k3, k4 = jax.random.split(key, 4)
    w1 = 0.02 * jax.random.normal(k1, (dim, dim, KH, KW), jnp.float32)
    b1 = 0.01 * jax.random.normal(k2, (dim,), jnp.float32)
    w2 = 0.02 * jax.random.normal(k3, (dim, dim, KH, KW), jnp.float32)
    b2 = 0.01 * jax.random.normal(k4, (dim,), jnp.float32)

    def pack(wt):
        return jnp.transpose(wt, (2, 3, 1, 0)).reshape(KH * KW, dim, dim).astype(jnp.bfloat16)

    return dict(w1=w1, b1=b1, w2=w2, b2=b2,
                w1_taps=pack(w1), w2_taps=pack(w2),
                b1_row=b1.reshape(1, dim), b2_row=b2.reshape(1, dim))


# ---------------------------------------------------------------------------
# Pure-JAX reference (f32, lax dilated conv) for correctness check.
# ---------------------------------------------------------------------------
def resnet_block_dilation4_ref(x, params):
    dn = ("NCHW", "OIHW", "NCHW")
    y = lax.conv_general_dilated(x, params["w1"], (1, 1), [(PAD, PAD), (PAD, PAD)],
                                 rhs_dilation=(DIL, DIL), dimension_numbers=dn)
    y = jnp.maximum(y + params["b1"].reshape(1, -1, 1, 1), 0.0)
    y = lax.conv_general_dilated(y, params["w2"], (1, 1), [(PAD, PAD), (PAD, PAD)],
                                 rhs_dilation=(DIL, DIL), dimension_numbers=dn)
    y = y + params["b2"].reshape(1, -1, 1, 1)
    return x + y


if __name__ == "__main__":
    key = jax.random.PRNGKey(0)
    k_in, k_par = jax.random.split(key)

    batch, dim, hw = 2, 32, 16
    x = jax.random.normal(k_in, (batch, dim, hw, hw), jnp.float32)
    params = make_params(k_par, dim)

    fwd = jax.jit(resnet_block_dilation4_pallas)
    out = jax.block_until_ready(fwd(x, params))

    ref = jax.block_until_ready(resnet_block_dilation4_ref(x, params))
    assert out.shape == ref.shape == (batch, dim, hw, hw), (out.shape, ref.shape)
    # tolerance covers bf16 MXU inputs (f32 accumulation, exact f32 residual) — intentional
    np.testing.assert_allclose(np.asarray(out), np.asarray(ref), rtol=1e-2, atol=1e-2)

    print("KERNEL_OK")
</pallas_src>

<mosaic_0001>
module attributes {stable_mosaic.version = 11 : i64} {
  func.func @kernel(%arg0: i32, %arg1: memref<1x32x256xf32, #tpu.memory_space<vmem>>, %arg2: memref<9x32x32xbf16, #tpu.memory_space<vmem>>, %arg3: memref<1x32xf32, #tpu.memory_space<vmem>>, %arg4: memref<9x32x32xbf16, #tpu.memory_space<vmem>>, %arg5: memref<1x32xf32, #tpu.memory_space<vmem>>, %arg6: memref<1x32x256xf32, #tpu.memory_space<vmem>>, %arg7: memref<592x32xbf16, #tpu.memory_space<vmem>>, %arg8: memref<592x32xbf16, #tpu.memory_space<vmem>>, %arg9: memref<592x32xbf16, #tpu.memory_space<vmem>>, %arg10: memref<592x32xbf16, #tpu.memory_space<vmem>>) attributes {dimension_semantics = [#tpu.dimension_semantics<parallel>], iteration_bounds = array<i64: 2>, scalar_prefetch = 0 : i64, scratch_operands = 4 : i64, tpu.core_type = #tpu.core_type<tc>, window_params = [{transform_indices = @transform_0, window_bounds = array<i64: 1, 32, 256>}, {pipeline_mode = #tpu.pipeline_mode<synchronous>, transform_indices = @transform_1, window_bounds = array<i64: 9, 32, 32>}, {pipeline_mode = #tpu.pipeline_mode<synchronous>, transform_indices = @transform_2, window_bounds = array<i64: 1, 32>}, {pipeline_mode = #tpu.pipeline_mode<synchronous>, transform_indices = @transform_3, window_bounds = array<i64: 9, 32, 32>}, {pipeline_mode = #tpu.pipeline_mode<synchronous>, transform_indices = @transform_4, window_bounds = array<i64: 1, 32>}, {transform_indices = @transform_5, window_bounds = array<i64: 1, 32, 256>}]} {
    %cst = arith.constant 0.000000e+00 : bf16
    %0 = vector.broadcast %cst : bf16 to vector<104x32xbf16>
    %cst_0 = arith.constant 0.000000e+00 : bf16
    %1 = vector.broadcast %cst_0 : bf16 to vector<104x32xbf16>
    %cst_1 = arith.constant 0.000000e+00 : bf16
    %2 = vector.broadcast %cst_1 : bf16 to vector<8x32xbf16>
    %c0 = arith.constant 0 : index
    %c0_2 = arith.constant 0 : index
    %c0_3 = arith.constant 0 : index
    %3 = vector.load %arg1[%c0, %c0_2, %c0_3] : memref<1x32x256xf32, #tpu.memory_space<vmem>>, vector<1x32x256xf32>
    %4 = vector.shape_cast %3 : vector<1x32x256xf32> to vector<32x256xf32>
    %5 = tpu.transpose %4, [1, 0] : vector<32x256xf32> -> vector<256x32xf32>
    %6 = arith.truncf %5 : vector<256x32xf32> to vector<256x32xbf16>
    %c0_4 = arith.constant 0 : index
    %c0_5 = arith.constant 0 : index
    %7 = vector.load %arg7[%c0_4, %c0_5] : memref<592x32xbf16, #tpu.memory_space<vmem>>, vector<104x32xbf16>
    tpu.vector_store %arg7[%c0_4, %c0_5], %0 {strides = array<i32>} : memref<592x32xbf16, #tpu.memory_space<vmem>>, vector<104x32xbf16>,
    %c488 = arith.constant 488 : index
    %c0_6 = arith.constant 0 : index
    %8 = vector.load %arg7[%c488, %c0_6] : memref<592x32xbf16, #tpu.memory_space<vmem>>, vector<104x32xbf16>
    tpu.vector_store %arg7[%c488, %c0_6], %1 {strides = array<i32>} : memref<592x32xbf16, #tpu.memory_space<vmem>>, vector<104x32xbf16>,
    %9 = vector.extract_strided_slice %6 {offsets = [0, 0], sizes = [16, 32], strides = [1, 1]} : vector<256x32xbf16> to vector<16x32xbf16>
    %c104 = arith.constant 104 : index
    %c0_7 = arith.constant 0 : index
    %10 = vector.load %arg7[%c104, %c0_7] : memref<592x32xbf16, #tpu.memory_space<vmem>>, vector<16x32xbf16>
    tpu.vector_store %arg7[%c104, %c0_7], %9 {strides = array<i32>} : memref<592x32xbf16, #tpu.memory_space<vmem>>, vector<16x32xbf16>,
    %c120 = arith.constant 120 : index
    %c0_8 = arith.constant 0 : index
    %11 = vector.load %arg7[%c120, %c0_8] : memref<592x32xbf16, #tpu.memory_space<vmem>>, vector<8x32xbf16>
    tpu.vector_store %arg7[%c120, %c0_8], %2 {strides = array<i32>} : memref<592x32xbf16, #tpu.memory_space<vmem>>, vector<8x32xbf16>,
    %12 = vector.extract_strided_slice %6 {offsets = [16, 0], sizes = [16, 32], strides = [1, 1]} : vector<256x32xbf16> to vector<16x32xbf16>
    %c128 = arith.constant 128 : index
    %c0_9 = arith.constant 0 : index
    %13 = vector.load %arg7[%c128, %c0_9] : memref<592x32xbf16, #tpu.memory_space<vmem>>, vector<16x32xbf16>
    tpu.vector_store %arg7[%c128, %c0_9], %12 {strides = array<i32>} : memref<592x32xbf16, #tpu.memory_space<vmem>>, vector<16x32xbf16>,
    %c144 = arith.constant 144 : index
    %c0_10 = arith.constant 0 : index
    %14 = vector.load %arg7[%c144, %c0_10] : memref<592x32xbf16, #tpu.memory_space<vmem>>, vector<8x32xbf16>
    tpu.vector_store %arg7[%c144, %c0_10], %2 {strides = array<i32>} : memref<592x32xbf16, #tpu.memory_space<vmem>>, vector<8x32xbf16>,
    %15 = vector.extract_strided_slice %6 {offsets = [32, 0], sizes = [16, 32], strides = [1, 1]} : vector<256x32xbf16> to vector<16x32xbf16>
    %c152 = arith.constant 152 : index
    %c0_11 = arith.constant 0 : index
    %16 = vector.load %arg7[%c152, %c0_11] : memref<592x32xbf16, #tpu.memory_space<vmem>>, vector<16x32xbf16>
    tpu.vector_store %arg7[%c152, %c0_11], %15 {strides = array<i32>} : memref<592x32xbf16, #tpu.memory_space<vmem>>, vector<16x32xbf16>,
    %c168 = arith.constant 168 : index
    %c0_12 = arith.constant 0 : index
    %17 = vector.load %arg7[%c168, %c0_12] : memref<592x32xbf16, #tpu.memory_space<vmem>>, vector<8x32xbf16>
    tpu.vector_store %arg7[%c168, %c0_12], %2 {strides = array<i32>} : memref<592x32xbf16, #tpu.memory_space<vmem>>, vector<8x32xbf16>,
    %18 = vector.extract_strided_slice %6 {offsets = [48, 0], sizes = [16, 32], strides = [1, 1]} : vector<256x32xbf16> to vector<16x32xbf16>
    %c176 = arith.constant 176 : index
    %c0_13 = arith.constant 0 : index
    %19 = vector.load %arg7[%c176, %c0_13] : memref<592x32xbf16, #tpu.memory_space<vmem>>, vector<16x32xbf16>
    tpu.vector_store %arg7[%c176, %c0_13], %18 {strides = array<i32>} : memref<592x32xbf16, #tpu.memory_space<vmem>>, vector<16x32xbf16>,
    %c192 = arith.constant 192 : index
    %c0_14 = arith.constant 0 : index
    %20 = vector.load %arg7[%c192, %c0_14] : memref<592x32xbf16, #tpu.memory_space<vmem>>, vector<8x32xbf16>
    tpu.vector_store %arg7[%c192, %c0_14], %2 {strides = array<i32>} : memref<592x32xbf16, #tpu.memory_space<vmem>>, vector<8x32xbf16>,
    %21 = vector.extract_strided_slice %6 {offsets = [64, 0], sizes = [16, 32], strides = [1, 1]} : vector<256x32xbf16> to vector<16x32xbf16>
    %c200 = arith.constant 200 : index
    %c0_15 = arith.constant 0 : index
    %22 = vector.load %arg7[%c200, %c0_15] : memref<592x32xbf16, #tpu.memory_space<vmem>>, vector<16x32xbf16>
    tpu.vector_store %arg7[%c200, %c0_15], %21 {strides = array<i32>} : memref<592x32xbf16, #tpu.memory_space<vmem>>, vector<16x32xbf16>,
    %c216 = arith.constant 216 : index
    %c0_16 = arith.constant 0 : index
    %23 = vector.load %arg7[%c216, %c0_16] : memref<592x32xbf16, #tpu.memory_space<vmem>>, vector<8x32xbf16>
    tpu.vector_store %arg7[%c216, %c0_16], %2 {strides = array<i32>} : memref<592x32xbf16, #tpu.memory_space<vmem>>, vector<8x32xbf16>,
    %24 = vector.extract_strided_slice %6 {offsets = [80, 0], sizes = [16, 32], strides = [1, 1]} : vector<256x32xbf16> to vector<16x32xbf16>
    %c224 = arith.constant 224 : index
    %c0_17 = arith.constant 0 : index
    %25 = vector.load %arg7[%c224, %c0_17] : memref<592x32xbf16, #tpu.memory_space<vmem>>, vector<16x32xbf16>
    tpu.vector_store %arg7[%c224, %c0_17], %24 {strides = array<i32>} : memref<592x32xbf16, #tpu.memory_space<vmem>>, vector<16x32xbf16>,
    %c240 = arith.constant 240 : index
    %c0_18 = arith.constant 0 : index
    %26 = vector.load %arg7[%c240, %c0_18] : memref<592x32xbf16, #tpu.memory_space<vmem>>, vector<8x32xbf16>
    tpu.vector_store %arg7[%c240, %c0_18], %2 {strides = array<i32>} : memref<592x32xbf16, #tpu.memory_space<vmem>>, vector<8x32xbf16>,
    %27 = vector.extract_strided_slice %6 {offsets = [96, 0], sizes = [16, 32], strides = [1, 1]} : vector<256x32xbf16> to vector<16x32xbf16>
    %c248 = arith.constant 248 : index
    %c0_19 = arith.constant 0 : index
    %28 = vector.load %arg7[%c248, %c0_19] : memref<592x32xbf16, #tpu.memory_space<vmem>>, vector<16x32xbf16>
    tpu.vector_store %arg7[%c248, %c0_19], %27 {strides = array<i32>} : memref<592x32xbf16, #tpu.memory_space<vmem>>, vector<16x32xbf16>,
    %c264 = arith.constant 264 : index
    %c0_20 = arith.constant 0 : index
    %29 = vector.load %arg7[%c264, %c0_20] : memref<592x32xbf16, #tpu.memory_space<vmem>>, vector<8x32xbf16>
    tpu.vector_store %arg7[%c264, %c0_20], %2 {strides = array<i32>} : memref<592x32xbf16, #tpu.memory_space<vmem>>, vector<8x32xbf16>,
    %30 = vector.extract_strided_slice %6 {offsets = [112, 0], sizes = [16, 32], strides = [1, 1]} : vector<256x32xbf16> to vector<16x32xbf16>
    %c272 = arith.constant 272 : index
    %c0_21 = arith.constant 0 : index
    %31 = vector.load %arg7[%c272, %c0_21] : memref<592x32xbf16, #tpu.memory_space<vmem>>, vector<16x32xbf16>
    tpu.vector_store %arg7[%c272, %c0_21], %30 {strides = array<i32>} : memref<592x32xbf16, #tpu.memory_space<vmem>>, vector<16x32xbf16>,
    %c288 = arith.constant 288 : index
    %c0_22 = arith.constant 0 : index
    %32 = vector.load %arg7[%c288, %c0_22] : memref<592x32xbf16, #tpu.memory_space<vmem>>, vector<8x32xbf16>
    tpu.vector_store %arg7[%c288, %c0_22], %2 {strides = array<i32>} : memref<592x32xbf16, #tpu.memory_space<vmem>>, vector<8x32xbf16>,
    %33 = vector.extract_strided_slice %6 {offsets = [128, 0], sizes = [16, 32], strides = [1, 1]} : vector<256x32xbf16> to vector<16x32xbf16>
    %c296 = arith.constant 296 : index
    %c0_23 = arith.constant 0 : index
    %34 = vector.load %arg7[%c296, %c0_23] : memref<592x32xbf16, #tpu.memory_space<vmem>>, vector<16x32xbf16>
    tpu.vector_store %arg7[%c296, %c0_23], %33 {strides = array<i32>} : memref<592x32xbf16, #tpu.memory_space<vmem>>, vector<16x32xbf16>,
    %c312 = arith.constant 312 : index
    %c0_24 = arith.constant 0 : index
    %35 = vector.load %arg7[%c312, %c0_24] : memref<592x32xbf16, #tpu.memory_space<vmem>>, vector<8x32xbf16>
    tpu.vector_store %arg7[%c312, %c0_24], %2 {strides = array<i32>} : memref<592x32xbf16, #tpu.memory_space<vmem>>, vector<8x32xbf16>,
    %36 = vector.extract_strided_slice %6 {offsets = [144, 0], sizes = [16, 32], strides = [1, 1]} : vector<256x32xbf16> to vector<16x32xbf16>
    %c320 = arith.constant 320 : index
    %c0_25 = arith.constant 0 : index
    %37 = vector.load %arg7[%c320, %c0_25] : memref<592x32xbf16, #tpu.memory_space<vmem>>, vector<16x32xbf16>
    tpu.vector_store %arg7[%c320, %c0_25], %36 {strides = array<i32>} : memref<592x32xbf16, #tpu.memory_space<vmem>>, vector<16x32xbf16>,
    %c336 = arith.constant 336 : index
    %c0_26 = arith.constant 0 : index
    %38 = vector.load %arg7[%c336, %c0_26] : memref<592x32xbf16, #tpu.memory_space<vmem>>, vector<8x32xbf16>
    tpu.vector_store %arg7[%c336, %c0_26], %2 {strides = array<i32>} : memref<592x32xbf16, #tpu.memory_space<vmem>>, vector<8x32xbf16>,
    %39 = vector.extract_strided_slice %6 {offsets = [160, 0], sizes = [16, 32], strides = [1, 1]} : vector<256x32xbf16> to vector<16x32xbf16>
    %c344 = arith.constant 344 : index
    %c0_27 = arith.constant 0 : index
    %40 = vector.load %arg7[%c344, %c0_27] : memref<592x32xbf16, #tpu.memory_space<vmem>>, vector<16x32xbf16>
    tpu.vector_store %arg7[%c344, %c0_27], %39 {strides = array<i32>} : memref<592x32xbf16, #tpu.memory_space<vmem>>, vector<16x32xbf16>,
    %c360 = arith.constant 360 : index
    %c0_28 = arith.constant 0 : index
    %41 = vector.load %arg7[%c360, %c0_28] : memref<592x32xbf16, #tpu.memory_space<vmem>>, vector<8x32xbf16>
    tpu.vector_store %arg7[%c360, %c0_28], %2 {strides = array<i32>} : memref<592x32xbf16, #tpu.memory_space<vmem>>, vector<8x32xbf16>,
    %42 = vector.extract_strided_slice %6 {offsets = [176, 0], sizes = [16, 32], strides = [1, 1]} : vector<256x32xbf16> to vector<16x32xbf16>
    %c368 = arith.constant 368 : index
    %c0_29 = arith.constant 0 : index
    %43 = vector.load %arg7[%c368, %c0_29] : memref<592x32xbf16, #tpu.memory_space<vmem>>, vector<16x32xbf16>
    tpu.vector_store %arg7[%c368, %c0_29], %42 {strides = array<i32>} : memref<592x32xbf16, #tpu.memory_space<vmem>>, vector<16x32xbf16>,
    %c384 = arith.constant 384 : index
    %c0_30 = arith.constant 0 : index
    %44 = vector.load %arg7[%c384, %c0_30] : memref<592x32xbf16, #tpu.memory_space<vmem>>, vector<8x32xbf16>
    tpu.vector_store %arg7[%c384, %c0_30], %2 {strides = array<i32>} : memref<592x32xbf16, #tpu.memory_space<vmem>>, vector<8x32xbf16>,
    %45 = vector.extract_strided_slice %6 {offsets = [192, 0], sizes = [16, 32], strides = [1, 1]} : vector<256x32xbf16> to vector<16x32xbf16>
    %c392 = arith.constant 392 : index
    %c0_31 = arith.constant 0 : index
    %46 = vector.load %arg7[%c392, %c0_31] : memref<592x32xbf16, #tpu.memory_space<vmem>>, vector<16x32xbf16>
    tpu.vector_store %arg7[%c392, %c0_31], %45 {strides = array<i32>} : memref<592x32xbf16, #tpu.memory_space<vmem>>, vector<16x32xbf16>,
    %c408 = arith.constant 408 : index
    %c0_32 = arith.constant 0 : index
    %47 = vector.load %arg7[%c408, %c0_32] : memref<592x32xbf16, #tpu.memory_space<vmem>>, vector<8x32xbf16>
    tpu.vector_store %arg7[%c408, %c0_32], %2 {strides = array<i32>} : memref<592x32xbf16, #tpu.memory_space<vmem>>, vector<8x32xbf16>,
    %48 = vector.extract_strided_slice %6 {offsets = [208, 0], sizes = [16, 32], strides = [1, 1]} : vector<256x32xbf16> to vector<16x32xbf16>
    %c416 = arith.constant 416 : index
    %c0_33 = arith.constant 0 : index
    %49 = vector.load %arg7[%c416, %c0_33] : memref<592x32xbf16, #tpu.memory_space<vmem>>, vector<16x32xbf16>
    tpu.vector_store %arg7[%c416, %c0_33], %48 {strides = array<i32>} : memref<592x32xbf16, #tpu.memory_space<vmem>>, vector<16x32xbf16>,
    %c432 = arith.constant 432 : index
    %c0_34 = arith.constant 0 : index
    %50 = vector.load %arg7[%c432, %c0_34] : memref<592x32xbf16, #tpu.memory_space<vmem>>, vector<8x32xbf16>
    tpu.vector_store %arg7[%c432, %c0_34], %2 {strides = array<i32>} : memref<592x32xbf16, #tpu.memory_space<vmem>>, vector<8x32xbf16>,
    %51 = vector.extract_strided_slice %6 {offsets = [224, 0], sizes = [16, 32], strides = [1, 1]} : vector<256x32xbf16> to vector<16x32xbf16>
    %c440 = arith.constant 440 : index
    %c0_35 = arith.constant 0 : index
    %52 = vector.load %arg7[%c440, %c0_35] : memref<592x32xbf16, #tpu.memory_space<vmem>>, vector<16x32xbf16>
    tpu.vector_store %arg7[%c440, %c0_35], %51 {strides = array<i32>} : memref<592x32xbf16, #tpu.memory_space<vmem>>, vector<16x32xbf16>,
    %c456 = arith.constant 456 : index
    %c0_36 = arith.constant 0 : index
    %53 = vector.load %arg7[%c456, %c0_36] : memref<592x32xbf16, #tpu.memory_space<vmem>>, vector<8x32xbf16>
    tpu.vector_store %arg7[%c456, %c0_36], %2 {strides = array<i32>} : memref<592x32xbf16, #tpu.memory_space<vmem>>, vector<8x32xbf16>,
    %54 = vector.extract_strided_slice %6 {offsets = [240, 0], sizes = [16, 32], strides = [1, 1]} : vector<256x32xbf16> to vector<16x32xbf16>
    %c464 = arith.constant 464 : index
    %c0_37 = arith.constant 0 : index
    %55 = vector.load %arg7[%c464, %c0_37] : memref<592x32xbf16, #tpu.memory_space<vmem>>, vector<16x32xbf16>
    tpu.vector_store %arg7[%c464, %c0_37], %54 {strides = array<i32>} : memref<592x32xbf16, #tpu.memory_space<vmem>>, vector<16x32xbf16>,
    %c480 = arith.constant 480 : index
    %c0_38 = arith.constant 0 : index
    %56 = vector.load %arg7[%c480, %c0_38] : memref<592x32xbf16, #tpu.memory_space<vmem>>, vector<8x32xbf16>
    tpu.vector_store %arg7[%c480, %c0_38], %2 {strides = array<i32>} : memref<592x32xbf16, #tpu.memory_space<vmem>>, vector<8x32xbf16>,
    %c4 = arith.constant 4 : index
    %c0_39 = arith.constant 0 : index
    %57 = vector.load %arg7[%c4, %c0_39] : memref<592x32xbf16, #tpu.memory_space<vmem>>, vector<588x32xbf16>
    %c0_40 = arith.constant 0 : index
    %c0_41 = arith.constant 0 : index
    %58 = vector.load %arg8[%c0_40, %c0_41] : memref<592x32xbf16, #tpu.memory_space<vmem>>, vector<588x32xbf16>
    tpu.vector_store %arg8[%c0_40, %c0_41], %57 {strides = array<i32>} : memref<592x32xbf16, #tpu.memory_space<vmem>>, vector<588x32xbf16>,
    %cst_42 = arith.constant 0.000000e+00 : f32
    %59 = vector.broadcast %cst_42 : f32 to vector<384x32xf32>
    %c0_43 = arith.constant 0 : index
    %c0_44 = arith.constant 0 : index
    %60 = vector.load %arg8[%c0_43, %c0_44] : memref<592x32xbf16, #tpu.memory_space<vmem>>, vector<384x32xbf16>
    %c0_45 = arith.constant 0 : index
    %c0_46 = arith.constant 0 : index
    %c0_47 = arith.constant 0 : index
    %61 = vector.load %arg2[%c0_45, %c0_46, %c0_47] : memref<9x32x32xbf16, #tpu.memory_space<vmem>>, vector<1x32x32xbf16>
    %62 = vector.shape_cast %61 : vector<1x32x32xbf16> to vector<32x32xbf16>
    %cst_48 = arith.constant dense<0.000000e+00> : vector<384x32xf32>
    %63 = tpu.matmul %60, %62, %cst_48 {dimension_numbers = #tpu.dot_dimension_numbers<[1], [0], [0], [1], [0, 0, 1, 1], [], []>} : vector<384x32xbf16>, vector<32x32xbf16>, vector<384x32xf32> -> vector<384x32xf32>
    %64 = arith.addf %59, %63 : vector<384x32xf32>
    %c8 = arith.constant 8 : index
    %c0_49 = arith.constant 0 : index
    %65 = vector.load %arg7[%c8, %c0_49] : memref<592x32xbf16, #tpu.memory_space<vmem>>, vector<384x32xbf16>
    %c1 = arith.constant 1 : index
    %c0_50 = arith.constant 0 : index
    %c0_51 = arith.constant 0 : index
    %66 = vector.load %arg2[%c1, %c0_50, %c0_51] : memref<9x32x32xbf16, #tpu.memory_space<vmem>>, vector<1x32x32xbf16>
    %67 = vector.shape_cast %66 : vector<1x32x32xbf16> to vector<32x32xbf16>
    %cst_52 = arith.constant dense<0.000000e+00> : vector<384x32xf32>
    %68 = tpu.matmul %65, %67, %cst_52 {dimension_numbers = #tpu.dot_dimension_numbers<[1], [0], [0], [1], [0, 0, 1, 1], [], []>} : vector<384x32xbf16>, vector<32x32xbf16>, vector<384x32xf32> -> vector<384x32xf32>
    %69 = arith.addf %64, %68 : vector<384x32xf32>
    %c8_53 = arith.constant 8 : index
    %c0_54 = arith.constant 0 : index
    %70 = vector.load %arg8[%c8_53, %c0_54] : memref<592x32xbf16, #tpu.memory_space<vmem>>, vector<384x32xbf16>
    %c2 = arith.constant 2 : index
    %c0_55 = arith.constant 0 : index
    %c0_56 = arith.constant 0 : index
    %71 = vector.load %arg2[%c2, %c0_55, %c0_56] : memref<9x32x32xbf16, #tpu.memory_space<vmem>>, vector<1x32x32xbf16>
    %72 = vector.shape_cast %71 : vector<1x32x32xbf16> to vector<32x32xbf16>
    %cst_57 = arith.constant dense<0.000000e+00> : vector<384x32xf32>
    %73 = tpu.matmul %70, %72, %cst_57 {dimension_numbers = #tpu.dot_dimension_numbers<[1], [0], [0], [1], [0, 0, 1, 1], [], []>} : vector<384x32xbf16>, vector<32x32xbf16>, vector<384x32xf32> -> vector<384x32xf32>
    %74 = arith.addf %69, %73 : vector<384x32xf32>
    %c96 = arith.constant 96 : index
    %c0_58 = arith.constant 0 : index
    %75 = vector.load %arg8[%c96, %c0_58] : memref<592x32xbf16, #tpu.memory_space<vmem>>, vector<384x32xbf16>
    %c3 = arith.constant 3 : index
    %c0_59 = arith.constant 0 : index
    %c0_60 = arith.constant 0 : index
    %76 = vector.load %arg2[%c3, %c0_59, %c0_60] : memref<9x32x32xbf16, #tpu.memory_space<vmem>>, vector<1x32x32xbf16>
    %77 = vector.shape_cast %76 : vector<1x32x32xbf16> to vector<32x32xbf16>
    %cst_61 = arith.constant dense<0.000000e+00> : vector<384x32xf32>
    %78 = tpu.matmul %75, %77, %cst_61 {dimension_numbers = #tpu.dot_dimension_numbers<[1], [0], [0], [1], [0, 0, 1, 1], [], []>} : vector<384x32xbf16>, vector<32x32xbf16>, vector<384x32xf32> -> vector<384x32xf32>
    %79 = arith.addf %74, %78 : vector<384x32xf32>
    %c104_62 = arith.constant 104 : index
    %c0_63 = arith.constant 0 : index
    %80 = vector.load %arg7[%c104_62, %c0_63] : memref<592x32xbf16, #tpu.memory_space<vmem>>, vector<384x32xbf16>
    %c4_64 = arith.constant 4 : index
    %c0_65 = arith.constant 0 : index
    %c0_66 = arith.constant 0 : index
    %81 = vector.load %arg2[%c4_64, %c0_65, %c0_66] : memref<9x32x32xbf16, #tpu.memory_space<vmem>>, vector<1x32x32xbf16>
    %82 = vector.shape_cast %81 : vector<1x32x32xbf16> to vector<32x32xbf16>
    %cst_67 = arith.constant dense<0.000000e+00> : vector<384x32xf32>
    %83 = tpu.matmul %80, %82, %cst_67 {dimension_numbers = #tpu.dot_dimension_numbers<[1], [0], [0], [1], [0, 0, 1, 1], [], []>} : vector<384x32xbf16>, vector<32x32xbf16>, vector<384x32xf32> -> vector<384x32xf32>
    %84 = arith.addf %79, %83 : vector<384x32xf32>
    %c104_68 = arith.constant 104 : index
    %c0_69 = arith.constant 0 : index
    %85 = vector.load %arg8[%c104_68, %c0_69] : memref<592x32xbf16, #tpu.memory_space<vmem>>, vector<384x32xbf16>
    %c5 = arith.constant 5 : index
    %c0_70 = arith.constant 0 : index
    %c0_71 = arith.constant 0 : index
    %86 = vector.load %arg2[%c5, %c0_70, %c0_71] : memref<9x32x32xbf16, #tpu.memory_space<vmem>>, vector<1x32x32xbf16>
    %87 = vector.shape_cast %86 : vector<1x32x32xbf16> to vector<32x32xbf16>
    %cst_72 = arith.constant dense<0.000000e+00> : vector<384x32xf32>
    %88 = tpu.matmul %85, %87, %cst_72 {dimension_numbers = #tpu.dot_dimension_numbers<[1], [0], [0], [1], [0, 0, 1, 1], [], []>} : vector<384x32xbf16>, vector<32x32xbf16>, vector<384x32xf32> -> vector<384x32xf32>
    %89 = arith.addf %84, %88 : vector<384x32xf32>
    %c192_73 = arith.constant 192 : index
    %c0_74 = arith.constant 0 : index
    %90 = vector.load %arg8[%c192_73, %c0_74] : memref<592x32xbf16, #tpu.memory_space<vmem>>, vector<384x32xbf16>
    %c6 = arith.constant 6 : index
    %c0_75 = arith.constant 0 : index
    %c0_76 = arith.constant 0 : index
    %91 = vector.load %arg2[%c6, %c0_75, %c0_76] : memref<9x32x32xbf16, #tpu.memory_space<vmem>>, vector<1x32x32xbf16>
    %92 = vector.shape_cast %91 : vector<1x32x32xbf16> to vector<32x32xbf16>
    %cst_77 = arith.constant dense<0.000000e+00> : vector<384x32xf32>
    %93 = tpu.matmul %90, %92, %cst_77 {dimension_numbers = #tpu.dot_dimension_numbers<[1], [0], [0], [1], [0, 0, 1, 1], [], []>} : vector<384x32xbf16>, vector<32x32xbf16>, vector<384x32xf32> -> vector<384x32xf32>
    %94 = arith.addf %89, %93 : vector<384x32xf32>
    %c200_78 = arith.constant 200 : index
    %c0_79 = arith.constant 0 : index
    %95 = vector.load %arg7[%c200_78, %c0_79] : memref<592x32xbf16, #tpu.memory_space<vmem>>, vector<384x32xbf16>
    %c7 = arith.constant 7 : index
    %c0_80 = arith.constant 0 : index
    %c0_81 = arith.constant 0 : index
    %96 = vector.load %arg2[%c7, %c0_80, %c0_81] : memref<9x32x32xbf16, #tpu.memory_space<vmem>>, vector<1x32x32xbf16>
    %97 = vector.shape_cast %96 : vector<1x32x32xbf16> to vector<32x32xbf16>
    %cst_82 = arith.constant dense<0.000000e+00> : vector<384x32xf32>
    %98 = tpu.matmul %95, %97, %cst_82 {dimension_numbers = #tpu.dot_dimension_numbers<[1], [0], [0], [1], [0, 0, 1, 1], [], []>} : vector<384x32xbf16>, vector<32x32xbf16>, vector<384x32xf32> -> vector<384x32xf32>
    %99 = arith.addf %94, %98 : vector<384x32xf32>
    %c200_83 = arith.constant 200 : index
    %c0_84 = arith.constant 0 : index
    %100 = vector.load %arg8[%c200_83, %c0_84] : memref<592x32xbf16, #tpu.memory_space<vmem>>, vector<384x32xbf16>
    %c8_85 = arith.constant 8 : index
    %c0_86 = arith.constant 0 : index
    %c0_87 = arith.constant 0 : index
    %101 = vector.load %arg2[%c8_85, %c0_86, %c0_87] : memref<9x32x32xbf16, #tpu.memory_space<vmem>>, vector<1x32x32xbf16>
    %102 = vector.shape_cast %101 : vector<1x32x32xbf16> to vector<32x32xbf16>
    %cst_88 = arith.constant dense<0.000000e+00> : vector<384x32xf32>
    %103 = tpu.matmul %100, %102, %cst_88 {dimension_numbers = #tpu.dot_dimension_numbers<[1], [0], [0], [1], [0, 0, 1, 1], [], []>} : vector<384x32xbf16>, vector<32x32xbf16>, vector<384x32xf32> -> vector<384x32xf32>
    %104 = arith.addf %99, %103 : vector<384x32xf32>
    %c0_89 = arith.constant 0 : index
    %c0_90 = arith.constant 0 : index
    %105 = vector.load %arg3[%c0_89, %c0_90] : memref<1x32xf32, #tpu.memory_space<vmem>>, vector<1x32xf32>
    %106 = vector.broadcast %105 : vector<1x32xf32> to vector<384x32xf32>
    %107 = arith.addf %104, %106 : vector<384x32xf32>
    %cst_91 = arith.constant 0.000000e+00 : f32
    %108 = vector.broadcast %cst_91 : f32 to vector<384x32xf32>
    %109 = arith.maximumf %107, %108 : vector<384x32xf32>
    %c0_92 = arith.constant 0 : index
    %c0_93 = arith.constant 0 : index
    %110 = vector.load %arg9[%c0_92, %c0_93] : memref<592x32xbf16, #tpu.memory_space<vmem>>, vector<104x32xbf16>
    tpu.vector_store %arg9[%c0_92, %c0_93], %0 {strides = array<i32>} : memref<592x32xbf16, #tpu.memory_space<vmem>>, vector<104x32xbf16>,
    %c488_94 = arith.constant 488 : index
    %c0_95 = arith.constant 0 : index
    %111 = vector.load %arg9[%c488_94, %c0_95] : memref<592x32xbf16, #tpu.memory_space<vmem>>, vector<104x32xbf16>
    tpu.vector_store %arg9[%c488_94, %c0_95], %1 {strides = array<i32>} : memref<592x32xbf16, #tpu.memory_space<vmem>>, vector<104x32xbf16>,
    %112 = arith.truncf %109 : vector<384x32xf32> to vector<384x32xbf16>
    %c104_96 = arith.constant 104 : index
    %c0_97 = arith.constant 0 : index
    %113 = vector.load %arg9[%c104_96, %c0_97] : memref<592x32xbf16, #tpu.memory_space<vmem>>, vector<384x32xbf16>
    tpu.vector_store %arg9[%c104_96, %c0_97], %112 {strides = array<i32>} : memref<592x32xbf16, #tpu.memory_space<vmem>>, vector<384x32xbf16>,
    %c120_98 = arith.constant 120 : index
    %c0_99 = arith.constant 0 : index
    %114 = vector.load %arg9[%c120_98, %c0_99] : memref<592x32xbf16, #tpu.memory_space<vmem>>, vector<8x32xbf16>
    tpu.vector_store %arg9[%c120_98, %c0_99], %2 {strides = array<i32>} : memref<592x32xbf16, #tpu.memory_space<vmem>>, vector<8x32xbf16>,
    %c144_100 = arith.constant 144 : index
    %c0_101 = arith.constant 0 : index
    %115 = vector.load %arg9[%c144_100, %c0_101] : memref<592x32xbf16, #tpu.memory_space<vmem>>, vector<8x32xbf16>
    tpu.vector_store %arg9[%c144_100, %c0_101], %2 {strides = array<i32>} : memref<592x32xbf16, #tpu.memory_space<vmem>>, vector<8x32xbf16>,
    %c168_102 = arith.constant 168 : index
    %c0_103 = arith.constant 0 : index
    %116 = vector.load %arg9[%c168_102, %c0_103] : memref<592x32xbf16, #tpu.memory_space<vmem>>, vector<8x32xbf16>
    tpu.vector_store %arg9[%c168_102, %c0_103], %2 {strides = array<i32>} : memref<592x32xbf16, #tpu.memory_space<vmem>>, vector<8x32xbf16>,
    %c192_104 = arith.constant 192 : index
    %c0_105 = arith.constant 0 : index
    %117 = vector.load %arg9[%c192_104, %c0_105] : memref<592x32xbf16, #tpu.memory_space<vmem>>, vector<8x32xbf16>
    tpu.vector_store %arg9[%c192_104, %c0_105], %2 {strides = array<i32>} : memref<592x32xbf16, #tpu.memory_space<vmem>>, vector<8x32xbf16>,
    %c216_106 = arith.constant 216 : index
    %c0_107 = arith.constant 0 : index
    %118 = vector.load %arg9[%c216_106, %c0_107] : memref<592x32xbf16, #tpu.memory_space<vmem>>, vector<8x32xbf16>
    tpu.vector_store %arg9[%c216_106, %c0_107], %2 {strides = array<i32>} : memref<592x32xbf16, #tpu.memory_space<vmem>>, vector<8x32xbf16>,
    %c240_108 = arith.constant 240 : index
    %c0_109 = arith.constant 0 : index
    %119 = vector.load %arg9[%c240_108, %c0_109] : memref<592x32xbf16, #tpu.memory_space<vmem>>, vector<8x32xbf16>
    tpu.vector_store %arg9[%c240_108, %c0_109], %2 {strides = array<i32>} : memref<592x32xbf16, #tpu.memory_space<vmem>>, vector<8x32xbf16>,
    %c264_110 = arith.constant 264 : index
    %c0_111 = arith.constant 0 : index
    %120 = vector.load %arg9[%c264_110, %c0_111] : memref<592x32xbf16, #tpu.memory_space<vmem>>, vector<8x32xbf16>
    tpu.vector_store %arg9[%c264_110, %c0_111], %2 {strides = array<i32>} : memref<592x32xbf16, #tpu.memory_space<vmem>>, vector<8x32xbf16>,
    %c288_112 = arith.constant 288 : index
    %c0_113 = arith.constant 0 : index
    %121 = vector.load %arg9[%c288_112, %c0_113] : memref<592x32xbf16, #tpu.memory_space<vmem>>, vector<8x32xbf16>
    tpu.vector_store %arg9[%c288_112, %c0_113], %2 {strides = array<i32>} : memref<592x32xbf16, #tpu.memory_space<vmem>>, vector<8x32xbf16>,
    %c312_114 = arith.constant 312 : index
    %c0_115 = arith.constant 0 : index
    %122 = vector.load %arg9[%c312_114, %c0_115] : memref<592x32xbf16, #tpu.memory_space<vmem>>, vector<8x32xbf16>
    tpu.vector_store %arg9[%c312_114, %c0_115], %2 {strides = array<i32>} : memref<592x32xbf16, #tpu.memory_space<vmem>>, vector<8x32xbf16>,
    %c336_116 = arith.constant 336 : index
    %c0_117 = arith.constant 0 : index
    %123 = vector.load %arg9[%c336_116, %c0_117] : memref<592x32xbf16, #tpu.memory_space<vmem>>, vector<8x32xbf16>
    tpu.vector_store %arg9[%c336_116, %c0_117], %2 {strides = array<i32>} : memref<592x32xbf16, #tpu.memory_space<vmem>>, vector<8x32xbf16>,
    %c360_118 = arith.constant 360 : index
    %c0_119 = arith.constant 0 : index
    %124 = vector.load %arg9[%c360_118, %c0_119] : memref<592x32xbf16, #tpu.memory_space<vmem>>, vector<8x32xbf16>
    tpu.vector_store %arg9[%c360_118, %c0_119], %2 {strides = array<i32>} : memref<592x32xbf16, #tpu.memory_space<vmem>>, vector<8x32xbf16>,
    %c384_120 = arith.constant 384 : index
    %c0_121 = arith.constant 0 : index
    %125 = vector.load %arg9[%c384_120, %c0_121] : memref<592x32xbf16, #tpu.memory_space<vmem>>, vector<8x32xbf16>
    tpu.vector_store %arg9[%c384_120, %c0_121], %2 {strides = array<i32>} : memref<592x32xbf16, #tpu.memory_space<vmem>>, vector<8x32xbf16>,
    %c408_122 = arith.constant 408 : index
    %c0_123 = arith.constant 0 : index
    %126 = vector.load %arg9[%c408_122, %c0_123] : memref<592x32xbf16, #tpu.memory_space<vmem>>, vector<8x32xbf16>
    tpu.vector_store %arg9[%c408_122, %c0_123], %2 {strides = array<i32>} : memref<592x32xbf16, #tpu.memory_space<vmem>>, vector<8x32xbf16>,
    %c432_124 = arith.constant 432 : index
    %c0_125 = arith.constant 0 : index
    %127 = vector.load %arg9[%c432_124, %c0_125] : memref<592x32xbf16, #tpu.memory_space<vmem>>, vector<8x32xbf16>
    tpu.vector_store %arg9[%c432_124, %c0_125], %2 {strides = array<i32>} : memref<592x32xbf16, #tpu.memory_space<vmem>>, vector<8x32xbf16>,
    %c456_126 = arith.constant 456 : index
    %c0_127 = arith.constant 0 : index
    %128 = vector.load %arg9[%c456_126, %c0_127] : memref<592x32xbf16, #tpu.memory_space<vmem>>, vector<8x32xbf16>
    tpu.vector_store %arg9[%c456_126, %c0_127], %2 {strides = array<i32>} : memref<592x32xbf16, #tpu.memory_space<vmem>>, vector<8x32xbf16>,
    %c480_128 = arith.constant 480 : index
    %c0_129 = arith.constant 0 : index
    %129 = vector.load %arg9[%c480_128, %c0_129] : memref<592x32xbf16, #tpu.memory_space<vmem>>, vector<8x32xbf16>
    tpu.vector_store %arg9[%c480_128, %c0_129], %2 {strides = array<i32>} : memref<592x32xbf16, #tpu.memory_space<vmem>>, vector<8x32xbf16>,
    %c4_130 = arith.constant 4 : index
    %c0_131 = arith.constant 0 : index
    %130 = vector.load %arg9[%c4_130, %c0_131] : memref<592x32xbf16, #tpu.memory_space<vmem>>, vector<588x32xbf16>
    %c0_132 = arith.constant 0 : index
    %c0_133 = arith.constant 0 : index
    %131 = vector.load %arg10[%c0_132, %c0_133] : memref<592x32xbf16, #tpu.memory_space<vmem>>, vector<588x32xbf16>
    tpu.vector_store %arg10[%c0_132, %c0_133], %130 {strides = array<i32>} : memref<592x32xbf16, #tpu.memory_space<vmem>>, vector<588x32xbf16>,
    %cst_134 = arith.constant 0.000000e+00 : f32
    %132 = vector.broadcast %cst_134 : f32 to vector<384x32xf32>
    %c0_135 = arith.constant 0 : index
    %c0_136 = arith.constant 0 : index
    %133 = vector.load %arg10[%c0_135, %c0_136] : memref<592x32xbf16, #tpu.memory_space<vmem>>, vector<384x32xbf16>
    %c0_137 = arith.constant 0 : index
    %c0_138 = arith.constant 0 : index
    %c0_139 = arith.constant 0 : index
    %134 = vector.load %arg4[%c0_137, %c0_138, %c0_139] : memref<9x32x32xbf16, #tpu.memory_space<vmem>>, vector<1x32x32xbf16>
    %135 = vector.shape_cast %134 : vector<1x32x32xbf16> to vector<32x32xbf16>
    %cst_140 = arith.constant dense<0.000000e+00> : vector<384x32xf32>
    %136 = tpu.matmul %133, %135, %cst_140 {dimension_numbers = #tpu.dot_dimension_numbers<[1], [0], [0], [1], [0, 0, 1, 1], [], []>} : vector<384x32xbf16>, vector<32x32xbf16>, vector<384x32xf32> -> vector<384x32xf32>
    %137 = arith.addf %132, %136 : vector<384x32xf32>
    %c8_141 = arith.constant 8 : index
    %c0_142 = arith.constant 0 : index
    %138 = vector.load %arg9[%c8_141, %c0_142] : memref<592x32xbf16, #tpu.memory_space<vmem>>, vector<384x32xbf16>
    %c1_143 = arith.constant 1 : index
    %c0_144 = arith.constant 0 : index
    %c0_145 = arith.constant 0 : index
    %139 = vector.load %arg4[%c1_143, %c0_144, %c0_145] : memref<9x32x32xbf16, #tpu.memory_space<vmem>>, vector<1x32x32xbf16>
    %140 = vector.shape_cast %139 : vector<1x32x32xbf16> to vector<32x32xbf16>
    %cst_146 = arith.constant dense<0.000000e+00> : vector<384x32xf32>
    %141 = tpu.matmul %138, %140, %cst_146 {dimension_numbers = #tpu.dot_dimension_numbers<[1], [0], [0], [1], [0, 0, 1, 1], [], []>} : vector<384x32xbf16>, vector<32x32xbf16>, vector<384x32xf32> -> vector<384x32xf32>
    %142 = arith.addf %137, %141 : vector<384x32xf32>
    %c8_147 = arith.constant 8 : index
    %c0_148 = arith.constant 0 : index
    %143 = vector.load %arg10[%c8_147, %c0_148] : memref<592x32xbf16, #tpu.memory_space<vmem>>, vector<384x32xbf16>
    %c2_149 = arith.constant 2 : index
    %c0_150 = arith.constant 0 : index
    %c0_151 = arith.constant 0 : index
    %144 = vector.load %arg4[%c2_149, %c0_150, %c0_151] : memref<9x32x32xbf16, #tpu.memory_space<vmem>>, vector<1x32x32xbf16>
    %145 = vector.shape_cast %144 : vector<1x32x32xbf16> to vector<32x32xbf16>
    %cst_152 = arith.constant dense<0.000000e+00> : vector<384x32xf32>
    %146 = tpu.matmul %143, %145, %cst_152 {dimension_numbers = #tpu.dot_dimension_numbers<[1], [0], [0], [1], [0, 0, 1, 1], [], []>} : vector<384x32xbf16>, vector<32x32xbf16>, vector<384x32xf32> -> vector<384x32xf32>
    %147 = arith.addf %142, %146 : vector<384x32xf32>
    %c96_153 = arith.constant 96 : index
    %c0_154 = arith.constant 0 : index
    %148 = vector.load %arg10[%c96_153, %c0_154] : memref<592x32xbf16, #tpu.memory_space<vmem>>, vector<384x32xbf16>
    %c3_155 = arith.constant 3 : index
    %c0_156 = arith.constant 0 : index
    %c0_157 = arith.constant 0 : index
    %149 = vector.load %arg4[%c3_155, %c0_156, %c0_157] : memref<9x32x32xbf16, #tpu.memory_space<vmem>>, vector<1x32x32xbf16>
    %150 = vector.shape_cast %149 : vector<1x32x32xbf16> to vector<32x32xbf16>
    %cst_158 = arith.constant dense<0.000000e+00> : vector<384x32xf32>
    %151 = tpu.matmul %148, %150, %cst_158 {dimension_numbers = #tpu.dot_dimension_numbers<[1], [0], [0], [1], [0, 0, 1, 1], [], []>} : vector<384x32xbf16>, vector<32x32xbf16>, vector<384x32xf32> -> vector<384x32xf32>
    %152 = arith.addf %147, %151 : vector<384x32xf32>
    %c104_159 = arith.constant 104 : index
    %c0_160 = arith.constant 0 : index
    %153 = vector.load %arg9[%c104_159, %c0_160] : memref<592x32xbf16, #tpu.memory_space<vmem>>, vector<384x32xbf16>
    %c4_161 = arith.constant 4 : index
    %c0_162 = arith.constant 0 : index
    %c0_163 = arith.constant 0 : index
    %154 = vector.load %arg4[%c4_161, %c0_162, %c0_163] : memref<9x32x32xbf16, #tpu.memory_space<vmem>>, vector<1x32x32xbf16>
    %155 = vector.shape_cast %154 : vector<1x32x32xbf16> to vector<32x32xbf16>
    %cst_164 = arith.constant dense<0.000000e+00> : vector<384x32xf32>
    %156 = tpu.matmul %153, %155, %cst_164 {dimension_numbers = #tpu.dot_dimension_numbers<[1], [0], [0], [1], [0, 0, 1, 1], [], []>} : vector<384x32xbf16>, vector<32x32xbf16>, vector<384x32xf32> -> vector<384x32xf32>
    %157 = arith.addf %152, %156 : vector<384x32xf32>
    %c104_165 = arith.constant 104 : index
    %c0_166 = arith.constant 0 : index
    %158 = vector.load %arg10[%c104_165, %c0_166] : memref<592x32xbf16, #tpu.memory_space<vmem>>, vector<384x32xbf16>
    %c5_167 = arith.constant 5 : index
    %c0_168 = arith.constant 0 : index
    %c0_169 = arith.constant 0 : index
    %159 = vector.load %arg4[%c5_167, %c0_168, %c0_169] : memref<9x32x32xbf16, #tpu.memory_space<vmem>>, vector<1x32x32xbf16>
    %160 = vector.shape_cast %159 : vector<1x32x32xbf16> to vector<32x32xbf16>
    %cst_170 = arith.constant dense<0.000000e+00> : vector<384x32xf32>
    %161 = tpu.matmul %158, %160, %cst_170 {dimension_numbers = #tpu.dot_dimension_numbers<[1], [0], [0], [1], [0, 0, 1, 1], [], []>} : vector<384x32xbf16>, vector<32x32xbf16>, vector<384x32xf32> -> vector<384x32xf32>
    %162 = arith.addf %157, %161 : vector<384x32xf32>
    %c192_171 = arith.constant 192 : index
    %c0_172 = arith.constant 0 : index
    %163 = vector.load %arg10[%c192_171, %c0_172] : memref<592x32xbf16, #tpu.memory_space<vmem>>, vector<384x32xbf16>
    %c6_173 = arith.constant 6 : index
    %c0_174 = arith.constant 0 : index
    %c0_175 = arith.constant 0 : index
    %164 = vector.load %arg4[%c6_173, %c0_174, %c0_175] : memref<9x32x32xbf16, #tpu.memory_space<vmem>>, vector<1x32x32xbf16>
    %165 = vector.shape_cast %164 : vector<1x32x32xbf16> to vector<32x32xbf16>
    %cst_176 = arith.constant dense<0.000000e+00> : vector<384x32xf32>
    %166 = tpu.matmul %163, %165, %cst_176 {dimension_numbers = #tpu.dot_dimension_numbers<[1], [0], [0], [1], [0, 0, 1, 1], [], []>} : vector<384x32xbf16>, vector<32x32xbf16>, vector<384x32xf32> -> vector<384x32xf32>
    %167 = arith.addf %162, %166 : vector<384x32xf32>
    %c200_177 = arith.constant 200 : index
    %c0_178 = arith.constant 0 : index
    %168 = vector.load %arg9[%c200_177, %c0_178] : memref<592x32xbf16, #tpu.memory_space<vmem>>, vector<384x32xbf16>
    %c7_179 = arith.constant 7 : index
    %c0_180 = arith.constant 0 : index
    %c0_181 = arith.constant 0 : index
    %169 = vector.load %arg4[%c7_179, %c0_180, %c0_181] : memref<9x32x32xbf16, #tpu.memory_space<vmem>>, vector<1x32x32xbf16>
    %170 = vector.shape_cast %169 : vector<1x32x32xbf16> to vector<32x32xbf16>
    %cst_182 = arith.constant dense<0.000000e+00> : vector<384x32xf32>
    %171 = tpu.matmul %168, %170, %cst_182 {dimension_numbers = #tpu.dot_dimension_numbers<[1], [0], [0], [1], [0, 0, 1, 1], [], []>} : vector<384x32xbf16>, vector<32x32xbf16>, vector<384x32xf32> -> vector<384x32xf32>
    %172 = arith.addf %167, %171 : vector<384x32xf32>
    %c200_183 = arith.constant 200 : index
    %c0_184 = arith.constant 0 : index
    %173 = vector.load %arg10[%c200_183, %c0_184] : memref<592x32xbf16, #tpu.memory_space<vmem>>, vector<384x32xbf16>
    %c8_185 = arith.constant 8 : index
    %c0_186 = arith.constant 0 : index
    %c0_187 = arith.constant 0 : index
    %174 = vector.load %arg4[%c8_185, %c0_186, %c0_187] : memref<9x32x32xbf16, #tpu.memory_space<vmem>>, vector<1x32x32xbf16>
    %175 = vector.shape_cast %174 : vector<1x32x32xbf16> to vector<32x32xbf16>
    %cst_188 = arith.constant dense<0.000000e+00> : vector<384x32xf32>
    %176 = tpu.matmul %173, %175, %cst_188 {dimension_numbers = #tpu.dot_dimension_numbers<[1], [0], [0], [1], [0, 0, 1, 1], [], []>} : vector<384x32xbf16>, vector<32x32xbf16>, vector<384x32xf32> -> vector<384x32xf32>
    %177 = arith.addf %172, %176 : vector<384x32xf32>
    %178 = vector.extract_strided_slice %177 {offsets = [0, 0], sizes = [16, 32], strides = [1, 1]} : vector<384x32xf32> to vector<16x32xf32>
    %179 = vector.extract_strided_slice %177 {offsets = [24, 0], sizes = [16, 32], strides = [1, 1]} : vector<384x32xf32> to vector<16x32xf32>
    %180 = vector.extract_strided_slice %177 {offsets = [48, 0], sizes = [16, 32], strides = [1, 1]} : vector<384x32xf32> to vector<16x32xf32>
    %181 = vector.extract_strided_slice %177 {offsets = [72, 0], sizes = [16, 32], strides = [1, 1]} : vector<384x32xf32> to vector<16x32xf32>
    %182 = vector.extract_strided_slice %177 {offsets = [96, 0], sizes = [16, 32], strides = [1, 1]} : vector<384x32xf32> to vector<16x32xf32>
    %183 = vector.extract_strided_slice %177 {offsets = [120, 0], sizes = [16, 32], strides = [1, 1]} : vector<384x32xf32> to vector<16x32xf32>
    %184 = vector.extract_strided_slice %177 {offsets = [144, 0], sizes = [16, 32], strides = [1, 1]} : vector<384x32xf32> to vector<16x32xf32>
    %185 = vector.extract_strided_slice %177 {offsets = [168, 0], sizes = [16, 32], strides = [1, 1]} : vector<384x32xf32> to vector<16x32xf32>
    %186 = vector.extract_strided_slice %177 {offsets = [192, 0], sizes = [16, 32], strides = [1, 1]} : vector<384x32xf32> to vector<16x32xf32>
    %187 = vector.extract_strided_slice %177 {offsets = [216, 0], sizes = [16, 32], strides = [1, 1]} : vector<384x32xf32> to vector<16x32xf32>
    %188 = vector.extract_strided_slice %177 {offsets = [240, 0], sizes = [16, 32], strides = [1, 1]} : vector<384x32xf32> to vector<16x32xf32>
    %189 = vector.extract_strided_slice %177 {offsets = [264, 0], sizes = [16, 32], strides = [1, 1]} : vector<384x32xf32> to vector<16x32xf32>
    %190 = vector.extract_strided_slice %177 {offsets = [288, 0], sizes = [16, 32], strides = [1, 1]} : vector<384x32xf32> to vector<16x32xf32>
    %191 = vector.extract_strided_slice %177 {offsets = [312, 0], sizes = [16, 32], strides = [1, 1]} : vector<384x32xf32> to vector<16x32xf32>
    %192 = vector.extract_strided_slice %177 {offsets = [336, 0], sizes = [16, 32], strides = [1, 1]} : vector<384x32xf32> to vector<16x32xf32>
    %193 = vector.extract_strided_slice %177 {offsets = [360, 0], sizes = [16, 32], strides = [1, 1]} : vector<384x32xf32> to vector<16x32xf32>
    %194 = tpu.concatenate %178, %179, %180, %181, %182, %183, %184, %185, %186, %187, %188, %189, %190, %191, %192, %193 in 0 : vector<16x32xf32>, vector<16x32xf32>, vector<16x32xf32>, vector<16x32xf32>, vector<16x32xf32>, vector<16x32xf32>, vector<16x32xf32>, vector<16x32xf32>, vector<16x32xf32>, vector<16x32xf32>, vector<16x32xf32>, vector<16x32xf32>, vector<16x32xf32>, vector<16x32xf32>, vector<16x32xf32>, vector<16x32xf32> -> vector<256x32xf32>
    %c0_189 = arith.constant 0 : index
    %c0_190 = arith.constant 0 : index
    %195 = vector.load %arg5[%c0_189, %c0_190] : memref<1x32xf32, #tpu.memory_space<vmem>>, vector<1x32xf32>
    %196 = vector.broadcast %195 : vector<1x32xf32> to vector<256x32xf32>
    %197 = arith.addf %194, %196 : vector<256x32xf32>
    %c0_191 = arith.constant 0 : index
    %c0_192 = arith.constant 0 : index
    %c0_193 = arith.constant 0 : index
    %198 = vector.load %arg1[%c0_191, %c0_192, %c0_193] : memref<1x32x256xf32, #tpu.memory_space<vmem>>, vector<1x32x256xf32>
    %199 = vector.shape_cast %198 : vector<1x32x256xf32> to vector<32x256xf32>
    %200 = tpu.transpose %197, [1, 0] : vector<256x32xf32> -> vector<32x256xf32>
    %201 = arith.addf %199, %200 : vector<32x256xf32>
    %c0_194 = arith.constant 0 : index
    %c0_195 = arith.constant 0 : index
    %c0_196 = arith.constant 0 : index
    %202 = vector.load %arg6[%c0_194, %c0_195, %c0_196] : memref<1x32x256xf32, #tpu.memory_space<vmem>>, vector<1x32x256xf32>
    %203 = vector.shape_cast %202 : vector<1x32x256xf32> to vector<32x256xf32>
    %204 = vector.shape_cast %201 : vector<32x256xf32> to vector<1x32x256xf32>
    tpu.vector_store %arg6[%c0_194, %c0_195, %c0_196], %204 {strides = array<i32>} : memref<1x32x256xf32, #tpu.memory_space<vmem>>, vector<1x32x256xf32>,
    return
  }
  func.func @transform_0(%arg0: i32) -> (i32, i32, i32) {
    %c0_i32 = arith.constant 0 : i32
    %c0_i32_0 = arith.constant 0 : i32
    %c0_i32_1 = arith.constant 0 : i32
    return %arg0, %c0_i32, %c0_i32_0 : i32, i32, i32
  }
  func.func @transform_1(%arg0: i32) -> (i32, i32, i32) {
    %c0_i32 = arith.constant 0 : i32
    %c0_i32_0 = arith.constant 0 : i32
    %c0_i32_1 = arith.constant 0 : i32
    %c0_i32_2 = arith.constant 0 : i32
    return %c0_i32, %c0_i32_0, %c0_i32_1 : i32, i32, i32
  }
  func.func @transform_2(%arg0: i32) -> (i32, i32) {
    %c0_i32 = arith.constant 0 : i32
    %c0_i32_0 = arith.constant 0 : i32
    %c0_i32_1 = arith.constant 0 : i32
    return %c0_i32, %c0_i32_0 : i32, i32
  }
  func.func @transform_3(%arg0: i32) -> (i32, i32, i32) {
    %c0_i32 = arith.constant 0 : i32
    %c0_i32_0 = arith.constant 0 : i32
    %c0_i32_1 = arith.constant 0 : i32
    %c0_i32_2 = arith.constant 0 : i32
    return %c0_i32, %c0_i32_0, %c0_i32_1 : i32, i32, i32
  }
  func.func @transform_4(%arg0: i32) -> (i32, i32) {
    %c0_i32 = arith.constant 0 : i32
    %c0_i32_0 = arith.constant 0 : i32
    %c0_i32_1 = arith.constant 0 : i32
    return %c0_i32, %c0_i32_0 : i32, i32
  }
  func.func @transform_5(%arg0: i32) -> (i32, i32, i32) {
    %c0_i32 = arith.constant 0 : i32
    %c0_i32_0 = arith.constant 0 : i32
    %c0_i32_1 = arith.constant 0 : i32
    return %arg0, %c0_i32, %c0_i32_0 : i32, i32, i32
  }
}

</mosaic_0001>

<bundles_post_ra>
// kernel: resnet_block_dilation4_pallas.1
= control target key start
LH: loop header
LB: loop body
LE: loop exit
PB: predicated region body
PF: predicated region fallthrough
CT: control target
= control target key end

     0   :  { %10 = vsyncpa [#allocation7], 0  ;;  %s14594_s0 = inlined_call_operand.hbm [shape: f32[2,32,256], index: 0, kind: input, shape index: {}]   ;;  %s14595_s1 = inlined_call_operand.hbm [shape: bf16[9,32,32], index: 1, kind: input, shape index: {}]   ;;  %s14596_s2 = inlined_call_operand.hbm [shape: f32[1,32], index: 2, kind: input, shape index: {}]   ;;  %s14597_s3 = inlined_call_operand.hbm [shape: bf16[9,32,32], index: 3, kind: input, shape index: {}]   ;;  %s14598_s4 = inlined_call_operand.hbm [shape: f32[1,32], index: 4, kind: input, shape index: {}]   ;;  %s14599_s5 = inlined_call_operand.hbm [shape: f32[2,32,256], index: 5, kind: output, shape index: {}]  }
   0x1   :  { %12 = vsyncpa [#allocation7 + $0x1], 0 }
   0x2   :  { %13 = vsyncpa [#allocation10], 0 }
   0x3   :  { %14 = vsyncpa [#allocation13], 0 }
   0x4   :  { %15 = vsyncpa [#allocation8], 0 }
   0x5   :  { %17 = vsyncpa [#allocation8 + $0x1], 0  ;;  %s11514_s18 = smov 0   ;;  %s11516_s19 = smov 0  }
   0x6   :  { %s11518_s20 = smov 0   ;;  %s11520_s21 = smov 0  }
   0x7 LB: > { %s11535_s22 = sadd.s32 4294967295, %s11469_s21   ;;  %s8840_s23 = sadd.s32 4294967294, %s11469_s21   ;;  %s11469_s21 = sphi %s11520_s21, %s14756_s21   ;;  %s11465_s20 = sphi %s11518_s20, %s14755_s20   ;;  %s11461_s19 = sphi %s11516_s19, %s14754_s19   ;;  %s11457_s18 = sphi %s11514_s18, %s14753_s18  }
   0x8   : > { %p43_p0 = scmp.ne.s32.totalorder %s11461_s19, %s11457_s18  ;;  %p14600_p1 = scmp.eq.s32.totalorder %s11535_s22, 0 }
   0x9   : > { %p157_p3 = scmp.eq.s32.totalorder %s8840_s23, 1  ;;  %p8841_p5 = scmp.ge.s32.totalorder %s11469_s21, 1 }
   0xa   : > { %p11544_p4 = por %p14600_p1, %p43_p0  ;;  %p164_p7 = scmp.lt.s32.totalorder %s11469_s21, 3 }
   0xb   : > { %p11549_p6 = por %p157_p3, %p43_p0  ;;  %s11471_s27 = smov [#allocation9]  }
   0xc   : > { %s14649_s24 = scalar_select %p11544_p4, 1, 0 }
   0xd   : > { %s14650_s25 = scalar_select %p11549_p6, 1, 0 }
   0xe   : > { %p11554_p8 = pnand %p8841_p5, %p164_p7  ;;  %s176_s28 = sshll.u32 %s11471_s27, 4  ;;  %s11558_s28 = int_to_ptr.vmem [resolvable:$true] %s176_s28 }
   0xf   : > { %s11472_s30 = smov [#allocation12]   ;;  %s11473_s7 = smov [#allocation11]  }
  0x10   : > { %s14651_s26 = scalar_select %p11554_p8, 1, 0 }
  0x11   : > { %p11142_p9 = pneg %p11554_p8  ;;  %s200_s6 = sshll.u32 %s11472_s30, 4  ;;  %s11569_s6 = int_to_ptr.vmem [resolvable:$true] %s200_s6 }
  0x12   : > { %s11571_s8 = sshll.u32 %s11473_s7, 4  ;;  %s11253_s11 = scalar_lea.hbm %s14595_s1, 2304  ;;  %s191_s8 = int_to_ptr.vmem [resolvable:$true] %s11571_s8 }
  0x13   : > { %p11565_p11 = pnand %p11142_p9, %p14600_p1  ;;  %p11254_p12 = scmp.ne.s32.totalorder %s14595_s1, %s11253_s11 }
  0x14   : > { %p11260_p5 = scmp.lt.u32.totalorder %s11253_s11, %s14595_s1 }
  0x15   : > { %p11581_p13 = pneg %p11565_p11 }
  0x17   : > { %p11256_p0 = pnand %p11581_p13, %p11254_p12 }
  0x19   : > { %p11257_p3 = pneg %p11256_p0 }
  0x1b   : > { %p11262_p7 = pnand %p11260_p5, %p11257_p3 }
  0x1d   : > { %11265 = shalt.err (!%p11262_p7)
}
  0x1e   : > { %s11266_s17 = scalar_lea.vmem %s11558_s28, 2304  ;;  %p11274_p2 = scmp.lt.s32.totalorder %s11558_s28, %s11558_s28 }
  0x1f   : > { %p11267_p9 = scmp.ne.s32.totalorder %s11558_s28, %s11266_s17  ;;  %p11275_p6 = scmp.lt.s32.totalorder %s11266_s17, %s11266_s17 }
  0x21   : > { %p11269_p10 = pnand %p11267_p9, %p11581_p13  ;;  %p11276_p12 = por %p11275_p6, %p11274_p2 }
  0x23   : > { %p11270_p1 = pneg %p11269_p10 }
  0x25   : > { %p11277_p0 = pnand %p11276_p12, %p11270_p1 }
  0x27   : > { %11280 = shalt.err (!%p11277_p0)
}
  0x28   : > { %s11474_s23 = smov 64   ;;  %s11475_s27 = smov 4  }
  0x29   : > { %11145 = dma.hbm_to_vmem [thread:$0]  (!%p11565_p11), %s14595_s1, 2304, %s11558_s28, [#allocation10], %s11474_s23, %s11474_s23, %s11475_s27  }
  0x2a   : > { %s11281_s11 = scalar_lea.hbm %s14597_s3, 2304 }
  0x2b   : > { %p11282_p2 = scmp.ne.s32.totalorder %s14597_s3, %s11281_s11  ;;  %p11288_p10 = scmp.lt.u32.totalorder %s11281_s11, %s14597_s3 }
  0x2d   : > { %p11284_p1 = pnand %p11282_p2, %p11581_p13 }
  0x2f   : > { %p11285_p6 = pneg %p11284_p1 }
  0x31   : > { %p11290_p3 = pnand %p11288_p10, %p11285_p6 }
  0x33   : > { %11293 = shalt.err (!%p11290_p3)
}
  0x34   : > { %s11294_s28 = scalar_lea.vmem %s11569_s6, 2304  ;;  %p11302_p12 = scmp.lt.s32.totalorder %s11569_s6, %s11569_s6 }
  0x35   : > { %p11295_p5 = scmp.ne.s32.totalorder %s11569_s6, %s11294_s28  ;;  %p11303_p0 = scmp.lt.s32.totalorder %s11294_s28, %s11294_s28 }
  0x37   : > { %p11297_p7 = pnand %p11295_p5, %p11581_p13  ;;  %p11304_p2 = por %p11303_p0, %p11302_p12 }
  0x39   : > { %p11298_p9 = pneg %p11297_p7 }
  0x3b   : > { %p11305_p1 = pnand %p11304_p2, %p11298_p9 }
  0x3d   : > { %11308 = shalt.err (!%p11305_p1)
}
  0x3e   : > { %11151 = dma.hbm_to_vmem [thread:$0]  (!%p11565_p11), %s14597_s3, 2304, %s11569_s6, [#allocation13], %s11474_s23, %s11474_s23, %s11475_s27  }
  0x3f   : > { %s11309_s10 = scalar_lea.hbm %s14596_s2, 16 }
  0x40   : > { %p11310_p6 = scmp.ne.s32.totalorder %s14596_s2, %s11309_s10  ;;  %p11316_p5 = scmp.lt.u32.totalorder %s11309_s10, %s14596_s2 }
  0x42   : > { %p11312_p10 = pnand %p11310_p6, %p11581_p13 }
  0x44   : > { %p11313_p3 = pneg %p11312_p10 }
  0x46   : > { %p11318_p7 = pnand %p11316_p5, %p11313_p3 }
  0x48   : > { %11321 = shalt.err (!%p11318_p7)
}
  0x49   : > { %s11322_s16 = scalar_lea.vmem %s191_s8, 16  ;;  %s11329_s6 = scalar_lea.vmem %s191_s8, 32 }
  0x4a   : > { %p11323_p9 = scmp.ne.s32.totalorder %s191_s8, %s11322_s16  ;;  %p11330_p2 = scmp.lt.s32.totalorder %s191_s8, %s191_s8 }
  0x4b   : > { %p11331_p1 = scmp.lt.s32.totalorder %s11329_s6, %s11322_s16 }
  0x4c   : > { %p11325_p12 = pnand %p11323_p9, %p11581_p13 }
  0x4d   : > { %p11332_p4 = por %p11331_p1, %p11330_p2 }
  0x4e   : > { %p11326_p0 = pneg %p11325_p12 }
  0x50   : > { %p11333_p8 = pnand %p11332_p4, %p11326_p0 }
  0x52   : > { %11336 = shalt.err (!%p11333_p8)
}
  0x53   : > { %11148 = dma.hbm_to_vmem [thread:$0]  (!%p11565_p11), %s14596_s2, 16, %s191_s8, [#allocation10]  }
  0x54   : > { %s11476_s28 = smov [#allocation14]   ;;  %s11337_s9 = scalar_lea.hbm %s14598_s4, 16 }
  0x55   : > { %s214_s17 = sshll.u32 %s11476_s28, 4  ;;  %p11338_p6 = scmp.ne.s32.totalorder %s14598_s4, %s11337_s9  ;;  %s215_s17 = int_to_ptr.vmem [resolvable:$true] %s214_s17 }
  0x56   : > { %p11344_p10 = scmp.lt.u32.totalorder %s11337_s9, %s14598_s4 }
  0x57   : > { %p11340_p4 = pnand %p11338_p6, %p11581_p13 }
  0x59   : > { %p11341_p8 = pneg %p11340_p4 }
  0x5b   : > { %p11346_p3 = pnand %p11344_p10, %p11341_p8 }
  0x5d   : > { %11349 = shalt.err (!%p11346_p3)
}
  0x5e   : > { %s11350_s8 = scalar_lea.vmem %s215_s17, 16  ;;  %s11357_s15 = scalar_lea.vmem %s215_s17, 32 }
  0x5f   : > { %p11351_p5 = scmp.ne.s32.totalorder %s215_s17, %s11350_s8  ;;  %p11358_p12 = scmp.lt.s32.totalorder %s215_s17, %s215_s17 }
  0x60   : > { %p11359_p0 = scmp.lt.s32.totalorder %s11357_s15, %s11350_s8 }
  0x61   : > { %p11353_p7 = pnand %p11351_p5, %p11581_p13 }
  0x62   : > { %p11360_p2 = por %p11359_p0, %p11358_p12 }
  0x63   : > { %p11354_p9 = pneg %p11353_p7 }
  0x65   : > { %p11361_p1 = pnand %p11360_p2, %p11354_p9 }
  0x67   : > { %11364 = shalt.err (!%p11361_p1)
}
  0x68   : > { %11154 = dma.hbm_to_vmem [thread:$0]  (!%p11565_p11), %s14598_s4, 16, %s215_s17, [#allocation13]  }
  0x69   : > { %s11663_s14 = sadd.s32 1, %s11469_s21   ;;  %s30_s23 = sadd.s32 1, %s11465_s20 }
  0x6a   : > { %s27_s29 = ssub.s32 %s11469_s21, %s11663_s14  ;;  %p37_p13 = scmp.ne.s32.totalorder %s11465_s20, %s11461_s19 }
  0x6b   : > { %p28_p6 = scmp.eq.s32.totalorder %s27_s29, 0  ;;  %p38_p4 = scmp.eq.s32.totalorder %s11469_s21, 0 }
  0x6c   : > { %p14654_p8 = scmp.eq.s32.totalorder %s11535_s22, 1  ;;  %p11167_p3 = scmp.lt.s32.totalorder %s11469_s21, 2 }
  0x6d   : > { %s11679_s28 = scalar_select %p28_p6, %s11465_s20, %s30_s23  }
  0x6e   : > { %p11673_p10 = por %p14654_p8, %p37_p13  ;;  %p39_p5 = por %p38_p4, %p37_p13 }
  0x6f   : > { %s225_s30 = sand.u32 1, %s11465_s20   ;;  %s9332_s17 = sshll.u32 %s11469_s21, 10 }
  0x70   : > { %s8847_s7 = sshll.u32 %s225_s30, 6  ;;  %s11686_s11 = scalar_lea.hbm %s14594_s0, %s9332_s17 }
  0x71   : > { %s229_s12 = scalar_lea.vmem [#allocation6], %s8847_s7  ;;  %p11690_p11 = pnand %p11167_p3, %p39_p5 }
  0x72   : > { %s236_s13 = sshll.u32 %s229_s12, 4  ;;  %s11694_s15 = scalar_lea.sflag [#allocation7], %s225_s30  ;;  %s11688_s13 = int_to_ptr.vmem [resolvable:$true] %s236_s13 }
  0x73   : > { %s11365_s16 = scalar_lea.hbm %s11686_s11, 1024  ;;  %p11367_p9 = pneg %p11690_p11 }
  0x74   : > { %p11366_p7 = scmp.ne.s32.totalorder %s11686_s11, %s11365_s16  ;;  %s11370_s29 = scalar_lea.hbm %s14594_s0, 2048 }
  0x75   : > { %p11371_p2 = scmp.lt.u32.totalorder %s11686_s11, %s14594_s0  ;;  %p11372_p1 = scmp.lt.u32.totalorder %s11370_s29, %s11365_s16 }
  0x76   : > { %p11368_p12 = pnand %p11367_p9, %p11366_p7  ;;  %p11374_p6 = scmp.lt.u32.totalorder %s11365_s16, %s11686_s11 }
  0x77   : > { %p11373_p13 = por %p11372_p1, %p11371_p2 }
  0x78   : > { %p11369_p0 = pneg %p11368_p12 }
  0x79   : > { %p11375_p4 = por %p11374_p6, %p11373_p13 }
  0x7b   : > { %p11376_p8 = pnand %p11375_p4, %p11369_p0 }
  0x7d   : > { %11379 = shalt.err (!%p11376_p8)
}
  0x7e   : > { %s11380_s30 = scalar_lea.vmem %s11688_s13, 1024  ;;  %s11477_s9 = smov [#allocation6]  }
  0x7f   : > { %p11381_p3 = scmp.ne.s32.totalorder %s11688_s13, %s11380_s30  ;;  %s11385_s10 = sshll.u32 %s11477_s9, 4  ;;  %s11386_s10 = int_to_ptr.vmem [resolvable:$false] %s11385_s10 }
  0x80   : > { %s11387_s12 = scalar_lea.vmem %s11386_s10, 2048  ;;  %p11388_p12 = scmp.lt.s32.totalorder %s11688_s13, %s11386_s10 }
  0x81   : > { %p11383_p5 = pnand %p11381_p3, %p11367_p9  ;;  %p11389_p2 = scmp.lt.s32.totalorder %s11387_s12, %s11380_s30 }
  0x83   : > { %p11384_p7 = pneg %p11383_p5  ;;  %p11390_p1 = por %p11389_p2, %p11388_p12 }
  0x85   : > { %p11391_p13 = pnand %p11390_p1, %p11384_p7 }
  0x87   : > { %11394 = shalt.err (!%p11391_p13)
}
  0x88   : > { %s11478_s16 = smov 256   ;;  %s11479_s6 = smov 16  }
  0x89   : > { %11158 = dma.hbm_to_vmem [thread:$0]  (!%p11690_p11), %s11686_s11, 1024, %s11688_s13, %s11694_s15, %s11478_s16, %s11478_s16, %s11479_s6  }
  0x8a   : > { %p14657_p9 = scmp.ne.s32.totalorder %s14651_s26, 0 }
  0x8c   : > { %248 = sbr.rel (%p14657_p9) target bundleno = 2480 (0x9b0), region = 40 }
  0x93   : > { %s11725_s23 = sand.u32 1, %s11461_s19   ;;  %p14658_p0 = scmp.ne.s32.totalorder %s14649_s24, 0 }
  0x94   : > { %s8851_s29 = sshll.u32 %s11725_s23, 6  ;;  %s251_s7 = scalar_lea.sflag [#allocation7], %s11725_s23 }
  0x95   : > { %s11731_s17 = scalar_lea.vmem [#allocation6], %s8851_s29 }
  0x96   : > { %11440 = dma.done.wait (%p14658_p0), %s251_s7, 1024  }
  0x97   : > { %11442 = vsyncadd (%p14658_p0), %s251_s7, 4294966272  ;;  %p14659_p11 = scmp.eq.s32.totalorder %s11535_s22, 0 }
  0x99   : > { %11444 = dma.done.wait (%p14659_p11), [#allocation10], 2320   ;;  %p14660_p6 = pmov %p14659_p11 }
  0x9b   : > { %11446 = vsyncadd (%p14660_p6), [#allocation10], 4294964976  ;;  %p14661_p4 = pmov %p14660_p6 }
  0x9d   : > { %11448 = dma.done.wait (%p14661_p4), [#allocation13], 2320   ;;  %p14662_p8 = pmov %p14661_p4 }
  0x9e   : > { %vm386_vm0 = vcmask 261120   ;;  %v14603_v0 = vmov 0   ;;  %v298_v1 = vld [vmem:[%s11731_s17] sm:$0xff]  ;;  %v299_v2 = vld [vmem:[%s11731_s17 + $0x8] sm:$0xff]  ;;  %vm393_vm1 = vcmask 257024   ;;  %vm395_vm2 = vcmask 261124  }
  0x9f   : > { %11450 = vsyncadd (%p14662_p8), [#allocation13], 4294964976  ;;  %387 = vst.msk [vmem:[#allocation2] sm:$0xff] %vm386_vm0, %v14603_v0  ;;  %306 = vxpose.xlu0.b32.start [1/4] (short) %v298_v1, 128  ;;  %v300_v3 = vld [vmem:[%s11731_s17 + $0x10] sm:$0xff]  ;;  %338 = vxpose.xlu1.b32.start [1/4] (short) %v299_v2, 128  ;;  %v301_v4 = vld [vmem:[%s11731_s17 + $0x18] sm:$0xff]  ;;  %vm773_vm3 = vcmask 1043456  }
  0xa0   : > { %388 = vst.msk [vmem:[#allocation2 + $0x8] sm:$0xff] %vm386_vm0, %v14603_v0  ;;  %389 = vst.msk [vmem:[#allocation2 + $0x10] sm:$0xff] %vm386_vm0, %v14603_v0  ;;  %v11217_v5 = vld [vmem:[#allocation9 + $0x10] sm:$0xff]   ;;  %v302_v6 = vld [vmem:[%s11731_s17 + $0x20] sm:$0xff]  ;;  %vm541_vm4 = vcmask 1045504   ;;  %vm688_vm5 = vcmask 259072  }
  0xa1   : > { %390 = vst.msk [vmem:[#allocation2 + $0x18] sm:$0xff] %vm386_vm0, %v14603_v0  ;;  %391 = vst.msk [vmem:[#allocation2 + $0x20] sm:$0xff] %vm386_vm0, %v14603_v0  ;;  %v11218_v7 = vld [vmem:[#allocation9 + $0x18] sm:$0xff]   ;;  %v303_v9 = vld [vmem:[%s11731_s17 + $0x28] sm:$0xff]  ;;  %9802 = vmatprep.subr.bf16.mxu0 %v11217_v5  ;;  %s14527_s24 = scalar_lea.vmem [#allocation15], %s8851_s29  ;;  %s9333_s11 = sshll.u32 %s11535_s22, 10 }
  0xa2   : > { %392 = vst.msk [vmem:[#allocation2 + $0x28] sm:$0xff] %vm386_vm0, %v14603_v0  ;;  %397 = vst.msk [vmem:[#allocation2 + $0xf8] sm:$0xff] %vm386_vm0, %v14603_v0  ;;  %9803 = vmatpush3.bf16.msra.mxu0 %v11217_v5  ;;  %v304_v15 = vld [vmem:[%s11731_s17 + $0x30] sm:$0xff]  ;;  %v305_v20 = vld [vmem:[%s11731_s17 + $0x38] sm:$0xff]  ;;  %s8729_s26 = sshll.u32 %s14527_s24, 4  ;;  %s14549_s15 = scalar_lea.hbm %s14599_s5, %s9333_s11  ;;  %s14543_s26 = int_to_ptr.vmem [resolvable:$true] %s8729_s26 }
  0xa3   : > { %398 = vst.msk [vmem:[#allocation2 + $0x100] sm:$0xff] %vm386_vm0, %v14603_v0  ;;  %399 = vst.msk [vmem:[#allocation2 + $0x108] sm:$0xff] %vm386_vm0, %v14603_v0  ;;  %307 = vxpose.xlu0.b32.cont [2/4] (short) %v300_v3, 128  ;;  %339 = vxpose.xlu1.b32.cont [2/4] (short) %v301_v4, 128  ;;  %v11219_v27 = vld [vmem:[#allocation9] sm:$0xff]   ;;  %v11220_v32 = vld [vmem:[#allocation9 + $0x8] sm:$0xff]   ;;  %s8716_s30 = scalar_lea.sflag [#allocation8], %s11725_s23  ;;  %s11395_s9 = scalar_lea.vmem %s14543_s26, 1024 }
  0xa4   : > { %400 = vst.msk [vmem:[#allocation2 + $0x110] sm:$0xff] %vm386_vm0, %v14603_v0  ;;  %401 = vst.msk [vmem:[#allocation2 + $0x118] sm:$0xff] %vm386_vm0, %v14603_v0  ;;  %9804 = vmatprep.subr.bf16.mxu0 %v11218_v7  ;;  %v11863_v39 = vld [vmem:[#allocation9 + $0x20] sm:$0xff]   ;;  %p11396_p3 = scmp.ne.s32.totalorder %s14543_s26, %s11395_s9  ;;  %s11481_s22 = smov [#allocation15]  }
  0xa5   : > { %402 = vst.msk [vmem:[#allocation2 + $0x120] sm:$0xff] %vm386_vm0, %v14603_v0  ;;  %4621 = vst.msk [vmem:[#allocation4] sm:$0xff] %vm386_vm0, %v14603_v0  ;;  %s11399_s10 = sshll.u32 %s11481_s22, 4  ;;  %s11400_s10 = int_to_ptr.vmem [resolvable:$false] %s11399_s10 }
  0xa6   : > { %4622 = vst.msk [vmem:[#allocation4 + $0x8] sm:$0xff] %vm386_vm0, %v14603_v0  ;;  %4623 = vst.msk [vmem:[#allocation4 + $0x10] sm:$0xff] %vm386_vm0, %v14603_v0  ;;  %v718_v8 = vld [vmem:[#allocation2] sm:$0xf0]  ;;  %9805 = vmatpush3.bf16.msra.mxu0 %v11218_v7  ;;  %p11397_p5 = pnand %p11396_p3, %p11673_p10  ;;  %s11401_s12 = scalar_lea.vmem %s11400_s10, 2048 }
  0xa7   : > { %4624 = vst.msk [vmem:[#allocation4 + $0x18] sm:$0xff] %vm386_vm0, %v14603_v0  ;;  %4625 = vst.msk [vmem:[#allocation4 + $0x20] sm:$0xff] %vm386_vm0, %v14603_v0  ;;  %v719_v10 = vld [vmem:[#allocation2 + $0x8] sm:$0xff]  ;;  %v774_v11 = vrot.slane %v718_v8, 4  ;;  %v720_v12 = vld [vmem:[#allocation2 + $0x10] sm:$0xff]  ;;  %308 = vxpose.xlu0.b32.cont [3/4] (short) %v302_v6, 128  ;;  %340 = vxpose.xlu1.b32.cont [3/4] (short) %v303_v9, 128  ;;  %p11402_p12 = scmp.lt.s32.totalorder %s14543_s26, %s11400_s10  ;;  %p11403_p2 = scmp.lt.s32.totalorder %s11401_s12, %s11395_s9 }
  0xa8   : > { %4626 = vst.msk [vmem:[#allocation4 + $0x28] sm:$0xff] %vm386_vm0, %v14603_v0  ;;  %4629 = vst.msk [vmem:[#allocation4 + $0xf8] sm:$0xff] %vm386_vm0, %v14603_v0  ;;  %v775_v13 = vrot.slane %v719_v10, 4  ;;  %v777_v14 = vrot.slane %v720_v12, 4  ;;  %v721_v17 = vld [vmem:[#allocation2 + $0x18] sm:$0xff]  ;;  %v722_v19 = vld [vmem:[#allocation2 + $0x20] sm:$0xff]  ;;  %9854 = vmatprep.subr.bf16.mxu0 %v11219_v27  ;;  %p11398_p7 = pneg %p11397_p5 }
  0xa9   : > { %4630 = vst.msk [vmem:[#allocation4 + $0x100] sm:$0xff] %vm386_vm0, %v14603_v0  ;;  %4631 = vst.msk [vmem:[#allocation4 + $0x108] sm:$0xff] %vm386_vm0, %v14603_v0  ;;  %v779_v18 = vrot.slane %v721_v17, 4  ;;  %v781_v22 = vrot.slane %v722_v19, 4  ;;  %v11847_v24 = vld [vmem:[#allocation2 + $0x28] sm:$0xff]  ;;  %v549_v28 = vrot.slane %v722_v19, 2  ;;  %p11404_p1 = por %p11403_p2, %p11402_p12 }
  0xaa   : > { %4632 = vst.msk [vmem:[#allocation4 + $0x110] sm:$0xff] %vm386_vm0, %v14603_v0  ;;  %4633 = vst.msk [vmem:[#allocation4 + $0x118] sm:$0xff] %vm386_vm0, %v14603_v0  ;;  %v776_v16 = vsel %vm773_vm3, %v774_v11, %v775_v13  ;;  %v778_v21 = vsel %vm773_vm3, %v775_v13, %v777_v14  ;;  %v783_v25 = vrot.slane %v11847_v24, 4  ;;  %v551_v29 = vrot.slane %v11847_v24, 2  ;;  %v467_v33 = vld [vmem:[#allocation2] sm:$0xfc] }
  0xab   : > { %4634 = vst.msk [vmem:[#allocation4 + $0x120] sm:$0xff] %vm386_vm0, %v14603_v0  ;;  %9806 = vmatprep.mubr.msk.bf16.mxu0 %vm386_vm0, %v776_v16  ;;  %v780_v23 = vsel %vm773_vm3, %v777_v14, %v779_v18  ;;  %309 = vxpose.xlu0.b32.end [4/4] (short) %v304_v15, 128  ;;  %v782_v26 = vsel %vm773_vm3, %v779_v18, %v781_v22  ;;  %v542_v34 = vrot.slane %v467_v33, 2  ;;  %v543_v35 = vrot.slane %v719_v10, 2  ;;  %p11405_p13 = pnand %p11404_p1, %p11398_p7 }
  0xac   : > { %394 = vst.msk [vmem:[#allocation2 + $0x30] sm:$0xf] %vm393_vm1, %v14603_v0  ;;  %410 = vst.msk [vmem:[#allocation2 + $0x48] sm:$0xf] %vm393_vm1, %v14603_v0  ;;  %9807 = vmatmul.mubr.msk.bf16.vlgmr.msra.gmra.mrb[0].mxu0 %vm386_vm0, %v778_v21  ;;  %341 = vxpose.xlu1.b32.end [4/4] (short) %v305_v20, 128  ;;  %v784_v30 = vsel %vm773_vm3, %v781_v22, %v783_v25  ;;  %v552_v31 = vsel %vm541_vm4, %v549_v28, %v551_v29  ;;  %v545_v36 = vrot.slane %v720_v12, 2 }
  0xad   : > { %408 = vst.msk [vmem:[#allocation2 + $0x38] sm:$0xf0] %vm395_vm2, %v14603_v0  ;;  %396 = vst.msk [vmem:[#allocation2 + $0xf0] sm:$0xf0] %vm395_vm2, %v14603_v0  ;;  %9810 = vmatprep.mubr.msk.bf16.mxu0 %vm386_vm0, %v780_v23  ;;  %9855 = vmatpush3.bf16.msra.mxu0 %v11219_v27  ;;  %v544_v37 = vsel %vm541_vm4, %v542_v34, %v543_v35  ;;  %v547_v40 = vrot.slane %v721_v17, 2 }
  0xae   : > { %416 = vst.msk [vmem:[#allocation2 + $0x50] sm:$0xf0] %vm395_vm2, %v14603_v0  ;;  %424 = vst.msk [vmem:[#allocation2 + $0x68] sm:$0xf0] %vm395_vm2, %v14603_v0  ;;  %9856 = vmatprep.subr.bf16.mxu0 %v11220_v32  ;;  %v546_v38 = vsel %vm541_vm4, %v543_v35, %v545_v36 }
  0xaf   : > { %418 = vst.msk [vmem:[#allocation2 + $0x60] sm:$0xf] %vm393_vm1, %v14603_v0  ;;  %426 = vst.msk [vmem:[#allocation2 + $0x78] sm:$0xf] %vm393_vm1, %v14603_v0  ;;  %v548_v41 = vsel %vm541_vm4, %v545_v36, %v547_v40  ;;  %v550_v42 = vsel %vm541_vm4, %v547_v40, %v549_v28 }
  0xb0   : > { %432 = vst.msk [vmem:[#allocation2 + $0x80] sm:$0xf0] %vm395_vm2, %v14603_v0  ;;  %440 = vst.msk [vmem:[#allocation2 + $0x98] sm:$0xf0] %vm395_vm2, %v14603_v0 }
  0xb1   : > { %434 = vst.msk [vmem:[#allocation2 + $0x90] sm:$0xf] %vm393_vm1, %v14603_v0  ;;  %442 = vst.msk [vmem:[#allocation2 + $0xa8] sm:$0xf] %vm393_vm1, %v14603_v0  ;;  %9857 = vmatpush3.bf16.msra.mxu0 %v11220_v32 }
  0xb2   : > { %448 = vst.msk [vmem:[#allocation2 + $0xb0] sm:$0xf0] %vm395_vm2, %v14603_v0  ;;  %456 = vst.msk [vmem:[#allocation2 + $0xc8] sm:$0xf0] %vm395_vm2, %v14603_v0  ;;  %9906 = vmatprep.subr.bf16.mxu0 %v11863_v39 }
  0xb3   : > { %450 = vst.msk [vmem:[#allocation2 + $0xc0] sm:$0xf] %vm393_vm1, %v14603_v0  ;;  %458 = vst.msk [vmem:[#allocation2 + $0xd8] sm:$0xf] %vm393_vm1, %v14603_v0 }
  0xb4   : > { %464 = vst.msk [vmem:[#allocation2 + $0xe0] sm:$0xf0] %vm395_vm2, %v14603_v0  ;;  %4628 = vst.msk [vmem:[#allocation4 + $0xf0] sm:$0xf0] %vm395_vm2, %v14603_v0  ;;  %9811 = vmatmul.mubr.msk.bf16.gmra.mrb[4].mxu0 %vm386_vm0, %v782_v26 }
  0xb5   : > { %466 = vst.msk [vmem:[#allocation2 + $0xf0] sm:$0xf] %vm393_vm1, %v14603_v0  ;;  %4627 = vst.msk [vmem:[#allocation4 + $0x30] sm:$0xf] %vm393_vm1, %v14603_v0  ;;  %9814 = vmatprep.mubr.msk.bf16.mxu0 %vm386_vm0, %v784_v30 }
  0xb6   : > { %656 = vst.msk [vmem:[#allocation3 + $0x20] sm:$0xff] %vm386_vm0, %v552_v31  ;;  %652 = vst.msk [vmem:[#allocation3] sm:$0xff] %vm386_vm0, %v544_v37 }
  0xb7   : > { %653 = vst.msk [vmem:[#allocation3 + $0x8] sm:$0xff] %vm386_vm0, %v546_v38  ;;  %654 = vst.msk [vmem:[#allocation3 + $0x10] sm:$0xff] %vm386_vm0, %v548_v41 }
  0xb8   : > { %655 = vst.msk [vmem:[#allocation3 + $0x18] sm:$0xff] %vm386_vm0, %v550_v42 }
 0x11f   : > { %v322_v43 = vpop.trf.xlu0 }
 0x120   : > { %v354_v44 = vpop.trf.xlu1 }
 0x123   : > { %v323_v45 = vpop.trf.xlu0 }
 0x124   : > { %v370_v46 = vpack.c.bf16 %v323_v45, %v322_v43  ;;  %v355_v47 = vpop.trf.xlu1 }
 0x125   : > { %v378_v48 = vpack.c.bf16 %v355_v47, %v354_v44 }
 0x126   : > { %v404_v49 = vrot.slane %v370_v46, 4 }
 0x127   : > { %v324_v50 = vpop.trf.xlu0  ;;  %v436_v51 = vrot.slane %v378_v48, 4 }
 0x128   : > { %406 = vst.msk [vmem:[#allocation2 + $0x30] sm:$0xf0] %vm395_vm2, %v404_v49  ;;  %v356_v52 = vpop.trf.xlu1 }
 0x129   : > { %407 = vst.msk [vmem:[#allocation2 + $0x38] sm:$0xf] %vm393_vm1, %v404_v49  ;;  %439 = vst.msk [vmem:[#allocation2 + $0x98] sm:$0xf] %vm393_vm1, %v436_v51 }
 0x12a   : > { %438 = vst.msk [vmem:[#allocation2 + $0x90] sm:$0xf0] %vm395_vm2, %v436_v51 }
 0x12b   : > { %v325_v53 = vpop.trf.xlu0 }
 0x12c   : > { %v371_v54 = vpack.c.bf16 %v325_v53, %v324_v50  ;;  %v357_v55 = vpop.trf.xlu1 }
 0x12d   : > { %v379_v56 = vpack.c.bf16 %v357_v55, %v356_v52 }
 0x12e   : > { %409 = vst.msk [vmem:[#allocation2 + $0x40] sm:$0xff] %vm386_vm0, %v371_v54 }
 0x12f   : > { %v473_v57 = vld [vmem:[#allocation2 + $0x30] sm:$0xff]  ;;  %v326_v59 = vpop.trf.xlu0  ;;  %441 = vst.msk [vmem:[#allocation2 + $0xa0] sm:$0xff] %vm386_vm0, %v379_v56 }
 0x130   : > { %v474_v58 = vld [vmem:[#allocation2 + $0x38] sm:$0xff]  ;;  %v553_v60 = vrot.slane %v473_v57, 2  ;;  %v785_v62 = vrot.slane %v473_v57, 4  ;;  %v358_v3 = vpop.trf.xlu1 }
 0x131   : > { %v555_v61 = vrot.slane %v474_v58, 2  ;;  %v787_v63 = vrot.slane %v474_v58, 4  ;;  %v11876_v1 = vld [vmem:[#allocation2 + $0x90] sm:$0xff]  ;;  %v11878_v2 = vld [vmem:[#allocation2 + $0x98] sm:$0xff] }
 0x132   : > { %v577_v4 = vrot.slane %v11876_v1, 2  ;;  %v579_v5 = vrot.slane %v11878_v2, 2  ;;  %v786_v6 = vsel %vm773_vm3, %v783_v25, %v785_v62  ;;  %v554_v8 = vsel %vm541_vm4, %v551_v29, %v553_v60 }
 0x133   : > { %v788_v7 = vsel %vm773_vm3, %v785_v62, %v787_v63  ;;  %v556_v9 = vsel %vm541_vm4, %v553_v60, %v555_v61  ;;  %9815 = vmatmul.mubr.msk.bf16.gmra.mrb[8].mxu0 %vm386_vm0, %v786_v6  ;;  %v327_v10 = vpop.trf.xlu0  ;;  %657 = vst.msk [vmem:[#allocation3 + $0x28] sm:$0xff] %vm386_vm0, %v554_v8 }
 0x134   : > { %658 = vst.msk [vmem:[#allocation3 + $0x30] sm:$0xff] %vm386_vm0, %v556_v9  ;;  %v580_v11 = vsel %vm541_vm4, %v577_v4, %v579_v5  ;;  %v372_v12 = vpack.c.bf16 %v327_v10, %v326_v59  ;;  %9818 = vmatprep.mubr.msk.bf16.mxu0 %vm386_vm0, %v788_v7  ;;  %v359_v13 = vpop.trf.xlu1 }
 0x135   : > { %670 = vst.msk [vmem:[#allocation3 + $0x90] sm:$0xff] %vm386_vm0, %v580_v11  ;;  %v475_v14 = vld [vmem:[#allocation2 + $0x40] sm:$0xff]  ;;  %v380_v15 = vpack.c.bf16 %v359_v13, %v358_v3 }
 0x136   : > { %v557_v16 = vrot.slane %v475_v14, 2  ;;  %v412_v17 = vrot.slane %v372_v12, 4  ;;  %v11896_v18 = vrot.slane %v475_v14, 4  ;;  %v11898_v19 = vld [vmem:[#allocation2 + $0xa0] sm:$0xff] }
 0x137   : > { %v328_v20 = vpop.trf.xlu0  ;;  %v581_v21 = vrot.slane %v11898_v19, 2  ;;  %v444_v22 = vrot.slane %v380_v15, 4 }
 0x138   : > { %414 = vst.msk [vmem:[#allocation2 + $0x48] sm:$0xf0] %vm395_vm2, %v412_v17  ;;  %v360_v23 = vpop.trf.xlu1  ;;  %v558_v24 = vsel %vm541_vm4, %v555_v61, %v557_v16  ;;  %v790_v26 = vsel %vm773_vm3, %v787_v63, %v11896_v18 }
 0x139   : > { %415 = vst.msk [vmem:[#allocation2 + $0x50] sm:$0xf] %vm393_vm1, %v412_v17  ;;  %447 = vst.msk [vmem:[#allocation2 + $0xb0] sm:$0xf] %vm393_vm1, %v444_v22  ;;  %v582_v25 = vsel %vm541_vm4, %v579_v5, %v581_v21 }
 0x13a   : > { %446 = vst.msk [vmem:[#allocation2 + $0xa8] sm:$0xf0] %vm395_vm2, %v444_v22 }
 0x13b   : > { %659 = vst.msk [vmem:[#allocation3 + $0x38] sm:$0xff] %vm386_vm0, %v558_v24  ;;  %671 = vst.msk [vmem:[#allocation3 + $0x98] sm:$0xff] %vm386_vm0, %v582_v25  ;;  %9819 = vmatmul.mubr.msk.bf16.gmra.mrb[12].mxu0 %vm386_vm0, %v790_v26  ;;  %v329_v27 = vpop.trf.xlu0 }
 0x13c   : > { %v373_v28 = vpack.c.bf16 %v329_v27, %v328_v20  ;;  %v361_v29 = vpop.trf.xlu1 }
 0x13d   : > { %v381_v30 = vpack.c.bf16 %v361_v29, %v360_v23 }
 0x13e   : > { %417 = vst.msk [vmem:[#allocation2 + $0x58] sm:$0xff] %vm386_vm0, %v373_v28 }
 0x13f   : > { %v476_v31 = vld [vmem:[#allocation2 + $0x48] sm:$0xff]  ;;  %v330_v33 = vpop.trf.xlu0  ;;  %449 = vst.msk [vmem:[#allocation2 + $0xb8] sm:$0xff] %vm386_vm0, %v381_v30 }
 0x140   : > { %v477_v32 = vld [vmem:[#allocation2 + $0x50] sm:$0xff]  ;;  %v559_v34 = vrot.slane %v476_v31, 2  ;;  %v791_v36 = vrot.slane %v476_v31, 4  ;;  %v362_v41 = vpop.trf.xlu1 }
 0x141   : > { %v561_v35 = vrot.slane %v477_v32, 2  ;;  %v793_v37 = vrot.slane %v477_v32, 4  ;;  %v11914_v38 = vld [vmem:[#allocation2 + $0xa8] sm:$0xff]  ;;  %v11916_v40 = vld [vmem:[#allocation2 + $0xb0] sm:$0xff] }
 0x142   : > { %v583_v42 = vrot.slane %v11914_v38, 2  ;;  %v585_v43 = vrot.slane %v11916_v40, 2  ;;  %v11922_v44 = vsel %vm773_vm3, %v11896_v18, %v791_v36  ;;  %v560_v46 = vsel %vm541_vm4, %v557_v16, %v559_v34 }
 0x143   : > { %v11925_v45 = vsel %vm773_vm3, %v791_v36, %v793_v37  ;;  %v562_v47 = vsel %vm541_vm4, %v559_v34, %v561_v35  ;;  %9822 = vmatprep.mubr.msk.bf16.mxu0 %vm386_vm0, %v11922_v44  ;;  %v331_v48 = vpop.trf.xlu0  ;;  %660 = vst.msk [vmem:[#allocation3 + $0x40] sm:$0xff] %vm386_vm0, %v560_v46 }
 0x144   : > { %661 = vst.msk [vmem:[#allocation3 + $0x48] sm:$0xff] %vm386_vm0, %v562_v47  ;;  %v584_v49 = vsel %vm541_vm4, %v581_v21, %v583_v42  ;;  %v586_v50 = vsel %vm541_vm4, %v583_v42, %v585_v43  ;;  %v374_v51 = vpack.c.bf16 %v331_v48, %v330_v33  ;;  %9823 = vmatmul.mubr.msk.bf16.gmra.mrb[16].mxu0 %vm386_vm0, %v11925_v45  ;;  %v363_v52 = vpop.trf.xlu1 }
 0x145   : > { %672 = vst.msk [vmem:[#allocation3 + $0xa0] sm:$0xff] %vm386_vm0, %v584_v49  ;;  %673 = vst.msk [vmem:[#allocation3 + $0xa8] sm:$0xff] %vm386_vm0, %v586_v50  ;;  %v478_v53 = vld [vmem:[#allocation2 + $0x58] sm:$0xff]  ;;  %v382_v54 = vpack.c.bf16 %v363_v52, %v362_v41 }
 0x146   : > { %v563_v55 = vrot.slane %v478_v53, 2  ;;  %v420_v56 = vrot.slane %v374_v51, 4  ;;  %v795_v57 = vrot.slane %v478_v53, 4  ;;  %v490_v58 = vld [vmem:[#allocation2 + $0xb8] sm:$0xff] }
 0x147   : > { %v332_v59 = vpop.trf.xlu0  ;;  %v587_v60 = vrot.slane %v490_v58, 2  ;;  %v452_v61 = vrot.slane %v382_v54, 4  ;;  %v11954_v24 = vrot.slane %v490_v58, 4 }
 0x148   : > { %422 = vst.msk [vmem:[#allocation2 + $0x60] sm:$0xf0] %vm395_vm2, %v420_v56  ;;  %v11942_v62 = vsel %vm773_vm3, %v793_v37, %v795_v57  ;;  %v564_v63 = vsel %vm541_vm4, %v561_v35, %v563_v55  ;;  %v364_v3 = vpop.trf.xlu1 }
 0x149   : > { %423 = vst.msk [vmem:[#allocation2 + $0x68] sm:$0xf] %vm393_vm1, %v420_v56  ;;  %9826 = vmatprep.mubr.msk.bf16.mxu0 %vm386_vm0, %v11942_v62  ;;  %455 = vst.msk [vmem:[#allocation2 + $0xc8] sm:$0xf] %vm393_vm1, %v452_v61  ;;  %v588_v5 = vsel %vm541_vm4, %v585_v43, %v587_v60 }
 0x14a   : > { %454 = vst.msk [vmem:[#allocation2 + $0xc0] sm:$0xf0] %vm395_vm2, %v452_v61 }
 0x14b   : > { %662 = vst.msk [vmem:[#allocation3 + $0x50] sm:$0xff] %vm386_vm0, %v564_v63  ;;  %674 = vst.msk [vmem:[#allocation3 + $0xb0] sm:$0xff] %vm386_vm0, %v588_v5  ;;  %v333_v6 = vpop.trf.xlu0 }
 0x14c   : > { %v375_v7 = vpack.c.bf16 %v333_v6, %v332_v59  ;;  %v365_v8 = vpop.trf.xlu1 }
 0x14d   : > { %v383_v9 = vpack.c.bf16 %v365_v8, %v364_v3 }
 0x14e   : > { %425 = vst.msk [vmem:[#allocation2 + $0x70] sm:$0xff] %vm386_vm0, %v375_v7 }
 0x14f   : > { %v479_v10 = vld [vmem:[#allocation2 + $0x60] sm:$0xff]  ;;  %v334_v12 = vpop.trf.xlu0  ;;  %457 = vst.msk [vmem:[#allocation2 + $0xd0] sm:$0xff] %vm386_vm0, %v383_v9 }
 0x150   : > { %v480_v11 = vld [vmem:[#allocation2 + $0x68] sm:$0xff]  ;;  %v565_v13 = vrot.slane %v479_v10, 2  ;;  %v797_v15 = vrot.slane %v479_v10, 4  ;;  %v366_v21 = vpop.trf.xlu1 }
 0x151   : > { %v567_v14 = vrot.slane %v480_v11, 2  ;;  %v799_v16 = vrot.slane %v480_v11, 4  ;;  %v491_v17 = vld [vmem:[#allocation2 + $0xc0] sm:$0xff]  ;;  %v492_v20 = vld [vmem:[#allocation2 + $0xc8] sm:$0xff] }
 0x152   : > { %v589_v22 = vrot.slane %v491_v17, 2  ;;  %v591_v23 = vrot.slane %v492_v20, 2  ;;  %v2378_v25 = vrot.slane %v491_v17, 4  ;;  %v11957_v26 = vsel %vm773_vm3, %v795_v57, %v797_v15 }
 0x153   : > { %v11960_v27 = vsel %vm773_vm3, %v797_v15, %v799_v16  ;;  %v566_v28 = vsel %vm541_vm4, %v563_v55, %v565_v13  ;;  %v568_v29 = vsel %vm541_vm4, %v565_v13, %v567_v14  ;;  %9827 = vmatmul.mubr.msk.bf16.gmra.mrb[20].mxu0 %vm386_vm0, %v11957_v26  ;;  %v335_v30 = vpop.trf.xlu0  ;;  %v2380_v51 = vrot.slane %v492_v20, 4 }
 0x154   : > { %v592_v31 = vsel %vm541_vm4, %v589_v22, %v591_v23  ;;  %663 = vst.msk [vmem:[#allocation3 + $0x58] sm:$0xff] %vm386_vm0, %v566_v28  ;;  %664 = vst.msk [vmem:[#allocation3 + $0x60] sm:$0xff] %vm386_vm0, %v568_v29  ;;  %v590_v32 = vsel %vm541_vm4, %v587_v60, %v589_v22  ;;  %v376_v33 = vpack.c.bf16 %v335_v30, %v334_v12  ;;  %9830 = vmatprep.mubr.msk.bf16.mxu0 %vm386_vm0, %v11960_v27  ;;  %v367_v34 = vpop.trf.xlu1  ;;  %v12017_v12 = vld [vmem:[#allocation3 + $0x8] sm:$0xff] }
 0x155   : > { %676 = vst.msk [vmem:[#allocation3 + $0xc0] sm:$0xff] %vm386_vm0, %v592_v31  ;;  %675 = vst.msk [vmem:[#allocation3 + $0xb8] sm:$0xff] %vm386_vm0, %v590_v32  ;;  %v11976_v35 = vsel %vm773_vm3, %v11954_v24, %v2378_v25  ;;  %v481_v36 = vld [vmem:[#allocation2 + $0x70] sm:$0xff]  ;;  %v384_v37 = vpack.c.bf16 %v367_v34, %v366_v21  ;;  %v11993_v55 = vsel %vm773_vm3, %v2378_v25, %v2380_v51  ;;  %v1497_v15 = vrot.slane %v12017_v12, 4  ;;  %v12054_v32 = vld [vmem:[#allocation3 + $0x18] sm:$0xff] }
 0x156   : > { %v569_v41 = vrot.slane %v481_v36, 2  ;;  %v428_v42 = vrot.slane %v376_v33, 4  ;;  %v801_v43 = vrot.slane %v481_v36, 4  ;;  %v11978_v46 = vld [vmem:[#allocation2 + $0xd0] sm:$0xff]  ;;  %v809_v22 = vrot.slane %v11876_v1, 4 }
 0x157   : > { %v336_v47 = vpop.trf.xlu0  ;;  %v593_v48 = vrot.slane %v11978_v46, 2  ;;  %v460_v49 = vrot.slane %v384_v37, 4  ;;  %v14607_v52 = vrot.slane %v11978_v46, 4  ;;  %v811_v28 = vrot.slane %v11878_v2, 4 }
 0x158   : > { %430 = vst.msk [vmem:[#allocation2 + $0x78] sm:$0xf0] %vm395_vm2, %v428_v42  ;;  %v570_v50 = vsel %vm541_vm4, %v567_v14, %v569_v41  ;;  %v11989_v53 = vsel %vm773_vm3, %v799_v16, %v801_v43  ;;  %v692_v14 = vld [vmem:[#allocation3 + $0x10] sm:$0xff]  ;;  %v1501_v1 = vrot.slane %v12054_v32, 4  ;;  %v815_v34 = vrot.slane %v11914_v38, 4 }
 0x159   : > { %431 = vst.msk [vmem:[#allocation2 + $0x80] sm:$0xf] %vm393_vm1, %v428_v42  ;;  %463 = vst.msk [vmem:[#allocation2 + $0xe0] sm:$0xf] %vm393_vm1, %v460_v49  ;;  %v594_v54 = vsel %vm541_vm4, %v591_v23, %v593_v48  ;;  %v11998_v56 = vsel %vm773_vm3, %v2380_v51, %v14607_v52  ;;  %v1499_v17 = vrot.slane %v692_v14, 4  ;;  %v12052_v2 = vsel %vm773_vm3, %v809_v22, %v811_v28  ;;  %v12100_v51 = vld [vmem:[#allocation3 + $0x30] sm:$0xff] }
 0x15a   : > { %665 = vst.msk [vmem:[#allocation3 + $0x68] sm:$0xff] %vm386_vm0, %v570_v50  ;;  %677 = vst.msk [vmem:[#allocation3 + $0xc8] sm:$0xff] %vm386_vm0, %v594_v54  ;;  %v742_v42 = vld [vmem:[#allocation2 + $0xc0] sm:$0xf]  ;;  %v695_v50 = vld [vmem:[#allocation3 + $0x28] sm:$0xff] }
 0x15b   : > { %462 = vst.msk [vmem:[#allocation2 + $0xd8] sm:$0xf0] %vm395_vm2, %v460_v49  ;;  %9831 = vmatmul.mubr.msk.bf16.gmra.mrb[24].mxu0 %vm386_vm0, %v11989_v53  ;;  %v337_v57 = vpop.trf.xlu0  ;;  %v12032_v23 = vsel %vm773_vm3, %v1497_v15, %v1499_v17  ;;  %v12063_v33 = vsel %vm773_vm3, %v1499_v17, %v1501_v1  ;;  %v11223_v49 = vld [vmem:[#allocation9 + $0x30] sm:$0xff]   ;;  %v12108_v54 = vld [vmem:[#allocation3 + $0x40] sm:$0xff] }
 0x15c   : > { %v377_v58 = vpack.c.bf16 %v337_v57, %v336_v47  ;;  %v690_v47 = vld [vmem:[#allocation3] sm:$0xff]  ;;  %v12112_v57 = vld [vmem:[#allocation3 + $0x48] sm:$0xff] }
 0x15d   : > { %v1441_v17 = vld [vmem:[#allocation3] sm:$0xf0] }
 0x15e   : > { %433 = vst.msk [vmem:[#allocation2 + $0x88] sm:$0xff] %vm386_vm0, %v377_v58  ;;  %v12116_v58 = vld [vmem:[#allocation3 + $0x50] sm:$0xff] }
 0x15f   : > { %v482_v59 = vld [vmem:[#allocation2 + $0x78] sm:$0xff] }
 0x160   : > { %v483_v60 = vld [vmem:[#allocation2 + $0x80] sm:$0xff]  ;;  %v571_v61 = vrot.slane %v482_v59, 2  ;;  %v803_v3 = vrot.slane %v482_v59, 4 }
 0x161   : > { %v573_v63 = vrot.slane %v483_v60, 2  ;;  %v805_v5 = vrot.slane %v483_v60, 4  ;;  %v12120_v59 = vld [vmem:[#allocation3 + $0x58] sm:$0xff]  ;;  %v12124_v60 = vld [vmem:[#allocation3 + $0x60] sm:$0xff] }
 0x162   : > { %v12004_v6 = vld [vmem:[#allocation2 + $0xd8] sm:$0xff]  ;;  %v12008_v8 = vsel %vm773_vm3, %v801_v43, %v803_v3  ;;  %v572_v10 = vsel %vm541_vm4, %v569_v41, %v571_v61  ;;  %v821_v43 = vrot.slane %v742_v42, 4  ;;  %v1511_v42 = vrot.slane %v12108_v54, 4 }
 0x163   : > { %v595_v7 = vrot.slane %v12004_v6, 2  ;;  %v12011_v9 = vsel %vm773_vm3, %v803_v3, %v805_v5  ;;  %v574_v11 = vsel %vm541_vm4, %v571_v61, %v573_v63  ;;  %9834 = vmatprep.mubr.msk.bf16.mxu0 %vm386_vm0, %v12008_v8  ;;  %666 = vst.msk [vmem:[#allocation3 + $0x70] sm:$0xff] %vm386_vm0, %v572_v10  ;;  %v12128_v61 = vld [vmem:[#allocation3 + $0x68] sm:$0xff] }
 0x164   : > { %667 = vst.msk [vmem:[#allocation3 + $0x78] sm:$0xff] %vm386_vm0, %v574_v11  ;;  %9835 = vmatmul.mubr.msk.bf16.gmra.mrb[28].mxu0 %vm386_vm0, %v12011_v9  ;;  %v12148_v11 = vld [vmem:[#allocation3 + $0x90] sm:$0xff] }
 0x165   : > { %v596_v13 = vsel %vm541_vm4, %v593_v48, %v595_v7  ;;  %v484_v16 = vld [vmem:[#allocation2 + $0x88] sm:$0xff]  ;;  %v822_v48 = vsel %vm773_vm3, %v11954_v24, %v821_v43  ;;  %v12199_v43 = vld [vmem:[#allocation2 + $0xe0] sm:$0xff] }
 0x166   : > { %678 = vst.msk [vmem:[#allocation3 + $0xd0] sm:$0xff] %vm386_vm0, %v596_v13  ;;  %v575_v20 = vrot.slane %v484_v16, 2  ;;  %v807_v21 = vrot.slane %v484_v16, 4  ;;  %v12152_v13 = vld [vmem:[#allocation3 + $0x98] sm:$0xff]  ;;  %v12160_v16 = vld [vmem:[#allocation3 + $0xa8] sm:$0xff] }
 0x168   : > { %v12035_v25 = vsel %vm773_vm3, %v805_v5, %v807_v21  ;;  %v576_v29 = vsel %vm541_vm4, %v573_v63, %v575_v20  ;;  %v578_v30 = vsel %vm541_vm4, %v575_v20, %v577_v4  ;;  %v12047_v31 = vsel %vm773_vm3, %v807_v21, %v809_v22  ;;  %v12164_v20 = vld [vmem:[#allocation3 + $0xb0] sm:$0xff] }
 0x169   : > { %9838 = vmatprep.mubr.msk.bf16.mxu0 %vm386_vm0, %v12035_v25  ;;  %668 = vst.msk [vmem:[#allocation3 + $0x80] sm:$0xff] %vm386_vm0, %v576_v29  ;;  %669 = vst.msk [vmem:[#allocation3 + $0x88] sm:$0xff] %vm386_vm0, %v578_v30  ;;  %v813_v4 = vrot.slane %v11898_v19, 4  ;;  %v817_v19 = vrot.slane %v11916_v40, 4  ;;  %v11222_v40 = vld [vmem:[#allocation9 + $0x28] sm:$0xff]   ;;  %v1496_v21 = vrot.slane %v1441_v17, 4 }
 0x16a   : > { %v12132_v63 = vld [vmem:[#allocation3 + $0x70] sm:$0xff]  ;;  %14663 = vst [vmem:[#allocation20_spill] sm:$0xff] %v12164_v20  ;;  %v12180_v30 = vld [vmem:[#allocation9 + $0x40] sm:$0xff]   ;;  %v1515_v17 = vrot.slane %v12116_v58, 4 }
 0x16b   : > { %v12067_v36 = vsel %vm773_vm3, %v811_v28, %v813_v4  ;;  %v12072_v37 = vsel %vm773_vm3, %v813_v4, %v815_v34  ;;  %v12078_v41 = vsel %vm773_vm3, %v815_v34, %v817_v19  ;;  %v12084_v38 = vsel %vm773_vm3, %v817_v19, %v11954_v24  ;;  %v694_v24 = vld [vmem:[#allocation3 + $0x20] sm:$0xff]  ;;  %v12136_v3 = vld [vmem:[#allocation3 + $0x78] sm:$0xff]  ;;  %v11224_v29 = vld [vmem:[#allocation9 + $0x38] sm:$0xff]  }
 0x16c   : > { %9839 = vmatmul.mubr.msk.bf16.gmra.mrb[32].mxu0 %vm386_vm0, %v12047_v31  ;;  %v1498_v22 = vsel %vm773_vm3, %v1496_v21, %v1497_v15  ;;  %v12171_v28 = vld [vmem:[#allocation3 + $0xb8] sm:$0xff]  ;;  %v1505_v15 = vrot.slane %v695_v50, 4 }
 0x16d   : > { %9842 = vmatprep.mubr.msk.bf16.mxu0 %vm386_vm0, %v12052_v2  ;;  %14664 = vst [vmem:[#allocation21_spill] sm:$0xff] %v12171_v28 }
 0x170   : > { %v12140_v5 = vld [vmem:[#allocation3 + $0x80] sm:$0xff]  ;;  %v12144_v10 = vld [vmem:[#allocation3 + $0x88] sm:$0xff] }
 0x174   : > { %9843 = vmatmul.mubr.msk.bf16.gmra.mrb[36].mxu0 %vm386_vm0, %v12067_v36 }
 0x175   : > { %9846 = vmatprep.mubr.msk.bf16.mxu0 %vm386_vm0, %v12072_v37 }
 0x17c   : > { %9847 = vmatmul.mubr.msk.bf16.gmra.mrb[40].mxu0 %vm386_vm0, %v12078_v41 }
 0x17d   : > { %9850 = vmatprep.mubr.msk.bf16.mxu0 %vm386_vm0, %v12084_v38 }
 0x184   : > { %9851 = vmatmul.mubr.msk.bf16.gmra.mrb[44].mxu0 %vm386_vm0, %v822_v48 }
 0x185   : > { %9858 = vmatprep.mubr.msk.bf16.mxu0 %vm386_vm0, %v690_v47  ;;  %v1513_v47 = vrot.slane %v12112_v57, 4 }
 0x18c   : > { %9859 = vmatmul.mubr.msk.bf16.vlgmr.msra.gmra.mrb[0].mxu0 %vm386_vm0, %v12017_v12  ;;  %v1503_v12 = vrot.slane %v694_v24, 4 }
 0x18d   : > { %9907 = vmatpush3.bf16.msra.mxu0 %v11863_v39  ;;  %9862 = vmatprep.mubr.msk.bf16.mxu0 %vm386_vm0, %v692_v14  ;;  %v12104_v39 = vld [vmem:[#allocation3 + $0x38] sm:$0xff]  ;;  %v12156_v14 = vld [vmem:[#allocation3 + $0xa0] sm:$0xff] }
 0x18e   : > { %9908 = vmatprep.subr.bf16.mxu0 %v11222_v40  ;;  %v1504_v4 = vsel %vm773_vm3, %v1501_v1, %v1503_v12  ;;  %v12191_v34 = vrot.slane %v12104_v39, 4  ;;  %v368_v1 = vpop.trf.xlu1 }
 0x191   : > { %9909 = vmatpush3.bf16.msra.mxu0 %v11222_v40 }
 0x192   : > { %9958 = vmatprep.subr.bf16.mxu0 %v11223_v49  ;;  %v369_v48 = vpop.trf.xlu1 }
 0x193   : > { %v385_v40 = vpack.c.bf16 %v369_v48, %v368_v1  ;;  %v1523_v48 = vrot.slane %v12132_v63, 4 }
 0x194   : > { %9863 = vmatmul.mubr.msk.bf16.gmra.mrb[4].mxu0 %vm386_vm0, %v12054_v32 }
 0x195   : > { %9866 = vmatprep.mubr.msk.bf16.mxu0 %vm386_vm0, %v694_v24  ;;  %v12205_v24 = vsel %vm773_vm3, %v12191_v34, %v1511_v42  ;;  %465 = vst.msk [vmem:[#allocation2 + $0xe8] sm:$0xff] %vm386_vm0, %v385_v40  ;;  %v1525_v40 = vrot.slane %v12136_v3, 4 }
 0x19c   : > { %9867 = vmatmul.mubr.msk.bf16.gmra.mrb[8].mxu0 %vm386_vm0, %v695_v50  ;;  %v12211_v50 = vsel %vm773_vm3, %v1511_v42, %v1513_v47 }
 0x19d   : > { %9870 = vmatprep.mubr.msk.bf16.mxu0 %vm386_vm0, %v12100_v51 }
 0x1a4   : > { %9871 = vmatmul.mubr.msk.bf16.gmra.mrb[12].mxu0 %vm386_vm0, %v12104_v39 }
 0x1a5   : > { %9874 = vmatprep.mubr.msk.bf16.mxu0 %vm386_vm0, %v12108_v54 }
 0x1ac   : > { %9875 = vmatmul.mubr.msk.bf16.gmra.mrb[16].mxu0 %vm386_vm0, %v12112_v57 }
 0x1ad   : > { %9878 = vmatprep.mubr.msk.bf16.mxu0 %vm386_vm0, %v12116_v58 }
 0x1b4   : > { %9879 = vmatmul.mubr.msk.bf16.gmra.mrb[20].mxu0 %vm386_vm0, %v12120_v59 }
 0x1b5   : > { %9882 = vmatprep.mubr.msk.bf16.mxu0 %vm386_vm0, %v12124_v60 }
 0x1bc   : > { %9883 = vmatmul.mubr.msk.bf16.gmra.mrb[24].mxu0 %vm386_vm0, %v12128_v61 }
 0x1bd   : > { %9886 = vmatprep.mubr.msk.bf16.mxu0 %vm386_vm0, %v12132_v63 }
 0x1c4   : > { %9887 = vmatmul.mubr.msk.bf16.gmra.mrb[28].mxu0 %vm386_vm0, %v12136_v3 }
 0x1c5   : > { %9890 = vmatprep.mubr.msk.bf16.mxu0 %vm386_vm0, %v12140_v5 }
 0x1cc   : > { %9891 = vmatmul.mubr.msk.bf16.gmra.mrb[32].mxu0 %vm386_vm0, %v12144_v10 }
 0x1cd   : > { %9894 = vmatprep.mubr.msk.bf16.mxu0 %vm386_vm0, %v12148_v11 }
 0x1d4   : > { %9895 = vmatmul.mubr.msk.bf16.gmra.mrb[36].mxu0 %vm386_vm0, %v12152_v13 }
 0x1d5   : > { %9898 = vmatprep.mubr.msk.bf16.mxu0 %vm386_vm0, %v12156_v14 }
 0x1dc   : > { %9899 = vmatmul.mubr.msk.bf16.gmra.mrb[40].mxu0 %vm386_vm0, %v12160_v16 }
 0x1dd   : > { %9902 = vmatprep.mubr.msk.bf16.mxu0 %vm386_vm0, %v12164_v20 }
 0x1e4   : > { %9903 = vmatmul.mubr.msk.bf16.gmra.mrb[44].mxu0 %vm386_vm0, %v12171_v28 }
 0x1e5   : > { %9910 = vmatprep.mubr.msk.bf16.mxu0 %vm386_vm0, %v1498_v22  ;;  %v1517_v22 = vrot.slane %v12120_v59, 4 }
 0x1ec   : > { %9911 = vmatmul.mubr.msk.bf16.vlgmr.msra.gmra.mrb[0].mxu0 %vm386_vm0, %v12032_v23  ;;  %v1506_v23 = vsel %vm773_vm3, %v1503_v12, %v1505_v15  ;;  %v12222_v12 = vsel %vm773_vm3, %v1513_v47, %v1515_v17 }
 0x1ed   : > { %9959 = vmatpush3.bf16.msra.mxu0 %v11223_v49  ;;  %9914 = vmatprep.mubr.msk.bf16.mxu0 %vm386_vm0, %v12063_v33  ;;  %v1507_v33 = vrot.slane %v12100_v51, 4  ;;  %v597_v49 = vrot.slane %v12199_v43, 2 }
 0x1ee   : > { %9960 = vmatprep.subr.bf16.mxu0 %v11224_v29 }
 0x1ef   : > { %v1508_v19 = vsel %vm773_vm3, %v1505_v15, %v1507_v33  ;;  %v1510_v32 = vsel %vm773_vm3, %v1507_v33, %v12191_v34  ;;  %v598_v21 = vsel %vm541_vm4, %v595_v7, %v597_v49  ;;  %v12227_v15 = vsel %vm773_vm3, %v1515_v17, %v1517_v22 }
 0x1f0   : > { %679 = vst.msk [vmem:[#allocation3 + $0xd8] sm:$0xff] %vm386_vm0, %v598_v21  ;;  %v1519_v7 = vrot.slane %v12124_v60, 4 }
 0x1f1   : > { %9961 = vmatpush3.bf16.msra.mxu0 %v11224_v29  ;;  %v496_v29 = vld [vmem:[#allocation2 + $0xe8] sm:$0xff] }
 0x1f2   : > { %10010 = vmatprep.subr.bf16.mxu0 %v12180_v30  ;;  %v12241_v42 = vsel %vm773_vm3, %v1517_v22, %v1519_v7  ;;  %v12254_v17 = vrot.slane %v496_v29, 4 }
 0x1f4   : > { %9915 = vmatmul.mubr.msk.bf16.gmra.mrb[4].mxu0 %vm386_vm0, %v1504_v4  ;;  %v599_v4 = vrot.slane %v496_v29, 2  ;;  %v12273_v29 = vsel %vm773_vm3, %v1523_v48, %v1525_v40 }
 0x1f5   : > { %9918 = vmatprep.mubr.msk.bf16.mxu0 %vm386_vm0, %v1506_v23  ;;  %v12231_v23 = vld [vmem:[#allocation2 + $0xf0] sm:$0xff] }
 0x1f6   : > { %14665 = vst [vmem:[#allocation22_spill] sm:$0xff] %v12231_v23  ;;  %v601_v33 = vrot.slane %v12231_v23, 2  ;;  %v14605_v22 = vrot.slane %v12231_v23, 4 }
 0x1f8   : > { %v602_v1 = vsel %vm541_vm4, %v599_v4, %v601_v33 }
 0x1f9   : > { %681 = vst.msk [vmem:[#allocation3 + $0xe8] sm:$0xff] %vm386_vm0, %v602_v1 }
 0x1fc   : > { %9919 = vmatmul.mubr.msk.bf16.gmra.mrb[8].mxu0 %vm386_vm0, %v1508_v19  ;;  %v1521_v19 = vrot.slane %v12128_v61, 4 }
 0x1fd   : > { %9922 = vmatprep.mubr.msk.bf16.mxu0 %vm386_vm0, %v1510_v32  ;;  %v600_v32 = vsel %vm541_vm4, %v597_v49, %v599_v4  ;;  %v12252_v49 = vld [vmem:[#allocation2 + $0xf8] sm:$0xff] }
 0x1fe   : > { %680 = vst.msk [vmem:[#allocation3 + $0xe0] sm:$0xff] %vm386_vm0, %v600_v32  ;;  %v12246_v47 = vsel %vm773_vm3, %v1519_v7, %v1521_v19  ;;  %v14606_v21 = vrot.slane %v12252_v49, 2  ;;  %v12259_v4 = vsel %vm773_vm3, %v1521_v19, %v1523_v48  ;;  %v12268_v32 = vsel %vm773_vm3, %v12254_v17, %v14605_v22 }
 0x1ff   : > { %14666 = vst [vmem:[#allocation23_spill] sm:$0xff] %v12268_v32  ;;  %v1527_v19 = vrot.slane %v12140_v5, 4  ;;  %v1531_v48 = vrot.slane %v12148_v11, 4  ;;  %v12316_v32 = vrot.slane %v12171_v28, 4 }
 0x200   : > { %v604_v7 = vsel %vm541_vm4, %v601_v33, %v14606_v21  ;;  %v1529_v33 = vrot.slane %v12144_v10, 4  ;;  %v1537_v21 = vrot.slane %v12160_v16, 4 }
 0x201   : > { %682 = vst.msk [vmem:[#allocation3 + $0xf0] sm:$0xff] %vm386_vm0, %v604_v7  ;;  %v12281_v1 = vsel %vm773_vm3, %v1525_v40, %v1527_v19  ;;  %v1533_v7 = vrot.slane %v12152_v13, 4 }
 0x202   : > { %v12286_v0 = vsel %vm773_vm3, %v1527_v19, %v1529_v33  ;;  %v12293_v22 = vsel %vm773_vm3, %v1529_v33, %v1531_v48  ;;  %v1535_v19 = vrot.slane %v12156_v14, 4 }
 0x203   : > { %v12298_v40 = vsel %vm773_vm3, %v1531_v48, %v1533_v7  ;;  %v1539_v48 = vrot.slane %v12164_v20, 4 }
 0x204   : > { %9923 = vmatmul.mubr.msk.bf16.gmra.mrb[12].mxu0 %vm386_vm0, %v12205_v24  ;;  %v12305_v52 = vsel %vm773_vm3, %v1533_v7, %v1535_v19  ;;  %v12310_v33 = vsel %vm773_vm3, %v1535_v19, %v1537_v21  ;;  %v1465_v19 = vld [vmem:[#allocation3 + $0xc0] sm:$0xf] }
 0x205   : > { %9926 = vmatprep.mubr.msk.bf16.mxu0 %vm386_vm0, %v12211_v50  ;;  %14667 = vst [vmem:[#allocation24_spill] sm:$0xff] %v12305_v52  ;;  %14668 = vst [vmem:[#allocation25_spill] sm:$0xff] %v12310_v33  ;;  %v12319_v23 = vsel %vm773_vm3, %v1537_v21, %v1539_v48  ;;  %v12325_v7 = vsel %vm773_vm3, %v1539_v48, %v12316_v32  ;;  %v11226_v21 = vld [vmem:[#allocation9 + $0x48] sm:$0xff]   ;;  %v11227_v48 = vld [vmem:[#allocation9 + $0x50] sm:$0xff]  }
 0x20c   : > { %9927 = vmatmul.mubr.msk.bf16.gmra.mrb[16].mxu0 %vm386_vm0, %v12222_v12 }
 0x20d   : > { %9930 = vmatprep.mubr.msk.bf16.mxu0 %vm386_vm0, %v12227_v15 }
 0x214   : > { %9931 = vmatmul.mubr.msk.bf16.gmra.mrb[20].mxu0 %vm386_vm0, %v12241_v42 }
 0x215   : > { %9934 = vmatprep.mubr.msk.bf16.mxu0 %vm386_vm0, %v12246_v47 }
 0x21c   : > { %9935 = vmatmul.mubr.msk.bf16.gmra.mrb[24].mxu0 %vm386_vm0, %v12259_v4 }
 0x21d   : > { %9938 = vmatprep.mubr.msk.bf16.mxu0 %vm386_vm0, %v12273_v29 }
 0x224   : > { %9939 = vmatmul.mubr.msk.bf16.gmra.mrb[28].mxu0 %vm386_vm0, %v12281_v1 }
 0x225   : > { %9942 = vmatprep.mubr.msk.bf16.mxu0 %vm386_vm0, %v12286_v0 }
 0x22c   : > { %9943 = vmatmul.mubr.msk.bf16.gmra.mrb[32].mxu0 %vm386_vm0, %v12293_v22 }
 0x22d   : > { %9946 = vmatprep.mubr.msk.bf16.mxu0 %vm386_vm0, %v12298_v40 }
 0x234   : > { %9947 = vmatmul.mubr.msk.bf16.gmra.mrb[36].mxu0 %vm386_vm0, %v12305_v52 }
 0x235   : > { %9950 = vmatprep.mubr.msk.bf16.mxu0 %vm386_vm0, %v12310_v33  ;;  %v1543_v33 = vrot.slane %v1465_v19, 4  ;;  %v12389_v19 = vld [vmem:[#allocation3 + $0xe8] sm:$0xff] }
 0x237   : > { %v1544_v52 = vsel %vm773_vm3, %v12316_v32, %v1543_v33 }
 0x23c   : > { %9951 = vmatmul.mubr.msk.bf16.gmra.mrb[40].mxu0 %vm386_vm0, %v12319_v23 }
 0x23d   : > { %9954 = vmatprep.mubr.msk.bf16.mxu0 %vm386_vm0, %v12325_v7 }
 0x244   : > { %9955 = vmatmul.mubr.msk.bf16.gmra.mrb[44].mxu0 %vm386_vm0, %v1544_v52  ;;  %v12369_v52 = vld [vmem:[#allocation3 + $0xc0] sm:$0xff] }
 0x245   : > { %9962 = vmatprep.mubr.msk.bf16.mxu0 %vm386_vm0, %v12100_v51  ;;  %v12373_v51 = vld [vmem:[#allocation3 + $0xc8] sm:$0xff] }
 0x24c   : > { %9963 = vmatmul.mubr.msk.bf16.vlgmr.msra.gmra.mrb[0].mxu0 %vm386_vm0, %v12104_v39  ;;  %v12377_v39 = vld [vmem:[#allocation3 + $0xd0] sm:$0xff] }
 0x24d   : > { %10011 = vmatpush3.bf16.msra.mxu0 %v12180_v30  ;;  %9966 = vmatprep.mubr.msk.bf16.mxu0 %vm386_vm0, %v12108_v54  ;;  %v12381_v54 = vld [vmem:[#allocation3 + $0xd8] sm:$0xff] }
 0x24e   : > { %10012 = vmatprep.subr.bf16.mxu0 %v11226_v21 }
 0x251   : > { %10013 = vmatpush3.bf16.msra.mxu0 %v11226_v21 }
 0x252   : > { %10062 = vmatprep.subr.bf16.mxu0 %v11227_v48 }
 0x254   : > { %9967 = vmatmul.mubr.msk.bf16.gmra.mrb[4].mxu0 %vm386_vm0, %v12112_v57  ;;  %v12385_v57 = vld [vmem:[#allocation3 + $0xe0] sm:$0xff] }
 0x255   : > { %9970 = vmatprep.mubr.msk.bf16.mxu0 %vm386_vm0, %v12116_v58  ;;  %v2288_v58 = vld [vmem:[#allocation2 + $0x30] sm:$0xf0] }
 0x256   : > { %v2343_v30 = vrot.slane %v2288_v58, 4  ;;  %v11229_v58 = vld [vmem:[#allocation9 + $0x60] sm:$0xff]  }
 0x25c   : > { %9971 = vmatmul.mubr.msk.bf16.gmra.mrb[8].mxu0 %vm386_vm0, %v12120_v59  ;;  %v2289_v59 = vld [vmem:[#allocation2 + $0x38] sm:$0xff] }
 0x25d   : > { %9974 = vmatprep.mubr.msk.bf16.mxu0 %vm386_vm0, %v12124_v60  ;;  %v2344_v33 = vrot.slane %v2289_v59, 4  ;;  %v12540_v59 = vrot.slane %v12389_v19, 4 }
 0x25f   : > { %v2345_v21 = vsel %vm773_vm3, %v2343_v30, %v2344_v33 }
 0x264   : > { %9975 = vmatmul.mubr.msk.bf16.gmra.mrb[12].mxu0 %vm386_vm0, %v12128_v61 }
 0x265   : > { %9978 = vmatprep.mubr.msk.bf16.mxu0 %vm386_vm0, %v12132_v63 }
 0x26c   : > { %9979 = vmatmul.mubr.msk.bf16.gmra.mrb[16].mxu0 %vm386_vm0, %v12136_v3 }
 0x26d   : > { %9982 = vmatprep.mubr.msk.bf16.mxu0 %vm386_vm0, %v12140_v5 }
 0x274   : > { %9983 = vmatmul.mubr.msk.bf16.gmra.mrb[20].mxu0 %vm386_vm0, %v12144_v10 }
 0x275   : > { %9986 = vmatprep.mubr.msk.bf16.mxu0 %vm386_vm0, %v12148_v11 }
 0x27c   : > { %9987 = vmatmul.mubr.msk.bf16.gmra.mrb[24].mxu0 %vm386_vm0, %v12152_v13 }
 0x27d   : > { %9990 = vmatprep.mubr.msk.bf16.mxu0 %vm386_vm0, %v12156_v14 }
 0x284   : > { %9991 = vmatmul.mubr.msk.bf16.gmra.mrb[28].mxu0 %vm386_vm0, %v12160_v16 }
 0x285   : > { %9994 = vmatprep.mubr.msk.bf16.mxu0 %vm386_vm0, %v12164_v20  ;;  %v2347_v20 = vsel %vm773_vm3, %v2344_v33, %v11896_v18  ;;  %v2384_v18 = vrot.slane %v12004_v6, 4 }
 0x28c   : > { %9995 = vmatmul.mubr.msk.bf16.gmra.mrb[32].mxu0 %vm386_vm0, %v12171_v28  ;;  %v11228_v28 = vld [vmem:[#allocation9 + $0x58] sm:$0xff]  }
 0x28d   : > { %9998 = vmatprep.mubr.msk.bf16.mxu0 %vm386_vm0, %v12369_v52 }
 0x294   : > { %9999 = vmatmul.mubr.msk.bf16.gmra.mrb[36].mxu0 %vm386_vm0, %v12373_v51 }
 0x295   : > { %10002 = vmatprep.mubr.msk.bf16.mxu0 %vm386_vm0, %v12377_v39 }
 0x29c   : > { %10003 = vmatmul.mubr.msk.bf16.gmra.mrb[40].mxu0 %vm386_vm0, %v12381_v54 }
 0x29d   : > { %10006 = vmatprep.mubr.msk.bf16.mxu0 %vm386_vm0, %v12385_v57 }
 0x2a4   : > { %10007 = vmatmul.mubr.msk.bf16.gmra.mrb[44].mxu0 %vm386_vm0, %v12389_v19 }
 0x2a5   : > { %10014 = vmatprep.mubr.msk.bf16.mxu0 %vm386_vm0, %v2345_v21  ;;  %v2773_v21 = vld [vmem:[#allocation3 + $0xf0] sm:$0xf] }
 0x2ac   : > { %10015 = vmatmul.mubr.msk.bf16.vlgmr.msra.gmra.mrb[0].mxu0 %vm386_vm0, %v2347_v20 }
 0x2ad   : > { %10063 = vmatpush3.bf16.msra.mxu0 %v11227_v48  ;;  %10018 = vmatprep.mubr.msk.bf16.mxu0 %vm386_vm0, %v11922_v44  ;;  %v14669_v44 = vrot.slane %v11978_v46, 4  ;;  %v2847_v48 = vrot.slane %v12385_v57, 4 }
 0x2ae   : > { %10064 = vmatprep.subr.bf16.mxu0 %v11228_v28 }
 0x2af   : > { %v12549_v33 = vsel %vm773_vm3, %v2847_v48, %v12540_v59 }
 0x2b1   : > { %10065 = vmatpush3.bf16.msra.mxu0 %v11228_v28 }
 0x2b2   : > { %10114 = vmatprep.subr.bf16.mxu0 %v11229_v58 }
 0x2b4   : > { %10019 = vmatmul.mubr.msk.bf16.gmra.mrb[4].mxu0 %vm386_vm0, %v11925_v45  ;;  %v2385_v45 = vsel %vm773_vm3, %v14669_v44, %v2384_v18  ;;  %v11232_v44 = vld [vmem:[#allocation9 + $0x78] sm:$0xff]  }
 0x2b5   : > { %10022 = vmatprep.mubr.msk.bf16.mxu0 %vm386_vm0, %v11942_v62  ;;  %v2386_v62 = vrot.slane %v12199_v43, 4  ;;  %v12494_v43 = vld [vmem:[#allocation2 + $0x118] sm:$0xff] }
 0x2bc   : > { %10023 = vmatmul.mubr.msk.bf16.gmra.mrb[8].mxu0 %vm386_vm0, %v11957_v26  ;;  %v2387_v26 = vsel %vm773_vm3, %v2384_v18, %v2386_v62 }
 0x2bd   : > { %10026 = vmatprep.mubr.msk.bf16.mxu0 %vm386_vm0, %v11960_v27  ;;  %v2389_v27 = vsel %vm773_vm3, %v2386_v62, %v12254_v17 }
 0x2c4   : > { %10027 = vmatmul.mubr.msk.bf16.gmra.mrb[12].mxu0 %vm386_vm0, %v11989_v53 }
 0x2c5   : > { %10030 = vmatprep.mubr.msk.bf16.mxu0 %vm386_vm0, %v12008_v8  ;;  %v11230_v8 = vld [vmem:[#allocation9 + $0x68] sm:$0xff]  }
 0x2cc   : > { %10031 = vmatmul.mubr.msk.bf16.gmra.mrb[16].mxu0 %vm386_vm0, %v12011_v9  ;;  %v11231_v9 = vld [vmem:[#allocation9 + $0x70] sm:$0xff]  }
 0x2cd   : > { %10034 = vmatprep.mubr.msk.bf16.mxu0 %vm386_vm0, %v12035_v25  ;;  %v12471_v25 = vld [vmem:[#allocation2 + $0x100] sm:$0xff] }
 0x2d4   : > { %10035 = vmatmul.mubr.msk.bf16.gmra.mrb[20].mxu0 %vm386_vm0, %v12047_v31  ;;  %v605_v31 = vrot.slane %v12471_v25, 2 }
 0x2d5   : > { %10038 = vmatprep.mubr.msk.bf16.mxu0 %vm386_vm0, %v12052_v2  ;;  %v14670_v2 = vrot.slane %v12252_v49, 2 }
 0x2dc   : > { %10039 = vmatmul.mubr.msk.bf16.gmra.mrb[24].mxu0 %vm386_vm0, %v12067_v36  ;;  %v606_v36 = vsel %vm541_vm4, %v14670_v2, %v605_v31 }
 0x2dd   : > { %10042 = vmatprep.mubr.msk.bf16.mxu0 %vm386_vm0, %v12072_v37  ;;  %683 = vst.msk [vmem:[#allocation3 + $0xf8] sm:$0xff] %vm386_vm0, %v606_v36  ;;  %v12480_v37 = vld [vmem:[#allocation2 + $0x108] sm:$0xff] }
 0x2e4   : > { %10043 = vmatmul.mubr.msk.bf16.gmra.mrb[28].mxu0 %vm386_vm0, %v12078_v41  ;;  %v12485_v41 = vld [vmem:[#allocation2 + $0x110] sm:$0xff] }
 0x2e5   : > { %10046 = vmatprep.mubr.msk.bf16.mxu0 %vm386_vm0, %v12084_v38  ;;  %v609_v38 = vrot.slane %v12485_v41, 2 }
 0x2ec   : > { %10047 = vmatmul.mubr.msk.bf16.gmra.mrb[32].mxu0 %vm386_vm0, %v11976_v35  ;;  %v2312_v35 = vld [vmem:[#allocation2 + $0xf0] sm:$0xf] }
 0x2ed   : > { %10050 = vmatprep.mubr.msk.bf16.mxu0 %vm386_vm0, %v11993_v55  ;;  %v2390_v53 = vrot.slane %v2312_v35, 4  ;;  %v2749_v55 = vld [vmem:[#allocation3 + $0x30] sm:$0xf0] }
 0x2ef   : > { %v2391_v46 = vsel %vm773_vm3, %v12254_v17, %v2390_v53  ;;  %v3600_v53 = vld [vmem:[#allocation2 + $0x80] sm:$0xff] }
 0x2f4   : > { %10051 = vmatmul.mubr.msk.bf16.gmra.mrb[36].mxu0 %vm386_vm0, %v11998_v56  ;;  %v2804_v56 = vrot.slane %v2749_v55, 4  ;;  %v3601_v55 = vld [vmem:[#allocation2 + $0x88] sm:$0xff] }
 0x2f5   : > { %10054 = vmatprep.mubr.msk.bf16.mxu0 %vm386_vm0, %v2385_v45  ;;  %v11233_v45 = vld [vmem:[#allocation9 + $0x80] sm:$0xff]  }
 0x2f6   : > { %v2806_v6 = vsel %vm773_vm3, %v2804_v56, %v12191_v34  ;;  %v14671_v34 = vld [vmem:[#allocation24_spill] sm:$0xff]  ;;  %v3658_v56 = vrot.slane %v3600_v53, 4 }
 0x2fc   : > { %10055 = vmatmul.mubr.msk.bf16.gmra.mrb[40].mxu0 %vm386_vm0, %v2387_v26  ;;  %v11234_v26 = vld [vmem:[#allocation9 + $0x88] sm:$0xff]  }
 0x2fd   : > { %10058 = vmatprep.mubr.msk.bf16.mxu0 %vm386_vm0, %v2389_v27 }
 0x304   : > { %10059 = vmatmul.mubr.msk.bf16.gmra.mrb[44].mxu0 %vm386_vm0, %v2391_v46  ;;  %v3660_v46 = vrot.slane %v3601_v55, 4 }
 0x305   : > { %10066 = vmatprep.mubr.msk.bf16.mxu0 %vm386_vm0, %v2806_v6 }
 0x30c   : > { %10067 = vmatmul.mubr.msk.bf16.vlgmr.msra.gmra.mrb[0].mxu0 %vm386_vm0, %v12205_v24  ;;  %v14672_v24 = vld [vmem:[#allocation25_spill] sm:$0xff] }
 0x30d   : > { %10115 = vmatpush3.bf16.msra.mxu0 %v11229_v58  ;;  %10070 = vmatprep.mubr.msk.bf16.mxu0 %vm386_vm0, %v12211_v50  ;;  %v611_v50 = vrot.slane %v12494_v43, 2  ;;  %v2851_v58 = vrot.slane %v2773_v21, 4  ;;  %v3608_v21 = vld [vmem:[#allocation2 + $0xc0] sm:$0xff] }
 0x30e   : > { %10116 = vmatprep.subr.bf16.mxu0 %v11230_v8 }
 0x30f   : > { %v2852_v18 = vsel %vm773_vm3, %v12540_v59, %v2851_v58 }
 0x311   : > { %10117 = vmatpush3.bf16.msra.mxu0 %v11230_v8  ;;  %v3661_v8 = vsel %vm773_vm3, %v3658_v56, %v3660_v46 }
 0x312   : > { %10166 = vmatprep.subr.bf16.mxu0 %v11231_v9 }
 0x314   : > { %10071 = vmatmul.mubr.msk.bf16.gmra.mrb[4].mxu0 %vm386_vm0, %v12222_v12  ;;  %v12499_v12 = vld [vmem:[#allocation2 + $0x120] sm:$0xff] }
 0x315   : > { %10074 = vmatprep.mubr.msk.bf16.mxu0 %vm386_vm0, %v12227_v15  ;;  %v613_v15 = vrot.slane %v12499_v12, 2  ;;  %v14675_v12 = vld [vmem:[#allocation22_spill] sm:$0xff] }
 0x317   : > { %689 = vst.msk [vmem:[#allocation3 + $0x120] sm:$0x3f] %vm688_vm5, %v613_v15 }
 0x31c   : > { %10075 = vmatmul.mubr.msk.bf16.gmra.mrb[8].mxu0 %vm386_vm0, %v12241_v42  ;;  %v612_v42 = vsel %vm541_vm4, %v609_v38, %v611_v50 }
 0x31d   : > { %10078 = vmatprep.mubr.msk.bf16.mxu0 %vm386_vm0, %v12246_v47  ;;  %686 = vst.msk [vmem:[#allocation3 + $0x110] sm:$0xff] %vm386_vm0, %v612_v42  ;;  %v614_v47 = vsel %vm541_vm4, %v611_v50, %v613_v15  ;;  %v14676_v15 = vrot.slane %v14675_v12, 4 }
 0x31e   : > { %687 = vst.msk [vmem:[#allocation3 + $0x118] sm:$0xff] %vm386_vm0, %v614_v47  ;;  %v3606_v47 = vld [vmem:[#allocation2 + $0xb0] sm:$0xff] }
 0x324   : > { %10079 = vmatmul.mubr.msk.bf16.gmra.mrb[12].mxu0 %vm386_vm0, %v12259_v4  ;;  %v2841_v4 = vrot.slane %v12373_v51, 4 }
 0x325   : > { %10082 = vmatprep.mubr.msk.bf16.mxu0 %vm386_vm0, %v12273_v29 }
 0x32c   : > { %10083 = vmatmul.mubr.msk.bf16.gmra.mrb[16].mxu0 %vm386_vm0, %v12281_v1 }
 0x32d   : > { %10086 = vmatprep.mubr.msk.bf16.mxu0 %vm386_vm0, %v12286_v0  ;;  %v607_v0 = vrot.slane %v12480_v37, 2 }
 0x32f   : > { %v608_v20 = vsel %vm541_vm4, %v605_v31, %v607_v0  ;;  %v610_v28 = vsel %vm541_vm4, %v607_v0, %v609_v38  ;;  %v3603_v31 = vld [vmem:[#allocation2 + $0x98] sm:$0xff] }
 0x330   : > { %684 = vst.msk [vmem:[#allocation3 + $0x100] sm:$0xff] %vm386_vm0, %v608_v20  ;;  %685 = vst.msk [vmem:[#allocation3 + $0x108] sm:$0xff] %vm386_vm0, %v610_v28  ;;  %v3664_v36 = vrot.slane %v3603_v31, 4  ;;  %v3604_v20 = vld [vmem:[#allocation2 + $0xa0] sm:$0xff]  ;;  %v3605_v28 = vld [vmem:[#allocation2 + $0xa8] sm:$0xff] }
 0x334   : > { %10087 = vmatmul.mubr.msk.bf16.gmra.mrb[20].mxu0 %vm386_vm0, %v12293_v22  ;;  %v12513_v22 = vrot.slane %v12369_v52, 4 }
 0x335   : > { %10090 = vmatprep.mubr.msk.bf16.mxu0 %vm386_vm0, %v12298_v40  ;;  %v2845_v40 = vrot.slane %v12381_v54, 4 }
 0x336   : > { %v2840_v29 = vsel %vm773_vm3, %v12316_v32, %v12513_v22  ;;  %v12522_v1 = vsel %vm773_vm3, %v12513_v22, %v2841_v4 }
 0x337   : > { %v12543_v30 = vsel %vm773_vm3, %v2845_v40, %v2847_v48 }
 0x33c   : > { %10091 = vmatmul.mubr.msk.bf16.gmra.mrb[24].mxu0 %vm386_vm0, %v14671_v34  ;;  %v3666_v34 = vrot.slane %v3604_v20, 4  ;;  %v3696_v20 = vrot.slane %v12494_v43, 4  ;;  %v4059_v43 = vld [vmem:[#allocation3 + $0x70] sm:$0xff] }
 0x33d   : > { %10094 = vmatprep.mubr.msk.bf16.mxu0 %vm386_vm0, %v14672_v24  ;;  %v3668_v24 = vrot.slane %v3605_v28, 4 }
 0x33e   : > { %v3667_v50 = vsel %vm773_vm3, %v3664_v36, %v3666_v34 }
 0x33f   : > { %v3669_v42 = vsel %vm773_vm3, %v3666_v34, %v3668_v24 }
 0x344   : > { %10095 = vmatmul.mubr.msk.bf16.gmra.mrb[28].mxu0 %vm386_vm0, %v12319_v23  ;;  %v2843_v23 = vrot.slane %v12377_v39, 4 }
 0x345   : > { %10098 = vmatprep.mubr.msk.bf16.mxu0 %vm386_vm0, %v12325_v7 }
 0x346   : > { %v12529_v7 = vsel %vm773_vm3, %v2841_v4, %v2843_v23  ;;  %v12534_v32 = vsel %vm773_vm3, %v2843_v23, %v2845_v40  ;;  %v3607_v4 = vld [vmem:[#allocation2 + $0xb8] sm:$0xff] }
 0x347   : > { %v3672_v23 = vrot.slane %v3607_v4, 4 }
 0x34c   : > { %10099 = vmatmul.mubr.msk.bf16.gmra.mrb[32].mxu0 %vm386_vm0, %v2840_v29  ;;  %v3670_v29 = vrot.slane %v3606_v47, 4 }
 0x34d   : > { %10102 = vmatprep.mubr.msk.bf16.mxu0 %vm386_vm0, %v12522_v1 }
 0x34e   : > { %v3671_v40 = vsel %vm773_vm3, %v3668_v24, %v3670_v29  ;;  %v3673_v48 = vsel %vm773_vm3, %v3670_v29, %v3672_v23  ;;  %v3620_v24 = vld [vmem:[#allocation2 + $0x120] sm:$0xf] }
 0x34f   : > { %v4060_v29 = vld [vmem:[#allocation3 + $0x78] sm:$0xff] }
 0x354   : > { %10103 = vmatmul.mubr.msk.bf16.gmra.mrb[36].mxu0 %vm386_vm0, %v12529_v7 }
 0x355   : > { %10106 = vmatprep.mubr.msk.bf16.mxu0 %vm386_vm0, %v12534_v32 }
 0x35c   : > { %10107 = vmatmul.mubr.msk.bf16.gmra.mrb[40].mxu0 %vm386_vm0, %v12543_v30 }
 0x35d   : > { %10110 = vmatprep.mubr.msk.bf16.mxu0 %vm386_vm0, %v12549_v33 }
 0x364   : > { %10111 = vmatmul.mubr.msk.bf16.gmra.mrb[44].mxu0 %vm386_vm0, %v2852_v18  ;;  %v3609_v18 = vld [vmem:[#allocation2 + $0xc8] sm:$0xff] }
 0x365   : > { %10118 = vmatprep.mubr.msk.bf16.mxu0 %vm386_vm0, %v12124_v60  ;;  %v14673_v60 = vld [vmem:[#allocation20_spill] sm:$0xff] }
 0x36c   : > { %10119 = vmatmul.mubr.msk.bf16.vlgmr.msra.gmra.mrb[0].mxu0 %vm386_vm0, %v12128_v61  ;;  %v14674_v61 = vld [vmem:[#allocation21_spill] sm:$0xff] }
 0x36d   : > { %10167 = vmatpush3.bf16.msra.mxu0 %v11231_v9  ;;  %10122 = vmatprep.mubr.msk.bf16.mxu0 %vm386_vm0, %v12132_v63  ;;  %v12592_v63 = vld [vmem:[#allocation3 + $0xf0] sm:$0xff]  ;;  %v3602_v9 = vld [vmem:[#allocation2 + $0x90] sm:$0xff] }
 0x36e   : > { %10168 = vmatprep.subr.bf16.mxu0 %v11232_v44  ;;  %v3662_v2 = vrot.slane %v3602_v9, 4  ;;  %v3688_v9 = vrot.slane %v12252_v49, 4 }
 0x370   : > { %v3663_v0 = vsel %vm773_vm3, %v3660_v46, %v3662_v2  ;;  %v3665_v38 = vsel %vm773_vm3, %v3662_v2, %v3664_v36  ;;  %v12673_v46 = vld [vmem:[#allocation4 + $0x120] sm:$0xff]  ;;  %v3689_v31 = vsel %vm773_vm3, %v14676_v15, %v3688_v9  ;;  %v14677_v2 = vld [vmem:[#allocation23_spill] sm:$0xff]  ;;  %v3692_v36 = vrot.slane %v12480_v37, 4 }
 0x371   : > { %10169 = vmatpush3.bf16.msra.mxu0 %v11232_v44  ;;  %v4058_v37 = vld [vmem:[#allocation3 + $0x68] sm:$0xff] }
 0x372   : > { %10218 = vmatprep.subr.bf16.mxu0 %v11233_v45 }
 0x374   : > { %10123 = vmatmul.mubr.msk.bf16.gmra.mrb[4].mxu0 %vm386_vm0, %v12136_v3  ;;  %v12596_v3 = vld [vmem:[#allocation3 + $0xf8] sm:$0xff] }
 0x375   : > { %10126 = vmatprep.mubr.msk.bf16.mxu0 %vm386_vm0, %v12140_v5  ;;  %v12598_v5 = vld [vmem:[#allocation3 + $0x100] sm:$0xff]  ;;  %v4149_v58 = vrot.slane %v12596_v3, 4 }
 0x376   : > { %v4151_v44 = vrot.slane %v12598_v5, 4 }
 0x37c   : > { %10127 = vmatmul.mubr.msk.bf16.gmra.mrb[8].mxu0 %vm386_vm0, %v12144_v10  ;;  %v12604_v10 = vld [vmem:[#allocation3 + $0x108] sm:$0xff] }
 0x37d   : > { %10130 = vmatprep.mubr.msk.bf16.mxu0 %vm386_vm0, %v12148_v11  ;;  %v12606_v11 = vld [vmem:[#allocation3 + $0x110] sm:$0xff] }
 0x384   : > { %10131 = vmatmul.mubr.msk.bf16.gmra.mrb[12].mxu0 %vm386_vm0, %v12152_v13  ;;  %v3596_v13 = vld [vmem:[#allocation2 + $0x60] sm:$0xf0] }
 0x385   : > { %10134 = vmatprep.mubr.msk.bf16.mxu0 %vm386_vm0, %v12156_v14  ;;  %v3597_v14 = vld [vmem:[#allocation2 + $0x68] sm:$0xff] }
 0x38c   : > { %10135 = vmatmul.mubr.msk.bf16.gmra.mrb[16].mxu0 %vm386_vm0, %v12160_v16  ;;  %v3651_v16 = vrot.slane %v3596_v13, 4 }
 0x38d   : > { %10138 = vmatprep.mubr.msk.bf16.mxu0 %vm386_vm0, %v14673_v60  ;;  %v12643_v60 = vsel %vm773_vm3, %v4149_v58, %v4151_v44 }
 0x394   : > { %10139 = vmatmul.mubr.msk.bf16.gmra.mrb[20].mxu0 %vm386_vm0, %v14674_v61  ;;  %v3676_v61 = vrot.slane %v3609_v18, 4  ;;  %v4061_v18 = vld [vmem:[#allocation3 + $0x80] sm:$0xff] }
 0x395   : > { %10142 = vmatprep.mubr.msk.bf16.mxu0 %vm386_vm0, %v12369_v52  ;;  %v3652_v52 = vrot.slane %v3597_v14, 4 }
 0x39c   : > { %10143 = vmatmul.mubr.msk.bf16.gmra.mrb[24].mxu0 %vm386_vm0, %v12373_v51  ;;  %v12612_v51 = vld [vmem:[#allocation3 + $0x118] sm:$0xff] }
 0x39d   : > { %10146 = vmatprep.mubr.msk.bf16.mxu0 %vm386_vm0, %v12377_v39  ;;  %v3653_v39 = vsel %vm773_vm3, %v3651_v16, %v3652_v52  ;;  %v3610_v16 = vld [vmem:[#allocation2 + $0xd0] sm:$0xff] }
 0x3a4   : > { %10147 = vmatmul.mubr.msk.bf16.gmra.mrb[28].mxu0 %vm386_vm0, %v12381_v54  ;;  %v3598_v54 = vld [vmem:[#allocation2 + $0x70] sm:$0xff] }
 0x3a5   : > { %10150 = vmatprep.mubr.msk.bf16.mxu0 %vm386_vm0, %v12385_v57  ;;  %v3599_v57 = vld [vmem:[#allocation2 + $0x78] sm:$0xff] }
 0x3a6   : > { %v3656_v62 = vrot.slane %v3599_v57, 4  ;;  %v3678_v57 = vrot.slane %v3610_v16, 4  ;;  %v4063_v16 = vld [vmem:[#allocation3 + $0x90] sm:$0xff] }
 0x3a8   : > { %v3659_v6 = vsel %vm773_vm3, %v3656_v62, %v3658_v56 }
 0x3ac   : > { %10151 = vmatmul.mubr.msk.bf16.gmra.mrb[32].mxu0 %vm386_vm0, %v12389_v19  ;;  %v3654_v19 = vrot.slane %v3598_v54, 4 }
 0x3ad   : > { %10154 = vmatprep.mubr.msk.bf16.mxu0 %vm386_vm0, %v12592_v63 }
 0x3ae   : > { %v3655_v27 = vsel %vm773_vm3, %v3652_v52, %v3654_v19  ;;  %v3657_v35 = vsel %vm773_vm3, %v3654_v19, %v3656_v62  ;;  %v4153_v52 = vrot.slane %v12604_v10, 4 }
 0x3b0   : > { %v12652_v54 = vsel %vm773_vm3, %v4151_v44, %v4153_v52  ;;  %v4062_v44 = vld [vmem:[#allocation3 + $0x88] sm:$0xff] }
 0x3b4   : > { %10155 = vmatmul.mubr.msk.bf16.gmra.mrb[36].mxu0 %vm386_vm0, %v12596_v3 }
 0x3b5   : > { %10158 = vmatprep.mubr.msk.bf16.mxu0 %vm386_vm0, %v12598_v5  ;;  %v4155_v5 = vrot.slane %v12606_v11, 4 }
 0x3b7   : > { %v12655_v19 = vsel %vm773_vm3, %v4153_v52, %v4155_v5  ;;  %v4064_v52 = vld [vmem:[#allocation3 + $0x98] sm:$0xff] }
 0x3bc   : > { %10159 = vmatmul.mubr.msk.bf16.gmra.mrb[40].mxu0 %vm386_vm0, %v12604_v10  ;;  %v3612_v10 = vld [vmem:[#allocation2 + $0xe0] sm:$0xff] }
 0x3bd   : > { %10162 = vmatprep.mubr.msk.bf16.mxu0 %vm386_vm0, %v12606_v11  ;;  %v3682_v53 = vrot.slane %v3612_v10, 4 }
 0x3bf   : > { %v3685_v56 = vsel %vm773_vm3, %v3682_v53, %v12254_v17  ;;  %v3690_v17 = vrot.slane %v12471_v25, 4  ;;  %v3698_v25 = vrot.slane %v3620_v24, 4 }
 0x3c1   : > { %v3691_v49 = vsel %vm773_vm3, %v3688_v9, %v3690_v17  ;;  %v3699_v47 = vsel %vm773_vm3, %v3696_v20, %v3698_v25  ;;  %v4068_v9 = vld [vmem:[#allocation3 + $0xb8] sm:$0xff] }
 0x3c2   : > { %v4133_v15 = vrot.slane %v4068_v9, 4 }
 0x3c4   : > { %10163 = vmatmul.mubr.msk.bf16.gmra.mrb[44].mxu0 %vm386_vm0, %v12612_v51 }
 0x3c5   : > { %10170 = vmatprep.mubr.msk.bf16.mxu0 %vm386_vm0, %v3653_v39  ;;  %v3611_v39 = vld [vmem:[#allocation2 + $0xd8] sm:$0xff] }
 0x3c6   : > { %v3680_v62 = vrot.slane %v3611_v39, 4  ;;  %v4123_v39 = vrot.slane %v4063_v16, 4 }
 0x3c8   : > { %v3683_v55 = vsel %vm773_vm3, %v3680_v62, %v3682_v53 }
 0x3cc   : > { %10171 = vmatmul.mubr.msk.bf16.vlgmr.msra.gmra.mrb[0].mxu0 %vm386_vm0, %v3655_v27  ;;  %v3681_v27 = vsel %vm773_vm3, %v3678_v57, %v3680_v62 }
 0x3cd   : > { %10219 = vmatpush3.bf16.msra.mxu0 %v11233_v45  ;;  %10174 = vmatprep.mubr.msk.bf16.mxu0 %vm386_vm0, %v3657_v35  ;;  %v3674_v45 = vrot.slane %v3608_v21, 4  ;;  %v4157_v35 = vrot.slane %v12612_v51, 4  ;;  %v5048_v51 = vld [vmem:[#allocation4 + $0x18] sm:$0xff] }
 0x3ce   : > { %10220 = vmatprep.subr.bf16.mxu0 %v11234_v26 }
 0x3cf   : > { %v3675_v13 = vsel %vm773_vm3, %v3672_v23, %v3674_v45  ;;  %v3677_v14 = vsel %vm773_vm3, %v3674_v45, %v3676_v61  ;;  %v12665_v11 = vsel %vm773_vm3, %v4155_v5, %v4157_v35  ;;  %v4115_v23 = vrot.slane %v4059_v43, 4 }
 0x3d0   : > { %v4119_v45 = vrot.slane %v4061_v18, 4  ;;  %v4125_v5 = vrot.slane %v4064_v52, 4  ;;  %v12780_v18 = vld [vmem:[#allocation12 + $0x20] sm:$0xff]  }
 0x3d1   : > { %10221 = vmatpush3.bf16.msra.mxu0 %v11234_v26  ;;  %v3679_v26 = vsel %vm773_vm3, %v3676_v61, %v3678_v57  ;;  %v4121_v61 = vrot.slane %v4062_v44, 4 }
 0x3d2   : > { %v4126_v62 = vsel %vm773_vm3, %v4123_v39, %v4125_v5 }
 0x3d3   : > { %v4124_v57 = vsel %vm773_vm3, %v4121_v61, %v4123_v39 }
 0x3d4   : > { %10175 = vmatmul.mubr.msk.bf16.gmra.mrb[4].mxu0 %vm386_vm0, %v3659_v6  ;;  %v11235_v6 = vld [vmem:[#allocation12 + $0x10] sm:$0xff]  }
 0x3d5   : > { %10178 = vmatprep.mubr.msk.bf16.mxu0 %vm386_vm0, %v3661_v8  ;;  %v14613_v8 = vrot.slane %v12673_v46, 2  ;;  %10270 = vmatprep.subr.bf16.mxu1 %v11235_v6 }
 0x3d6   : > { %10271 = vmatpush3.bf16.msra.mxu1 %v11235_v6  ;;  %v4067_v6 = vld [vmem:[#allocation3 + $0xb0] sm:$0xff] }
 0x3d7   : > { %5016 = vst.msk [vmem:[#allocation5 + $0x120] sm:$0x3f] %vm688_vm5, %v14613_v8  ;;  %v4131_v12 = vrot.slane %v4067_v6, 4 }
 0x3dc   : > { %10179 = vmatmul.mubr.msk.bf16.gmra.mrb[8].mxu0 %vm386_vm0, %v3663_v0  ;;  %v3693_v0 = vsel %vm773_vm3, %v3690_v17, %v3692_v36  ;;  %v4136_v17 = vsel %vm773_vm3, %v4133_v15, %v12513_v22 }
 0x3dd   : > { %10182 = vmatprep.mubr.msk.bf16.mxu0 %vm386_vm0, %v3665_v38  ;;  %v3694_v38 = vrot.slane %v12485_v41, 4 }
 0x3df   : > { %v3695_v28 = vsel %vm773_vm3, %v3692_v36, %v3694_v38  ;;  %v3697_v34 = vsel %vm773_vm3, %v3694_v38, %v3696_v20  ;;  %v4147_v36 = vrot.slane %v12592_v63, 4  ;;  %v5046_v63 = vld [vmem:[#allocation4 + $0x8] sm:$0xff] }
 0x3e0   : > { %v4871_v43 = vrot.slane %v5046_v63, 2 }
 0x3e1   : > { %v4150_v22 = vsel %vm773_vm3, %v4147_v36, %v4149_v58  ;;  %v5101_v58 = vrot.slane %v5046_v63, 4 }
 0x3e4   : > { %10183 = vmatmul.mubr.msk.bf16.gmra.mrb[12].mxu0 %vm386_vm0, %v3667_v50  ;;  %v4057_v50 = vld [vmem:[#allocation3 + $0x60] sm:$0xf0] }
 0x3e5   : > { %10186 = vmatprep.mubr.msk.bf16.mxu0 %vm386_vm0, %v3669_v42  ;;  %v4113_v42 = vrot.slane %v4058_v37, 4  ;;  %v4112_v4 = vrot.slane %v4057_v50, 4 }
 0x3e7   : > { %v4114_v41 = vsel %vm773_vm3, %v4112_v4, %v4113_v42  ;;  %v4796_v4 = vld [vmem:[#allocation4] sm:$0xfc] }
 0x3ec   : > { %10187 = vmatmul.mubr.msk.bf16.gmra.mrb[16].mxu0 %vm386_vm0, %v3671_v40  ;;  %v4117_v40 = vrot.slane %v4060_v29, 4 }
 0x3ed   : > { %10190 = vmatprep.mubr.msk.bf16.mxu0 %vm386_vm0, %v3673_v48  ;;  %v4116_v48 = vsel %vm773_vm3, %v4113_v42, %v4115_v23 }
 0x3ee   : > { %v4118_v21 = vsel %vm773_vm3, %v4115_v23, %v4117_v40 }
 0x3f4   : > { %10191 = vmatmul.mubr.msk.bf16.gmra.mrb[20].mxu0 %vm386_vm0, %v3675_v13  ;;  %v4120_v13 = vsel %vm773_vm3, %v4117_v40, %v4119_v45 }
 0x3f5   : > { %10194 = vmatprep.mubr.msk.bf16.mxu0 %vm386_vm0, %v3677_v14  ;;  %v4122_v14 = vsel %vm773_vm3, %v4119_v45, %v4121_v61  ;;  %v12786_v45 = vld [vmem:[#allocation11] ss:$0 sm:$0xff] }
 0x3fc   : > { %10195 = vmatmul.mubr.msk.bf16.gmra.mrb[24].mxu0 %vm386_vm0, %v3679_v26  ;;  %v4065_v26 = vld [vmem:[#allocation3 + $0xa0] sm:$0xff] }
 0x3fd   : > { %10198 = vmatprep.mubr.msk.bf16.mxu0 %vm386_vm0, %v3681_v27  ;;  %v4066_v27 = vld [vmem:[#allocation3 + $0xa8] sm:$0xff]  ;;  %v4127_v10 = vrot.slane %v4065_v26, 4 }
 0x3fe   : > { %v4129_v53 = vrot.slane %v4066_v27, 4 }
 0x404   : > { %10199 = vmatmul.mubr.msk.bf16.gmra.mrb[28].mxu0 %vm386_vm0, %v3683_v55  ;;  %v4128_v55 = vsel %vm773_vm3, %v4125_v5, %v4127_v10 }
 0x405   : > { %10202 = vmatprep.mubr.msk.bf16.mxu0 %vm386_vm0, %v3685_v56  ;;  %v4130_v56 = vsel %vm773_vm3, %v4127_v10, %v4129_v53 }
 0x40c   : > { %10203 = vmatmul.mubr.msk.bf16.gmra.mrb[32].mxu0 %vm386_vm0, %v14677_v2  ;;  %v4134_v2 = vsel %vm773_vm3, %v4131_v12, %v4133_v15 }
 0x40d   : > { %10206 = vmatprep.mubr.msk.bf16.mxu0 %vm386_vm0, %v3689_v31  ;;  %v4132_v31 = vsel %vm773_vm3, %v4129_v53, %v4131_v12 }
 0x414   : > { %10207 = vmatmul.mubr.msk.bf16.gmra.mrb[36].mxu0 %vm386_vm0, %v3691_v49  ;;  %v5049_v49 = vld [vmem:[#allocation4 + $0x20] sm:$0xff] }
 0x415   : > { %10210 = vmatprep.mubr.msk.bf16.mxu0 %vm386_vm0, %v3693_v0  ;;  %v5107_v0 = vrot.slane %v5049_v49, 4  ;;  %v4877_v25 = vrot.slane %v5049_v49, 2 }
 0x41c   : > { %10211 = vmatmul.mubr.msk.bf16.gmra.mrb[40].mxu0 %vm386_vm0, %v3695_v28  ;;  %v11237_v28 = vld [vmem:[#allocation12] sm:$0xff]  }
 0x41d   : > { %10214 = vmatprep.mubr.msk.bf16.mxu0 %vm386_vm0, %v3697_v34  ;;  %v12763_v34 = vld [vmem:[#allocation4 + $0x28] sm:$0xff] }
 0x41e   : > { %v5109_v24 = vrot.slane %v12763_v34, 4  ;;  %v4879_v37 = vrot.slane %v12763_v34, 2 }
 0x420   : > { %v5110_v50 = vsel %vm773_vm3, %v5107_v0, %v5109_v24  ;;  %v4880_v42 = vsel %vm541_vm4, %v4877_v25, %v4879_v37 }
 0x421   : > { %4984 = vst.msk [vmem:[#allocation5 + $0x20] sm:$0xff] %vm386_vm0, %v4880_v42 }
 0x424   : > { %10215 = vmatmul.mubr.msk.bf16.gmra.mrb[44].mxu0 %vm386_vm0, %v3699_v47  ;;  %v11238_v47 = vld [vmem:[#allocation12 + $0x8] sm:$0xff]  }
 0x425   : > { %10222 = vmatprep.mubr.msk.bf16.mxu0 %vm386_vm0, %v4114_v41  ;;  %v4870_v41 = vrot.slane %v4796_v4, 2 }
 0x427   : > { %v4872_v23 = vsel %vm541_vm4, %v4870_v41, %v4871_v43 }
 0x428   : > { %4980 = vst.msk [vmem:[#allocation5] sm:$0xff] %vm386_vm0, %v4872_v23 }
 0x42c   : > { %10223 = vmatmul.mubr.msk.bf16.vlgmr.msra.gmra.mrb[0].mxu0 %vm386_vm0, %v4116_v48  ;;  %v4875_v48 = vrot.slane %v5048_v51, 2 }
 0x42d   : > { %10226 = vmatprep.mubr.msk.bf16.mxu0 %vm386_vm0, %v4118_v21 }
 0x42e   : > { %v4878_v44 = vsel %vm541_vm4, %v4875_v48, %v4877_v25 }
 0x42f   : > { %4983 = vst.msk [vmem:[#allocation5 + $0x18] sm:$0xff] %vm386_vm0, %v4878_v44 }
 0x434   : > { %10227 = vmatmul.mubr.msk.bf16.gmra.mrb[4].mxu0 %vm386_vm0, %v4120_v13 }
 0x435   : > { %10230 = vmatprep.mubr.msk.bf16.mxu0 %vm386_vm0, %v4122_v14 }
 0x43c   : > { %10231 = vmatmul.mubr.msk.bf16.gmra.mrb[8].mxu0 %vm386_vm0, %v4124_v57 }
 0x43d   : > { %10234 = vmatprep.mubr.msk.bf16.mxu0 %vm386_vm0, %v4126_v62 }
 0x444   : > { %10235 = vmatmul.mubr.msk.bf16.gmra.mrb[12].mxu0 %vm386_vm0, %v4128_v55 }
 0x445   : > { %10238 = vmatprep.mubr.msk.bf16.mxu0 %vm386_vm0, %v4130_v56 }
 0x44c   : > { %10239 = vmatmul.mubr.msk.bf16.gmra.mrb[16].mxu0 %vm386_vm0, %v4132_v31 }
 0x44d   : > { %10242 = vmatprep.mubr.msk.bf16.mxu0 %vm386_vm0, %v4134_v2 }
 0x454   : > { %10243 = vmatmul.mubr.msk.bf16.gmra.mrb[20].mxu0 %vm386_vm0, %v4136_v17 }
 0x455   : > { %10246 = vmatprep.mubr.msk.bf16.mxu0 %vm386_vm0, %v12522_v1  ;;  %v4148_v1 = vsel %vm773_vm3, %v12540_v59, %v4147_v36 }
 0x45c   : > { %10247 = vmatmul.mubr.msk.bf16.gmra.mrb[24].mxu0 %vm386_vm0, %v12529_v7  ;;  %v4081_v7 = vld [vmem:[#allocation3 + $0x120] sm:$0xf] }
 0x45d   : > { %10250 = vmatprep.mubr.msk.bf16.mxu0 %vm386_vm0, %v12534_v32  ;;  %v4159_v32 = vrot.slane %v4081_v7, 4 }
 0x45f   : > { %v4160_v59 = vsel %vm773_vm3, %v4157_v35, %v4159_v32  ;;  %v5105_v35 = vrot.slane %v5048_v51, 4 }
 0x461   : > { %v5108_v20 = vsel %vm773_vm3, %v5105_v35, %v5107_v0 }
 0x464   : > { %10251 = vmatmul.mubr.msk.bf16.gmra.mrb[28].mxu0 %vm386_vm0, %v12543_v30  ;;  %v11236_v30 = vld [vmem:[#allocation12 + $0x18] sm:$0xff]  }
 0x465   : > { %10254 = vmatprep.mubr.msk.bf16.mxu0 %vm386_vm0, %v12549_v33  ;;  %v5045_v33 = vld [vmem:[#allocation4] sm:$0xf0]  ;;  %10272 = vmatprep.subr.bf16.mxu1 %v11236_v30 }
 0x466   : > { %v5100_v3 = vrot.slane %v5045_v33, 4  ;;  %10273 = vmatpush3.bf16.msra.mxu1 %v11236_v30 }
 0x467   : > { %10322 = vmatprep.subr.bf16.mxu1 %v11237_v28 }
 0x46c   : > { %10255 = vmatmul.mubr.msk.bf16.gmra.mrb[32].mxu0 %vm386_vm0, %v4148_v1 }
 0x46d   : > { %10258 = vmatprep.mubr.msk.bf16.mxu0 %vm386_vm0, %v4150_v22 }
 0x474   : > { %10259 = vmatmul.mubr.msk.bf16.gmra.mrb[36].mxu0 %vm386_vm0, %v12643_v60  ;;  %v5047_v60 = vld [vmem:[#allocation4 + $0x10] sm:$0xff] }
 0x475   : > { %10262 = vmatprep.mubr.msk.bf16.mxu0 %vm386_vm0, %v12652_v54  ;;  %v5103_v54 = vrot.slane %v5047_v60, 4  ;;  %v4873_v29 = vrot.slane %v5047_v60, 2 }
 0x477   : > { %v5106_v38 = vsel %vm773_vm3, %v5103_v54, %v5105_v35  ;;  %v4874_v40 = vsel %vm541_vm4, %v4871_v43, %v4873_v29  ;;  %v4876_v21 = vsel %vm541_vm4, %v4873_v29, %v4875_v48 }
 0x478   : > { %4981 = vst.msk [vmem:[#allocation5 + $0x8] sm:$0xff] %vm386_vm0, %v4874_v40  ;;  %4982 = vst.msk [vmem:[#allocation5 + $0x10] sm:$0xff] %vm386_vm0, %v4876_v21 }
 0x47c   : > { %10263 = vmatmul.mubr.msk.bf16.gmra.mrb[40].mxu0 %vm386_vm0, %v12655_v19  ;;  %v5102_v19 = vsel %vm773_vm3, %v5100_v3, %v5101_v58 }
 0x47d   : > { %10266 = vmatprep.mubr.msk.bf16.mxu0 %vm386_vm0, %v12665_v11  ;;  %10274 = vmatprep.mubr.msk.bf16.mxu1 %vm386_vm0, %v5102_v19  ;;  %v5104_v11 = vsel %vm773_vm3, %v5101_v58, %v5103_v54 }
 0x47e   : > { %10275 = vmatmul.mubr.msk.bf16.vlgmr.msra.gmra.mrb[0].mxu1 %vm386_vm0, %v5104_v11 }
 0x47f   : > { %10278 = vmatprep.mubr.msk.bf16.mxu1 %vm386_vm0, %v5106_v38  ;;  %10323 = vmatpush3.bf16.msra.mxu1 %v11237_v28 }
 0x480   : > { %10324 = vmatprep.subr.bf16.mxu1 %v11238_v47 }
 0x483   : > { %10325 = vmatpush3.bf16.msra.mxu1 %v11238_v47 }
 0x484   : > { %10267 = vmatmul.mubr.msk.bf16.gmra.mrb[44].mxu0 %vm386_vm0, %v4160_v59  ;;  %10374 = vmatprep.subr.bf16.mxu1 %v12780_v18  ;;  %v14678_v59 = vmov 0  }
 0x486   : > { %10279 = vmatmul.mubr.msk.bf16.gmra.mrb[4].mxu1 %vm386_vm0, %v5108_v20 }
 0x487   : > { %10282 = vmatprep.mubr.msk.bf16.mxu1 %vm386_vm0, %v5110_v50 }
 0x4ff   : > { %v10224_v61 = vpop.f32.mrb[0].mxu0 }
 0x500   : > { %v4527_v13 = vadd.f32 %v10224_v61, %v12786_v45  ;;  %v4279_v14 = vpop.f32.mrb[1].mxu0 }
 0x501   : > { %v4525_v16 = vadd.f32 %v12786_v45, %v4279_v14  ;;  %v10225_v52 = vpop.f32.mrb[2].mxu0 }
 0x502   : > { %v4528_v39 = vadd.f32 %v10225_v52, %v12786_v45  ;;  %v4282_v5 = vpop.f32.mrb[3].mxu0  ;;  %v4575_v62 = vmax.f32 %v4527_v13, 0.0 }
 0x503   : > { %v4526_v57 = vadd.f32 %v12786_v45, %v4282_v5  ;;  %v4573_v27 = vmax.f32 %v4525_v16, 0.0 }
 0x504   : > { %v4576_v26 = vmax.f32 %v4528_v39, 0.0 }
 0x505   : > { %v4574_v10 = vmax.f32 %v4526_v57, 0.0 }
 0x506   : > { %v4636_v53 = vpack.c.bf16 %v4576_v26, %v4575_v62 }
 0x507   : > { %v4635_v55 = vpack.c.bf16 %v4574_v10, %v4573_v27  ;;  %v10228_v56 = vpop.f32.mrb[4].mxu0 }
 0x508   : > { %v4684_v6 = vrot.slane %v4636_v53, 4  ;;  %v4531_v9 = vadd.f32 %v10228_v56, %v12786_v45  ;;  %v4295_v12 = vpop.f32.mrb[5].mxu0 }
 0x509   : > { %v4683_v15 = vrot.slane %v4635_v55, 4  ;;  %v4529_v31 = vadd.f32 %v12786_v45, %v4295_v12  ;;  %v10229_v2 = vpop.f32.mrb[6].mxu0 }
 0x50a   : > { %v4532_v17 = vadd.f32 %v10229_v2, %v12786_v45  ;;  %v4298_v36 = vpop.f32.mrb[7].mxu0  ;;  %v4579_v7 = vmax.f32 %v4531_v9, 0.0 }
 0x50b   : > { %v4685_v22 = vsel %vm773_vm3, %v4683_v15, %v4684_v6  ;;  %4755 = vst.msk [vmem:[#allocation4 + $0x30] sm:$0xf0] %vm395_vm2, %v4683_v15  ;;  %v4530_v1 = vadd.f32 %v12786_v45, %v4298_v36  ;;  %v4577_v30 = vmax.f32 %v4529_v31, 0.0 }
 0x50c   : > { %4756 = vst.msk [vmem:[#allocation4 + $0x38] sm:$0xff] %vm386_vm0, %v4685_v22  ;;  %v4580_v32 = vmax.f32 %v4532_v17, 0.0 }
 0x50d   : > { %4780 = vst.msk [vmem:[#allocation4 + $0x38] sm:$0xf0] %vm395_vm2, %v14678_v59  ;;  %v4578_v33 = vmax.f32 %v4530_v1, 0.0 }
 0x50e   : > { %v4638_v63 = vpack.c.bf16 %v4580_v32, %v4579_v7 }
 0x50f   : > { %v4637_v3 = vpack.c.bf16 %v4578_v33, %v4577_v30  ;;  %v10232_v58 = vpop.f32.mrb[8].mxu0 }
 0x510   : > { %v4688_v60 = vrot.slane %v4638_v63, 4  ;;  %v4535_v54 = vadd.f32 %v10232_v58, %v12786_v45  ;;  %v4311_v19 = vpop.f32.mrb[9].mxu0 }
 0x511   : > { %v4686_v11 = vrot.slane %v4637_v3, 4  ;;  %v10233_v51 = vpop.f32.mrb[10].mxu0  ;;  %v4533_v49 = vadd.f32 %v12786_v45, %v4311_v19 }
 0x512   : > { %v4802_v35 = vld [vmem:[#allocation4 + $0x30] sm:$0xff]  ;;  %v4536_v0 = vadd.f32 %v10233_v51, %v12786_v45  ;;  %v4314_v38 = vpop.f32.mrb[11].mxu0  ;;  %v4583_v42 = vmax.f32 %v4535_v54, 0.0 }
 0x513   : > { %v4881_v20 = vrot.slane %v4802_v35, 2  ;;  %v4687_v28 = vsel %vm773_vm3, %v4684_v6, %v4686_v11  ;;  %v4689_v25 = vsel %vm773_vm3, %v4686_v11, %v4688_v60  ;;  %v4534_v4 = vadd.f32 %v12786_v45, %v4314_v38 }
 0x514   : > { %v4803_v50 = vld [vmem:[#allocation4 + $0x38] sm:$0xff]  ;;  %4757 = vst.msk [vmem:[#allocation4 + $0x40] sm:$0xff] %vm386_vm0, %v4687_v28  ;;  %4758 = vst.msk [vmem:[#allocation4 + $0x48] sm:$0xff] %vm386_vm0, %v4689_v25  ;;  %v4584_v47 = vmax.f32 %v4536_v0, 0.0  ;;  %v5111_v41 = vrot.slane %v4802_v35, 4  ;;  %v4581_v40 = vmax.f32 %v4533_v49, 0.0 }
 0x515   : > { %4781 = vst.msk [vmem:[#allocation4 + $0x48] sm:$0xf] %vm393_vm1, %v14678_v59  ;;  %v5113_v43 = vrot.slane %v4803_v50, 4  ;;  %v4882_v29 = vsel %vm541_vm4, %v4879_v37, %v4881_v20  ;;  %v4883_v23 = vrot.slane %v4803_v50, 2  ;;  %v4582_v21 = vmax.f32 %v4534_v4, 0.0 }
 0x516   : > { %v4640_v48 = vpack.c.bf16 %v4584_v47, %v4583_v42  ;;  %v5112_v44 = vsel %vm773_vm3, %v5109_v24, %v5111_v41  ;;  %4985 = vst.msk [vmem:[#allocation5 + $0x28] sm:$0xff] %vm386_vm0, %v4882_v29 }
 0x517   : > { %10283 = vmatmul.mubr.msk.bf16.gmra.mrb[8].mxu1 %vm386_vm0, %v5112_v44  ;;  %v10236_v61 = vpop.f32.mrb[12].mxu0  ;;  %v5114_v13 = vsel %vm773_vm3, %v5111_v41, %v5113_v43  ;;  %v4884_v14 = vsel %vm541_vm4, %v4881_v20, %v4883_v23  ;;  %v4639_v52 = vpack.c.bf16 %v4582_v21, %v4581_v40 }
 0x518   : > { %v4692_v16 = vrot.slane %v4640_v48, 4  ;;  %v4539_v37 = vadd.f32 %v10236_v61, %v12786_v45  ;;  %v4327_v39 = vpop.f32.mrb[13].mxu0  ;;  %10286 = vmatprep.mubr.msk.bf16.mxu1 %vm386_vm0, %v5114_v13  ;;  %4986 = vst.msk [vmem:[#allocation5 + $0x30] sm:$0xff] %vm386_vm0, %v4884_v14 }
 0x519   : > { %v4537_v34 = vadd.f32 %v12786_v45, %v4327_v39  ;;  %v10237_v24 = vpop.f32.mrb[14].mxu0  ;;  %v4690_v5 = vrot.slane %v4639_v52, 4 }
 0x51a   : > { %v4540_v57 = vadd.f32 %v10237_v24, %v12786_v45  ;;  %v4330_v62 = vpop.f32.mrb[15].mxu0  ;;  %v4587_v27 = vmax.f32 %v4539_v37, 0.0 }
 0x51b   : > { %v4804_v26 = vld [vmem:[#allocation4 + $0x40] sm:$0xff]  ;;  %v4585_v10 = vmax.f32 %v4537_v34, 0.0  ;;  %v4538_v53 = vadd.f32 %v12786_v45, %v4330_v62  ;;  %v4691_v56 = vsel %vm773_vm3, %v4688_v60, %v4690_v5  ;;  %v4693_v6 = vsel %vm773_vm3, %v4690_v5, %v4692_v16 }
 0x51c   : > { %v4805_v55 = vld [vmem:[#allocation4 + $0x48] sm:$0xff]  ;;  %v4588_v9 = vmax.f32 %v4540_v57, 0.0  ;;  %v5115_v12 = vrot.slane %v4804_v26, 4  ;;  %4759 = vst.msk [vmem:[#allocation4 + $0x50] sm:$0xff] %vm386_vm0, %v4691_v56  ;;  %4760 = vst.msk [vmem:[#allocation4 + $0x58] sm:$0xff] %vm386_vm0, %v4693_v6  ;;  %v4885_v2 = vrot.slane %v4804_v26, 2 }
 0x51d   : > { %v4586_v15 = vmax.f32 %v4538_v53, 0.0  ;;  %v5117_v31 = vrot.slane %v4805_v55, 4  ;;  %v4887_v17 = vrot.slane %v4805_v55, 2  ;;  %4782 = vst.msk [vmem:[#allocation4 + $0x50] sm:$0xf0] %vm395_vm2, %v14678_v59 }
 0x51e   : > { %v4642_v36 = vpack.c.bf16 %v4588_v9, %v4587_v27  ;;  %v5116_v22 = vsel %vm773_vm3, %v5113_v43, %v5115_v12  ;;  %v4886_v30 = vsel %vm541_vm4, %v4883_v23, %v4885_v2 }
 0x51f   : > { %v4641_v1 = vpack.c.bf16 %v4586_v15, %v4585_v10  ;;  %v10240_v7 = vpop.f32.mrb[16].mxu0  ;;  %10287 = vmatmul.mubr.msk.bf16.gmra.mrb[12].mxu1 %vm386_vm0, %v5116_v22  ;;  %v5118_v32 = vsel %vm773_vm3, %v5115_v12, %v5117_v31  ;;  %v4888_v33 = vsel %vm541_vm4, %v4885_v2, %v4887_v17  ;;  %4987 = vst.msk [vmem:[#allocation5 + $0x38] sm:$0xff] %vm386_vm0, %v4886_v30 }
 0x520   : > { %v4696_v63 = vrot.slane %v4642_v36, 4  ;;  %v4543_v3 = vadd.f32 %v10240_v7, %v12786_v45  ;;  %v4343_v58 = vpop.f32.mrb[17].mxu0  ;;  %10290 = vmatprep.mubr.msk.bf16.mxu1 %vm386_vm0, %v5118_v32  ;;  %4988 = vst.msk [vmem:[#allocation5 + $0x40] sm:$0xff] %vm386_vm0, %v4888_v33 }
 0x521   : > { %v4694_v60 = vrot.slane %v4641_v1, 4  ;;  %v4541_v54 = vadd.f32 %v12786_v45, %v4343_v58  ;;  %v10241_v19 = vpop.f32.mrb[18].mxu0 }
 0x522   : > { %v4544_v11 = vadd.f32 %v10241_v19, %v12786_v45  ;;  %v4346_v51 = vpop.f32.mrb[19].mxu0  ;;  %v4591_v20 = vmax.f32 %v4543_v3, 0.0 }
 0x523   : > { %v4695_v35 = vsel %vm773_vm3, %v4692_v16, %v4694_v60  ;;  %v4697_v49 = vsel %vm773_vm3, %v4694_v60, %v4696_v63  ;;  %v4542_v0 = vadd.f32 %v12786_v45, %v4346_v51  ;;  %v4807_v38 = vld [vmem:[#allocation4 + $0x58] sm:$0xff]  ;;  %v4589_v50 = vmax.f32 %v4541_v54, 0.0 }
 0x524   : > { %4761 = vst.msk [vmem:[#allocation4 + $0x60] sm:$0xff] %vm386_vm0, %v4695_v35  ;;  %4762 = vst.msk [vmem:[#allocation4 + $0x68] sm:$0xff] %vm386_vm0, %v4697_v49  ;;  %v4592_v28 = vmax.f32 %v4544_v11, 0.0  ;;  %v4806_v25 = vld [vmem:[#allocation4 + $0x50] sm:$0xff]  ;;  %v5121_v47 = vrot.slane %v4807_v38, 4  ;;  %v4891_v4 = vrot.slane %v4807_v38, 2 }
 0x525   : > { %4783 = vst.msk [vmem:[#allocation4 + $0x60] sm:$0xf] %vm393_vm1, %v14678_v59  ;;  %v4590_v42 = vmax.f32 %v4542_v0, 0.0  ;;  %v5119_v43 = vrot.slane %v4806_v25, 4  ;;  %v4889_v29 = vrot.slane %v4806_v25, 2 }
 0x526   : > { %4784 = vst.msk [vmem:[#allocation4 + $0x68] sm:$0xf0] %vm395_vm2, %v14678_v59  ;;  %v4644_v41 = vpack.c.bf16 %v4592_v28, %v4591_v20 }
 0x527   : > { %v4643_v23 = vpack.c.bf16 %v4590_v42, %v4589_v50  ;;  %v10244_v40 = vpop.f32.mrb[20].mxu0  ;;  %v5120_v61 = vsel %vm773_vm3, %v5117_v31, %v5119_v43  ;;  %v5122_v13 = vsel %vm773_vm3, %v5119_v43, %v5121_v47  ;;  %v4890_v37 = vsel %vm541_vm4, %v4887_v17, %v4889_v29 }
 0x528   : > { %v4700_v48 = vrot.slane %v4644_v41, 4  ;;  %v4547_v21 = vadd.f32 %v10244_v40, %v12786_v45  ;;  %v4359_v44 = vpop.f32.mrb[21].mxu0  ;;  %10291 = vmatmul.mubr.msk.bf16.gmra.mrb[16].mxu1 %vm386_vm0, %v5120_v61  ;;  %v4892_v39 = vsel %vm541_vm4, %v4889_v29, %v4891_v4  ;;  %4989 = vst.msk [vmem:[#allocation5 + $0x48] sm:$0xff] %vm386_vm0, %v4890_v37 }
 0x529   : > { %v4698_v14 = vrot.slane %v4643_v23, 4  ;;  %v4545_v16 = vadd.f32 %v12786_v45, %v4359_v44  ;;  %v10245_v52 = vpop.f32.mrb[22].mxu0  ;;  %10294 = vmatprep.mubr.msk.bf16.mxu1 %vm386_vm0, %v5122_v13  ;;  %4990 = vst.msk [vmem:[#allocation5 + $0x50] sm:$0xff] %vm386_vm0, %v4892_v39 }
 0x52a   : > { %v4548_v34 = vadd.f32 %v10245_v52, %v12786_v45  ;;  %v4362_v24 = vpop.f32.mrb[23].mxu0  ;;  %v4595_v10 = vmax.f32 %v4547_v21, 0.0 }
 0x52b   : > { %v4699_v5 = vsel %vm773_vm3, %v4696_v63, %v4698_v14  ;;  %v4701_v57 = vsel %vm773_vm3, %v4698_v14, %v4700_v48  ;;  %v4546_v62 = vadd.f32 %v12786_v45, %v4362_v24  ;;  %v4593_v53 = vmax.f32 %v4545_v16, 0.0 }
 0x52c   : > { %v4808_v26 = vld [vmem:[#allocation4 + $0x60] sm:$0xff]  ;;  %4763 = vst.msk [vmem:[#allocation4 + $0x70] sm:$0xff] %vm386_vm0, %v4699_v5  ;;  %4764 = vst.msk [vmem:[#allocation4 + $0x78] sm:$0xff] %vm386_vm0, %v4701_v57  ;;  %v4596_v55 = vmax.f32 %v4548_v34, 0.0 }
 0x52d   : > { %v4809_v27 = vld [vmem:[#allocation4 + $0x68] sm:$0xff]  ;;  %4785 = vst.msk [vmem:[#allocation4 + $0x78] sm:$0xf] %vm393_vm1, %v14678_v59  ;;  %v4594_v56 = vmax.f32 %v4546_v62, 0.0  ;;  %v5123_v6 = vrot.slane %v4808_v26, 4  ;;  %v4893_v12 = vrot.slane %v4808_v26, 2 }
 0x52e   : > { %v5125_v9 = vrot.slane %v4809_v27, 4  ;;  %v4646_v15 = vpack.c.bf16 %v4596_v55, %v4595_v10  ;;  %v4895_v31 = vrot.slane %v4809_v27, 2 }
 0x52f   : > { %v4645_v2 = vpack.c.bf16 %v4594_v56, %v4593_v53  ;;  %v10248_v17 = vpop.f32.mrb[24].mxu0  ;;  %v5124_v36 = vsel %vm773_vm3, %v5121_v47, %v5123_v6  ;;  %v4894_v1 = vsel %vm541_vm4, %v4891_v4, %v4893_v12 }
 0x530   : > { %v5126_v22 = vsel %vm773_vm3, %v5123_v6, %v5125_v9  ;;  %v4704_v7 = vrot.slane %v4646_v15, 4  ;;  %v4551_v32 = vadd.f32 %v10248_v17, %v12786_v45  ;;  %v4375_v30 = vpop.f32.mrb[25].mxu0  ;;  %4991 = vst.msk [vmem:[#allocation5 + $0x58] sm:$0xff] %vm386_vm0, %v4894_v1  ;;  %v4896_v33 = vsel %vm541_vm4, %v4893_v12, %v4895_v31  ;;  %10295 = vmatmul.mubr.msk.bf16.gmra.mrb[20].mxu1 %vm386_vm0, %v5124_v36 }
 0x531   : > { %v4702_v63 = vrot.slane %v4645_v2, 4  ;;  %v4549_v3 = vadd.f32 %v12786_v45, %v4375_v30  ;;  %v10249_v58 = vpop.f32.mrb[26].mxu0  ;;  %4992 = vst.msk [vmem:[#allocation5 + $0x60] sm:$0xff] %vm386_vm0, %v4896_v33  ;;  %10298 = vmatprep.mubr.msk.bf16.mxu1 %vm386_vm0, %v5126_v22 }
 0x532   : > { %v4552_v60 = vadd.f32 %v10249_v58, %v12786_v45  ;;  %v4378_v54 = vpop.f32.mrb[27].mxu0  ;;  %v4599_v0 = vmax.f32 %v4551_v32, 0.0 }
 0x533   : > { %v4810_v19 = vld [vmem:[#allocation4 + $0x70] sm:$0xff]  ;;  %v4703_v11 = vsel %vm773_vm3, %v4700_v48, %v4702_v63  ;;  %v4705_v51 = vsel %vm773_vm3, %v4702_v63, %v4704_v7  ;;  %v4550_v35 = vadd.f32 %v12786_v45, %v4378_v54  ;;  %v4597_v25 = vmax.f32 %v4549_v3, 0.0  ;;  %v12926_v3 = vld [vmem:[#allocation5 + $0x10] sm:$0xff] }
 0x534   : > { %v4811_v49 = vld [vmem:[#allocation4 + $0x78] sm:$0xff]  ;;  %4765 = vst.msk [vmem:[#allocation4 + $0x80] sm:$0xff] %vm386_vm0, %v4703_v11  ;;  %4766 = vst.msk [vmem:[#allocation4 + $0x88] sm:$0xff] %vm386_vm0, %v4705_v51  ;;  %v4600_v38 = vmax.f32 %v4552_v60, 0.0  ;;  %v5127_v20 = vrot.slane %v4810_v19, 4  ;;  %v4897_v28 = vrot.slane %v4810_v19, 2 }
 0x535   : > { %4786 = vst.msk [vmem:[#allocation4 + $0x80] sm:$0xf0] %vm395_vm2, %v14678_v59  ;;  %v4598_v50 = vmax.f32 %v4550_v35, 0.0  ;;  %v5129_v42 = vrot.slane %v4811_v49, 4  ;;  %v4899_v47 = vrot.slane %v4811_v49, 2  ;;  %v5793_v19 = vrot.slane %v12926_v3, 4 }
 0x536   : > { %v4648_v4 = vpack.c.bf16 %v4600_v38, %v4599_v0  ;;  %v5128_v41 = vsel %vm773_vm3, %v5125_v9, %v5127_v20  ;;  %v4898_v43 = vsel %vm541_vm4, %v4895_v31, %v4897_v28 }
 0x537   : > { %v4647_v29 = vpack.c.bf16 %v4598_v50, %v4597_v25  ;;  %v10252_v23 = vpop.f32.mrb[28].mxu0  ;;  %v5130_v40 = vsel %vm773_vm3, %v5127_v20, %v5129_v42  ;;  %4993 = vst.msk [vmem:[#allocation5 + $0x68] sm:$0xff] %vm386_vm0, %v4898_v43  ;;  %v4900_v48 = vsel %vm541_vm4, %v4897_v28, %v4899_v47 }
 0x538   : > { %v4708_v21 = vrot.slane %v4648_v4, 4  ;;  %v4555_v44 = vadd.f32 %v10252_v23, %v12786_v45  ;;  %v4391_v61 = vpop.f32.mrb[29].mxu0  ;;  %4994 = vst.msk [vmem:[#allocation5 + $0x70] sm:$0xff] %vm386_vm0, %v4900_v48  ;;  %10299 = vmatmul.mubr.msk.bf16.gmra.mrb[24].mxu1 %vm386_vm0, %v5128_v41 }
 0x539   : > { %v4706_v13 = vrot.slane %v4647_v29, 4  ;;  %v4553_v14 = vadd.f32 %v12786_v45, %v4391_v61  ;;  %v10253_v16 = vpop.f32.mrb[30].mxu0  ;;  %10302 = vmatprep.mubr.msk.bf16.mxu1 %vm386_vm0, %v5130_v40 }
 0x53a   : > { %v4556_v52 = vadd.f32 %v10253_v16, %v12786_v45  ;;  %v4394_v37 = vpop.f32.mrb[31].mxu0  ;;  %v4603_v62 = vmax.f32 %v4555_v44, 0.0 }
 0x53b   : > { %v12900_v39 = vld [vmem:[#allocation4 + $0x88] sm:$0xff]  ;;  %v4707_v34 = vsel %vm773_vm3, %v4704_v7, %v4706_v13  ;;  %v4709_v24 = vsel %vm773_vm3, %v4706_v13, %v4708_v21  ;;  %v4554_v5 = vadd.f32 %v12786_v45, %v4394_v37  ;;  %v4601_v53 = vmax.f32 %v4553_v14, 0.0  ;;  %v12920_v7 = vld [vmem:[#allocation5 + $0x8] sm:$0xff] }
 0x53c   : > { %v4812_v57 = vld [vmem:[#allocation4 + $0x80] sm:$0xff]  ;;  %4767 = vst.msk [vmem:[#allocation4 + $0x90] sm:$0xff] %vm386_vm0, %v4707_v34  ;;  %4768 = vst.msk [vmem:[#allocation4 + $0x98] sm:$0xff] %vm386_vm0, %v4709_v24  ;;  %v4604_v26 = vmax.f32 %v4556_v52, 0.0  ;;  %v5133_v27 = vrot.slane %v12900_v39, 4  ;;  %v4903_v10 = vrot.slane %v12900_v39, 2 }
 0x53d   : > { %4787 = vst.msk [vmem:[#allocation4 + $0x90] sm:$0xf] %vm393_vm1, %v14678_v59  ;;  %v4602_v55 = vmax.f32 %v4554_v5, 0.0  ;;  %v5131_v56 = vrot.slane %v4812_v57, 4  ;;  %v4901_v6 = vrot.slane %v4812_v57, 2  ;;  %v5791_v58 = vrot.slane %v12920_v7, 4 }
 0x53e   : > { %4788 = vst.msk [vmem:[#allocation4 + $0x98] sm:$0xf0] %vm395_vm2, %v14678_v59  ;;  %v12913_v9 = vpack.c.bf16 %v4604_v26, %v4603_v62  ;;  %v12953_v39 = vld [vmem:[#allocation5 + $0x18] sm:$0xff] }
 0x53f   : > { %v4649_v12 = vpack.c.bf16 %v4602_v55, %v4601_v53  ;;  %v10256_v15 = vpop.f32.mrb[32].mxu0  ;;  %v5132_v31 = vsel %vm773_vm3, %v5129_v42, %v5131_v56  ;;  %v5134_v2 = vsel %vm773_vm3, %v5131_v56, %v5133_v27  ;;  %v4902_v17 = vsel %vm541_vm4, %v4899_v47, %v4901_v6 }
 0x540   : > { %v4712_v36 = vrot.slane %v12913_v9, 4  ;;  %v4559_v22 = vadd.f32 %v10256_v15, %v12786_v45  ;;  %v4407_v1 = vpop.f32.mrb[33].mxu0  ;;  %4995 = vst.msk [vmem:[#allocation5 + $0x78] sm:$0xff] %vm386_vm0, %v4902_v17  ;;  %v4904_v32 = vsel %vm541_vm4, %v4901_v6, %v4903_v10  ;;  %10303 = vmatmul.mubr.msk.bf16.gmra.mrb[28].mxu1 %vm386_vm0, %v5132_v31  ;;  %v12941_v25 = vsel %vm773_vm3, %v5791_v58, %v5793_v19 }
 0x541   : > { %v4710_v30 = vrot.slane %v4649_v12, 4  ;;  %v4557_v33 = vadd.f32 %v12786_v45, %v4407_v1  ;;  %v10257_v63 = vpop.f32.mrb[34].mxu0  ;;  %4996 = vst.msk [vmem:[#allocation5 + $0x80] sm:$0xff] %vm386_vm0, %v4904_v32  ;;  %10306 = vmatprep.mubr.msk.bf16.mxu1 %vm386_vm0, %v5134_v2  ;;  %v5795_v5 = vrot.slane %v12953_v39, 4 }
 0x542   : > { %v4560_v60 = vadd.f32 %v10257_v63, %v12786_v45  ;;  %v4410_v54 = vpop.f32.mrb[35].mxu0  ;;  %v4607_v38 = vmax.f32 %v4559_v22, 0.0 }
 0x543   : > { %v4711_v11 = vsel %vm773_vm3, %v4708_v21, %v4710_v30  ;;  %v4713_v51 = vsel %vm773_vm3, %v4710_v30, %v4712_v36  ;;  %v4558_v35 = vadd.f32 %v12786_v45, %v4410_v54  ;;  %v4605_v20 = vmax.f32 %v4557_v33, 0.0 }
 0x544   : > { %v4814_v49 = vld [vmem:[#allocation4 + $0x90] sm:$0xff]  ;;  %4769 = vst.msk [vmem:[#allocation4 + $0xa0] sm:$0xff] %vm386_vm0, %v4711_v11  ;;  %4770 = vst.msk [vmem:[#allocation4 + $0xa8] sm:$0xff] %vm386_vm0, %v4713_v51  ;;  %v4608_v28 = vmax.f32 %v4560_v60, 0.0  ;;  %v12967_v9 = vsel %vm773_vm3, %v5793_v19, %v5795_v5 }
 0x545   : > { %v4815_v0 = vld [vmem:[#allocation4 + $0x98] sm:$0xff]  ;;  %4789 = vst.msk [vmem:[#allocation4 + $0xa8] sm:$0xf] %vm393_vm1, %v14678_v59  ;;  %v4606_v50 = vmax.f32 %v4558_v35, 0.0  ;;  %v5135_v42 = vrot.slane %v4814_v49, 4  ;;  %v4905_v4 = vrot.slane %v4814_v49, 2 }
 0x546   : > { %v5137_v47 = vrot.slane %v4815_v0, 4  ;;  %v4652_v41 = vpack.c.bf16 %v4608_v28, %v4607_v38  ;;  %v4907_v43 = vrot.slane %v4815_v0, 2 }
 0x547   : > { %v4651_v29 = vpack.c.bf16 %v4606_v50, %v4605_v20  ;;  %v10260_v23 = vpop.f32.mrb[36].mxu0  ;;  %v5136_v40 = vsel %vm773_vm3, %v5133_v27, %v5135_v42  ;;  %v4906_v21 = vsel %vm541_vm4, %v4903_v10, %v4905_v4 }
 0x548   : > { %v5138_v48 = vsel %vm773_vm3, %v5135_v42, %v5137_v47  ;;  %v4716_v44 = vrot.slane %v4652_v41, 4  ;;  %v4563_v61 = vadd.f32 %v10260_v23, %v12786_v45  ;;  %v4423_v13 = vpop.f32.mrb[37].mxu0  ;;  %4997 = vst.msk [vmem:[#allocation5 + $0x88] sm:$0xff] %vm386_vm0, %v4906_v21  ;;  %v4908_v14 = vsel %vm541_vm4, %v4905_v4, %v4907_v43  ;;  %10307 = vmatmul.mubr.msk.bf16.gmra.mrb[32].mxu1 %vm386_vm0, %v5136_v40 }
 0x549   : > { %v4714_v16 = vrot.slane %v4651_v29, 4  ;;  %v4561_v52 = vadd.f32 %v12786_v45, %v4423_v13  ;;  %v10261_v37 = vpop.f32.mrb[38].mxu0  ;;  %4998 = vst.msk [vmem:[#allocation5 + $0x90] sm:$0xff] %vm386_vm0, %v4908_v14  ;;  %10310 = vmatprep.mubr.msk.bf16.mxu1 %vm386_vm0, %v5138_v48 }
 0x54a   : > { %v4564_v34 = vadd.f32 %v10261_v37, %v12786_v45  ;;  %v4426_v24 = vpop.f32.mrb[39].mxu0  ;;  %v4611_v27 = vmax.f32 %v4563_v61, 0.0 }
 0x54b   : > { %v4816_v57 = vld [vmem:[#allocation4 + $0xa0] sm:$0xff]  ;;  %v4715_v62 = vsel %vm773_vm3, %v4712_v36, %v4714_v16  ;;  %v4717_v26 = vsel %vm773_vm3, %v4714_v16, %v4716_v44  ;;  %v4562_v10 = vadd.f32 %v12786_v45, %v4426_v24  ;;  %v4609_v12 = vmax.f32 %v4561_v52, 0.0 }
 0x54c   : > { %v4817_v53 = vld [vmem:[#allocation4 + $0xa8] sm:$0xff]  ;;  %4771 = vst.msk [vmem:[#allocation4 + $0xb0] sm:$0xff] %vm386_vm0, %v4715_v62  ;;  %4772 = vst.msk [vmem:[#allocation4 + $0xb8] sm:$0xff] %vm386_vm0, %v4717_v26  ;;  %v4612_v55 = vmax.f32 %v4564_v34, 0.0  ;;  %v5139_v56 = vrot.slane %v4816_v57, 4  ;;  %v4909_v6 = vrot.slane %v4816_v57, 2 }
 0x54d   : > { %4790 = vst.msk [vmem:[#allocation4 + $0xb0] sm:$0xf0] %vm395_vm2, %v14678_v59  ;;  %v4610_v15 = vmax.f32 %v4562_v10, 0.0  ;;  %v5141_v31 = vrot.slane %v4817_v53, 4  ;;  %v4911_v2 = vrot.slane %v4817_v53, 2 }
 0x54e   : > { %v4654_v17 = vpack.c.bf16 %v4612_v55, %v4611_v27  ;;  %v5140_v36 = vsel %vm773_vm3, %v5137_v47, %v5139_v56  ;;  %v4910_v22 = vsel %vm541_vm4, %v4907_v43, %v4909_v6 }
 0x54f   : > { %v4653_v1 = vpack.c.bf16 %v4610_v15, %v4609_v12  ;;  %v10264_v32 = vpop.f32.mrb[40].mxu0  ;;  %v5142_v30 = vsel %vm773_vm3, %v5139_v56, %v5141_v31  ;;  %4999 = vst.msk [vmem:[#allocation5 + $0x98] sm:$0xff] %vm386_vm0, %v4910_v22  ;;  %v4912_v33 = vsel %vm541_vm4, %v4909_v6, %v4911_v2 }
 0x550   : > { %v4720_v63 = vrot.slane %v4654_v17, 4  ;;  %v4567_v60 = vadd.f32 %v10264_v32, %v12786_v45  ;;  %v4439_v54 = vpop.f32.mrb[41].mxu0  ;;  %5000 = vst.msk [vmem:[#allocation5 + $0xa0] sm:$0xff] %vm386_vm0, %v4912_v33  ;;  %10311 = vmatmul.mubr.msk.bf16.gmra.mrb[36].mxu1 %vm386_vm0, %v5140_v36 }
 0x551   : > { %v4718_v19 = vrot.slane %v4653_v1, 4  ;;  %v4565_v11 = vadd.f32 %v12786_v45, %v4439_v54  ;;  %v10265_v51 = vpop.f32.mrb[42].mxu0  ;;  %10314 = vmatprep.mubr.msk.bf16.mxu1 %vm386_vm0, %v5142_v30  ;;  %v10276_v32 = vpop.f32.mrb[0].mxu1 }
 0x552   : > { %v4568_v35 = vadd.f32 %v10265_v51, %v12786_v45  ;;  %v4442_v49 = vpop.f32.mrb[43].mxu0  ;;  %v4615_v42 = vmax.f32 %v4567_v60, 0.0  ;;  %v13009_v33 = vpop.f32.mrb[1].mxu1  ;;  %v5017_v60 = vld [vmem:[#allocation5] sm:$0xff] }
 0x553   : > { %v4819_v0 = vld [vmem:[#allocation4 + $0xb8] sm:$0xff]  ;;  %v4719_v38 = vsel %vm773_vm3, %v4716_v44, %v4718_v19  ;;  %v4721_v20 = vsel %vm773_vm3, %v4718_v19, %v4720_v63  ;;  %v4566_v28 = vadd.f32 %v12786_v45, %v4442_v49  ;;  %v4613_v43 = vmax.f32 %v4565_v11, 0.0  ;;  %v13013_v19 = vpop.f32.mrb[2].mxu1  ;;  %v5735_v32 = vld [vmem:[#allocation5] sm:$0xf0] }
 0x554   : > { %v4818_v50 = vld [vmem:[#allocation4 + $0xb0] sm:$0xff]  ;;  %4773 = vst.msk [vmem:[#allocation4 + $0xc0] sm:$0xff] %vm386_vm0, %v4719_v38  ;;  %4774 = vst.msk [vmem:[#allocation4 + $0xc8] sm:$0xff] %vm386_vm0, %v4721_v20  ;;  %v4616_v47 = vmax.f32 %v4568_v35, 0.0  ;;  %v5145_v4 = vrot.slane %v4819_v0, 4  ;;  %v4915_v41 = vrot.slane %v4819_v0, 2 }
 0x555   : > { %4791 = vst.msk [vmem:[#allocation4 + $0xc0] sm:$0xf] %vm393_vm1, %v14678_v59  ;;  %v4614_v29 = vmax.f32 %v4566_v28, 0.0  ;;  %v5143_v23 = vrot.slane %v4818_v50, 4  ;;  %v4913_v40 = vrot.slane %v4818_v50, 2  ;;  %v13017_v35 = vpop.f32.mrb[3].mxu1 }
 0x556   : > { %4792 = vst.msk [vmem:[#allocation4 + $0xc8] sm:$0xf0] %vm395_vm2, %v14678_v59  ;;  %v4656_v48 = vpack.c.bf16 %v4616_v47, %v4615_v42 }
 0x557   : > { %v4655_v21 = vpack.c.bf16 %v4614_v29, %v4613_v43  ;;  %v10268_v44 = vpop.f32.mrb[44].mxu0  ;;  %v5144_v61 = vsel %vm773_vm3, %v5141_v31, %v5143_v23  ;;  %v5146_v13 = vsel %vm773_vm3, %v5143_v23, %v5145_v4  ;;  %v4914_v14 = vsel %vm541_vm4, %v4911_v2, %v4913_v40  ;;  %v13036_v43 = vld [vmem:[#allocation4 + $0xf8] sm:$0xff]  ;;  %v11240_v29 = vld [vmem:[#allocation12 + $0x28] sm:$0xff]  }
 0x558   : > { %v4724_v16 = vrot.slane %v4656_v48, 4  ;;  %v4571_v52 = vadd.f32 %v10268_v44, %v12786_v45  ;;  %v4455_v37 = vpop.f32.mrb[45].mxu0  ;;  %5001 = vst.msk [vmem:[#allocation5 + $0xa8] sm:$0xff] %vm386_vm0, %v4914_v14  ;;  %v4916_v34 = vsel %vm541_vm4, %v4913_v40, %v4915_v41  ;;  %10315 = vmatmul.mubr.msk.bf16.gmra.mrb[40].mxu1 %vm386_vm0, %v5144_v61  ;;  %v11241_v61 = vld [vmem:[#allocation12 + $0x30] sm:$0xff]  }
 0x559   : > { %v4722_v24 = vrot.slane %v4655_v21, 4  ;;  %v4569_v57 = vadd.f32 %v12786_v45, %v4455_v37  ;;  %v10269_v62 = vpop.f32.mrb[46].mxu0  ;;  %5002 = vst.msk [vmem:[#allocation5 + $0xb0] sm:$0xff] %vm386_vm0, %v4916_v34  ;;  %10318 = vmatprep.mubr.msk.bf16.mxu1 %vm386_vm0, %v5146_v13  ;;  %v13031_v42 = vpop.f32.mrb[4].mxu1 }
 0x55a   : > { %v4572_v26 = vadd.f32 %v10269_v62, %v12786_v45  ;;  %v4458_v27 = vpop.f32.mrb[47].mxu0  ;;  %v4619_v55 = vmax.f32 %v4571_v52, 0.0  ;;  %v13063_v62 = vld [vmem:[#allocation5 + $0x30] sm:$0xff] }
 0x55b   : > { %v4723_v10 = vsel %vm773_vm3, %v4720_v63, %v4722_v24  ;;  %v4725_v53 = vsel %vm773_vm3, %v4722_v24, %v4724_v16  ;;  %v4570_v56 = vadd.f32 %v12786_v45, %v4458_v27  ;;  %v4617_v15 = vmax.f32 %v4569_v57, 0.0  ;;  %v5021_v24 = vld [vmem:[#allocation5 + $0x20] sm:$0xff]  ;;  %v5022_v57 = vld [vmem:[#allocation5 + $0x28] sm:$0xff] }
 0x55c   : > { %v4820_v6 = vld [vmem:[#allocation4 + $0xc0] sm:$0xff]  ;;  %4775 = vst.msk [vmem:[#allocation4 + $0xd0] sm:$0xff] %vm386_vm0, %v4723_v10  ;;  %4776 = vst.msk [vmem:[#allocation4 + $0xd8] sm:$0xff] %vm386_vm0, %v4725_v53  ;;  %v4620_v31 = vmax.f32 %v4572_v26, 0.0  ;;  %v13071_v27 = vld [vmem:[#allocation5 + $0x40] sm:$0xff] }
 0x55d   : > { %v4821_v12 = vld [vmem:[#allocation4 + $0xc8] sm:$0xff]  ;;  %v5069_v2 = vld [vmem:[#allocation4 + $0xc0] sm:$0xf]  ;;  %4793 = vst.msk [vmem:[#allocation4 + $0xd8] sm:$0xf] %vm393_vm1, %v14678_v59  ;;  %v4618_v36 = vmax.f32 %v4570_v56, 0.0 }
 0x55e   : > { %v4919_v17 = vrot.slane %v4821_v12, 2  ;;  %v5147_v22 = vrot.slane %v5069_v2, 4  ;;  %v4917_v1 = vrot.slane %v4820_v6, 2  ;;  %v4658_v30 = vpack.c.bf16 %v4620_v31, %v4619_v55  ;;  %v13067_v26 = vld [vmem:[#allocation5 + $0x38] sm:$0xff]  ;;  %v13075_v10 = vld [vmem:[#allocation5 + $0x48] sm:$0xff]  ;;  %v13079_v53 = vld [vmem:[#allocation5 + $0x50] sm:$0xff] }
 0x55f   : > { %v4657_v45 = vpack.c.bf16 %v4618_v36, %v4617_v15  ;;  %v13083_v55 = vld [vmem:[#allocation5 + $0x58] sm:$0xff]  ;;  %v13087_v56 = vld [vmem:[#allocation5 + $0x60] sm:$0xff]  ;;  %v13091_v6 = vld [vmem:[#allocation5 + $0x68] sm:$0xff] }
 0x560   : > { %v5148_v63 = vsel %vm773_vm3, %v5145_v4, %v5147_v22  ;;  %v4918_v54 = vsel %vm541_vm4, %v4915_v41, %v4917_v1  ;;  %v4920_v11 = vsel %vm541_vm4, %v4917_v1, %v4919_v17  ;;  %v4728_v51 = vrot.slane %v4658_v30, 4  ;;  %v13033_v4 = vpop.f32.mrb[5].mxu1  ;;  %v13095_v12 = vld [vmem:[#allocation5 + $0x70] sm:$0xff]  ;;  %v13099_v15 = vld [vmem:[#allocation5 + $0x78] sm:$0xff]  ;;  %v13103_v31 = vld [vmem:[#allocation5 + $0x80] sm:$0xff] }
 0x561   : > { %5003 = vst.msk [vmem:[#allocation5 + $0xb8] sm:$0xff] %vm386_vm0, %v4918_v54  ;;  %5004 = vst.msk [vmem:[#allocation5 + $0xc0] sm:$0xff] %vm386_vm0, %v4920_v11  ;;  %v4726_v49 = vrot.slane %v4657_v45, 4  ;;  %10319 = vmatmul.mubr.msk.bf16.gmra.mrb[44].mxu1 %vm386_vm0, %v5148_v63  ;;  %v13038_v23 = vpop.f32.mrb[6].mxu1  ;;  %v13107_v2 = vld [vmem:[#allocation5 + $0x88] sm:$0xff]  ;;  %v13115_v36 = vld [vmem:[#allocation5 + $0x98] sm:$0xff] }
 0x562   : > { %4779 = vst.msk [vmem:[#allocation4 + $0xf0] sm:$0xf] %vm393_vm1, %v4728_v51  ;;  %10326 = vmatprep.mubr.msk.bf16.mxu1 %vm386_vm0, %v5017_v60  ;;  %v5285_v48 = vpop.f32.mrb[7].mxu1  ;;  %v13119_v22 = vld [vmem:[#allocation5 + $0xa0] sm:$0xff]  ;;  %v13123_v1 = vld [vmem:[#allocation5 + $0xa8] sm:$0xff]  ;;  %v13127_v30 = vld [vmem:[#allocation5 + $0xb0] sm:$0xff] }
 0x563   : > { %v4822_v0 = vld [vmem:[#allocation4 + $0xd0] sm:$0xff]  ;;  %4795 = vst.msk [vmem:[#allocation4 + $0xf0] sm:$0xf] %vm393_vm1, %v14678_v59  ;;  %v4727_v38 = vsel %vm773_vm3, %v4724_v16, %v4726_v49  ;;  %v4729_v20 = vsel %vm773_vm3, %v4726_v49, %v4728_v51  ;;  %v5790_v45 = vrot.slane %v5735_v32, 4  ;;  %v11242_v54 = vld [vmem:[#allocation12 + $0x38] sm:$0xff]   ;;  %v13143_v11 = vld [vmem:[#allocation12 + $0x40] sm:$0xff]  }
 0x564   : > { %v4823_v28 = vld [vmem:[#allocation4 + $0xd8] sm:$0xff]  ;;  %4777 = vst.msk [vmem:[#allocation4 + $0xe0] sm:$0xff] %vm386_vm0, %v4727_v38  ;;  %4778 = vst.msk [vmem:[#allocation4 + $0xe8] sm:$0xff] %vm386_vm0, %v4729_v20  ;;  %v4921_v50 = vrot.slane %v4822_v0, 2  ;;  %v5803_v49 = vrot.slane %v13067_v26, 4  ;;  %v5807_v38 = vrot.slane %v13075_v10, 4 }
 0x565   : > { %4794 = vst.msk [vmem:[#allocation4 + $0xe0] sm:$0xf0] %vm395_vm2, %v14678_v59  ;;  %v4923_v47 = vrot.slane %v4823_v28, 2  ;;  %v14614_v59 = vrot.slane %v13036_v43, 2  ;;  %v5792_v63 = vsel %vm773_vm3, %v5790_v45, %v5791_v58  ;;  %v5799_v58 = vrot.slane %v5022_v57, 4 }
 0x566   : > { %v4922_v41 = vsel %vm541_vm4, %v4919_v17, %v4921_v50  ;;  %v13111_v17 = vld [vmem:[#allocation5 + $0x90] sm:$0xff] }
 0x567   : > { %5005 = vst.msk [vmem:[#allocation5 + $0xc8] sm:$0xff] %vm386_vm0, %v4922_v41  ;;  %v4924_v40 = vsel %vm541_vm4, %v4921_v50, %v4923_v47  ;;  %v5809_v50 = vrot.slane %v13079_v53, 4 }
 0x568   : > { %5006 = vst.msk [vmem:[#allocation5 + $0xd0] sm:$0xff] %vm386_vm0, %v4924_v40  ;;  %v13134_v60 = vld [vmem:[#allocation5 + $0xb8] sm:$0xff] }
 0x569   : > { %10327 = vmatmul.mubr.msk.bf16.vlgmr.msra.gmra.mrb[48].mxu1 %vm386_vm0, %v12920_v7  ;;  %v5797_v7 = vrot.slane %v5021_v24, 4  ;;  %v5810_v41 = vsel %vm773_vm3, %v5807_v38, %v5809_v50 }
 0x56a   : > { %10375 = vmatpush3.bf16.msra.mxu1 %v12780_v18  ;;  %10330 = vmatprep.mubr.msk.bf16.mxu1 %vm386_vm0, %v12926_v3  ;;  %v4826_v21 = vld [vmem:[#allocation4 + $0xf0] sm:$0xff] }
 0x56b   : > { %v4825_v44 = vld [vmem:[#allocation4 + $0xe8] sm:$0xff]  ;;  %10376 = vmatprep.subr.bf16.mxu1 %v11240_v29  ;;  %v4929_v13 = vrot.slane %v4826_v21, 2  ;;  %v5798_v51 = vsel %vm773_vm3, %v5795_v5, %v5797_v7  ;;  %v5805_v5 = vrot.slane %v13071_v27, 4 }
 0x56c   : > { %v4824_v14 = vld [vmem:[#allocation4 + $0xe0] sm:$0xff]  ;;  %v4927_v16 = vrot.slane %v4825_v44, 2  ;;  %v5813_v44 = vrot.slane %v13087_v56, 4 }
 0x56d   : > { %v4925_v52 = vrot.slane %v4824_v14, 2  ;;  %v4932_v37 = vsel %vm541_vm4, %v4929_v13, %v14614_v59  ;;  %v5806_v20 = vsel %vm773_vm3, %v5803_v49, %v5805_v5  ;;  %v5808_v28 = vsel %vm773_vm3, %v5805_v5, %v5807_v38 }
 0x56e   : > { %10377 = vmatpush3.bf16.msra.mxu1 %v11240_v29  ;;  %v4930_v34 = vsel %vm541_vm4, %v4927_v16, %v4929_v13  ;;  %5010 = vst.msk [vmem:[#allocation5 + $0xf0] sm:$0xff] %vm386_vm0, %v4932_v37  ;;  %v5815_v13 = vrot.slane %v13091_v6, 4  ;;  %v5827_v5 = vrot.slane %v13115_v36, 4 }
 0x56f   : > { %10426 = vmatprep.subr.bf16.mxu1 %v11241_v61  ;;  %v4926_v18 = vsel %vm541_vm4, %v4923_v47, %v4925_v52  ;;  %v4928_v3 = vsel %vm541_vm4, %v4925_v52, %v4927_v16  ;;  %5009 = vst.msk [vmem:[#allocation5 + $0xe8] sm:$0xff] %vm386_vm0, %v4930_v34  ;;  %v5811_v47 = vrot.slane %v13083_v55, 4 }
 0x570   : > { %5007 = vst.msk [vmem:[#allocation5 + $0xd8] sm:$0xff] %vm386_vm0, %v4926_v18  ;;  %5008 = vst.msk [vmem:[#allocation5 + $0xe0] sm:$0xff] %vm386_vm0, %v4928_v3  ;;  %v5816_v16 = vsel %vm773_vm3, %v5813_v44, %v5815_v13  ;;  %v5817_v18 = vrot.slane %v13095_v12, 4 }
 0x571   : > { %10331 = vmatmul.mubr.msk.bf16.gmra.mrb[52].mxu1 %vm386_vm0, %v12953_v39  ;;  %v5812_v29 = vsel %vm773_vm3, %v5809_v50, %v5811_v47  ;;  %v5814_v14 = vsel %vm773_vm3, %v5811_v47, %v5813_v44 }
 0x572   : > { %10334 = vmatprep.mubr.msk.bf16.mxu1 %vm386_vm0, %v5021_v24  ;;  %v5819_v24 = vrot.slane %v13099_v15, 4 }
 0x574   : > { %v5820_v32 = vsel %vm773_vm3, %v5817_v18, %v5819_v24 }
 0x579   : > { %10335 = vmatmul.mubr.msk.bf16.gmra.mrb[56].mxu1 %vm386_vm0, %v5022_v57  ;;  %v5818_v57 = vsel %vm773_vm3, %v5815_v13, %v5817_v18 }
 0x57a   : > { %10338 = vmatprep.mubr.msk.bf16.mxu1 %vm386_vm0, %v13063_v62 }
 0x581   : > { %10339 = vmatmul.mubr.msk.bf16.gmra.mrb[60].mxu1 %vm386_vm0, %v13067_v26 }
 0x582   : > { %10342 = vmatprep.mubr.msk.bf16.mxu1 %vm386_vm0, %v13071_v27 }
 0x589   : > { %10343 = vmatmul.mubr.msk.bf16.gmra.mrb[64].mxu1 %vm386_vm0, %v13075_v10 }
 0x58a   : > { %10346 = vmatprep.mubr.msk.bf16.mxu1 %vm386_vm0, %v13079_v53 }
 0x591   : > { %10347 = vmatmul.mubr.msk.bf16.gmra.mrb[68].mxu1 %vm386_vm0, %v13083_v55 }
 0x592   : > { %10350 = vmatprep.mubr.msk.bf16.mxu1 %vm386_vm0, %v13087_v56 }
 0x599   : > { %10351 = vmatmul.mubr.msk.bf16.gmra.mrb[72].mxu1 %vm386_vm0, %v13091_v6 }
 0x59a   : > { %10354 = vmatprep.mubr.msk.bf16.mxu1 %vm386_vm0, %v13095_v12 }
 0x5a1   : > { %10355 = vmatmul.mubr.msk.bf16.gmra.mrb[76].mxu1 %vm386_vm0, %v13099_v15 }
 0x5a2   : > { %10358 = vmatprep.mubr.msk.bf16.mxu1 %vm386_vm0, %v13103_v31 }
 0x5a9   : > { %10359 = vmatmul.mubr.msk.bf16.gmra.mrb[80].mxu1 %vm386_vm0, %v13107_v2 }
 0x5aa   : > { %10362 = vmatprep.mubr.msk.bf16.mxu1 %vm386_vm0, %v13111_v17 }
 0x5b1   : > { %10363 = vmatmul.mubr.msk.bf16.gmra.mrb[84].mxu1 %vm386_vm0, %v13115_v36 }
 0x5b2   : > { %10366 = vmatprep.mubr.msk.bf16.mxu1 %vm386_vm0, %v13119_v22 }
 0x5b9   : > { %10367 = vmatmul.mubr.msk.bf16.gmra.mrb[88].mxu1 %vm386_vm0, %v13123_v1 }
 0x5ba   : > { %10370 = vmatprep.mubr.msk.bf16.mxu1 %vm386_vm0, %v13127_v30 }
 0x5c1   : > { %10371 = vmatmul.mubr.msk.bf16.gmra.mrb[92].mxu1 %vm386_vm0, %v13134_v60 }
 0x5c2   : > { %10378 = vmatprep.mubr.msk.bf16.mxu1 %vm386_vm0, %v5792_v63  ;;  %v5821_v63 = vrot.slane %v13103_v31, 4 }
 0x5c9   : > { %10379 = vmatmul.mubr.msk.bf16.vlgmr.msra.gmra.mrb[96].mxu1 %vm386_vm0, %v12941_v25  ;;  %v5800_v25 = vsel %vm773_vm3, %v5797_v7, %v5799_v58  ;;  %v5823_v7 = vrot.slane %v13107_v2, 4 }
 0x5ca   : > { %10427 = vmatpush3.bf16.msra.mxu1 %v11241_v61  ;;  %10382 = vmatprep.mubr.msk.bf16.mxu1 %vm386_vm0, %v12967_v9  ;;  %v5801_v9 = vrot.slane %v13063_v62, 4 }
 0x5cb   : > { %10428 = vmatprep.subr.bf16.mxu1 %v11242_v54 }
 0x5cc   : > { %v5802_v0 = vsel %vm773_vm3, %v5799_v58, %v5801_v9  ;;  %v5804_v39 = vsel %vm773_vm3, %v5801_v9, %v5803_v49  ;;  %v5824_v9 = vsel %vm773_vm3, %v5821_v63, %v5823_v7 }
 0x5ce   : > { %10429 = vmatpush3.bf16.msra.mxu1 %v11242_v54 }
 0x5cf   : > { %10478 = vmatprep.subr.bf16.mxu1 %v13143_v11 }
 0x5d1   : > { %10383 = vmatmul.mubr.msk.bf16.gmra.mrb[100].mxu1 %vm386_vm0, %v5798_v51 }
 0x5d2   : > { %10386 = vmatprep.mubr.msk.bf16.mxu1 %vm386_vm0, %v5800_v25  ;;  %v5822_v25 = vsel %vm773_vm3, %v5819_v24, %v5821_v63  ;;  %v5835_v24 = vrot.slane %v13134_v60, 4 }
 0x5d9   : > { %10387 = vmatmul.mubr.msk.bf16.gmra.mrb[104].mxu1 %vm386_vm0, %v5802_v0  ;;  %v5825_v0 = vrot.slane %v13111_v17, 4 }
 0x5da   : > { %10390 = vmatprep.mubr.msk.bf16.mxu1 %vm386_vm0, %v5804_v39 }
 0x5db   : > { %v5828_v50 = vsel %vm773_vm3, %v5825_v0, %v5827_v5 }
 0x5e1   : > { %10391 = vmatmul.mubr.msk.bf16.gmra.mrb[108].mxu1 %vm386_vm0, %v5806_v20 }
 0x5e2   : > { %10394 = vmatprep.mubr.msk.bf16.mxu1 %vm386_vm0, %v5808_v28  ;;  %v5826_v28 = vsel %vm773_vm3, %v5823_v7, %v5825_v0 }
 0x5e9   : > { %10395 = vmatmul.mubr.msk.bf16.gmra.mrb[112].mxu1 %vm386_vm0, %v5810_v41  ;;  %v5829_v41 = vrot.slane %v13119_v22, 4 }
 0x5ea   : > { %v13169_v40 = vpop.f32.mrb[8].mxu1  ;;  %10398 = vmatprep.mubr.msk.bf16.mxu1 %vm386_vm0, %v5812_v29 }
 0x5eb   : > { %v5297_v48 = vpop.f32.mrb[9].mxu1  ;;  %v5830_v13 = vsel %vm773_vm3, %v5827_v5, %v5829_v41 }
 0x5ec   : > { %v10285_v21 = vpop.f32.mrb[10].mxu1  ;;  %v5831_v48 = vrot.slane %v13123_v1, 4 }
 0x5ed   : > { %v13173_v61 = vpop.f32.mrb[11].mxu1 }
 0x5f1   : > { %10399 = vmatmul.mubr.msk.bf16.gmra.mrb[116].mxu1 %vm386_vm0, %v5814_v14  ;;  %v5832_v14 = vsel %vm773_vm3, %v5829_v41, %v5831_v48 }
 0x5f2   : > { %10402 = vmatprep.mubr.msk.bf16.mxu1 %vm386_vm0, %v5816_v16  ;;  %v10288_v52 = vpop.f32.mrb[12].mxu1 }
 0x5f3   : > { %v13180_v37 = vpop.f32.mrb[13].mxu1  ;;  %v5833_v52 = vrot.slane %v13127_v30, 4 }
 0x5f4   : > { %v13182_v34 = vpop.f32.mrb[14].mxu1 }
 0x5f5   : > { %v13185_v3 = vpop.f32.mrb[15].mxu1  ;;  %v5834_v63 = vsel %vm773_vm3, %v5831_v48, %v5833_v52  ;;  %v5836_v7 = vsel %vm773_vm3, %v5833_v52, %v5835_v24  ;;  %v11244_v48 = vld [vmem:[#allocation12 + $0x48] sm:$0xff]  }
 0x5f9   : > { %10403 = vmatmul.mubr.msk.bf16.gmra.mrb[120].mxu1 %vm386_vm0, %v5818_v57 }
 0x5fa   : > { %10406 = vmatprep.mubr.msk.bf16.mxu1 %vm386_vm0, %v5820_v32 }
 0x5fb   : > { %v13192_v45 = vpop.f32.mrb[16].mxu1 }
 0x5fc   : > { %v13195_v54 = vpop.f32.mrb[17].mxu1 }
 0x5fd   : > { %v13198_v58 = vpop.f32.mrb[18].mxu1 }
 0x5fe   : > { %v5329_v51 = vpop.f32.mrb[19].mxu1 }
 0x5ff   : > { %v5759_v51 = vld [vmem:[#allocation5 + $0xc0] sm:$0xf] }
 0x601   : > { %10407 = vmatmul.mubr.msk.bf16.gmra.mrb[124].mxu1 %vm386_vm0, %v5822_v25 }
 0x602   : > { %10410 = vmatprep.mubr.msk.bf16.mxu1 %vm386_vm0, %v5824_v9  ;;  %v5837_v9 = vrot.slane %v5759_v51, 4 }
 0x603   : > { %v13204_v49 = vpop.f32.mrb[20].mxu1 }
 0x604   : > { %v5341_v39 = vpop.f32.mrb[21].mxu1 }
 0x605   : > { %v10297_v38 = vpop.f32.mrb[22].mxu1 }
 0x606   : > { %v13208_v20 = vpop.f32.mrb[23].mxu1  ;;  %v5838_v38 = vsel %vm773_vm3, %v5835_v24, %v5837_v9 }
 0x609   : > { %10411 = vmatmul.mubr.msk.bf16.gmra.mrb[128].mxu1 %vm386_vm0, %v5826_v28 }
 0x60a   : > { %10414 = vmatprep.mubr.msk.bf16.mxu1 %vm386_vm0, %v5828_v50 }
 0x60b   : > { %v10300_v47 = vpop.f32.mrb[24].mxu1 }
 0x60c   : > { %v13215_v29 = vpop.f32.mrb[25].mxu1 }
 0x60d   : > { %v13218_v21 = vpop.f32.mrb[26].mxu1 }
 0x60e   : > { %v13220_v44 = vpop.f32.mrb[27].mxu1 }
 0x611   : > { %10415 = vmatmul.mubr.msk.bf16.gmra.mrb[132].mxu1 %vm386_vm0, %v5830_v13  ;;  %v13257_v13 = vld [vmem:[#allocation12 + $0x50] sm:$0xff]  }
 0x612   : > { %10418 = vmatprep.mubr.msk.bf16.mxu1 %vm386_vm0, %v5832_v14 }
 0x613   : > { %v13226_v16 = vpop.f32.mrb[28].mxu1 }
 0x614   : > { %v13229_v18 = vpop.f32.mrb[29].mxu1 }
 0x615   : > { %v13232_v57 = vpop.f32.mrb[30].mxu1 }
 0x616   : > { %v5373_v32 = vpop.f32.mrb[31].mxu1 }
 0x619   : > { %10419 = vmatmul.mubr.msk.bf16.gmra.mrb[136].mxu1 %vm386_vm0, %v5834_v63 }
 0x61a   : > { %10422 = vmatprep.mubr.msk.bf16.mxu1 %vm386_vm0, %v5836_v7 }
 0x61b   : > { %v13238_v25 = vpop.f32.mrb[32].mxu1 }
 0x61c   : > { %v5385_v0 = vpop.f32.mrb[33].mxu1 }
 0x61d   : > { %v10309_v39 = vpop.f32.mrb[34].mxu1 }
 0x61e   : > { %v13240_v5 = vpop.f32.mrb[35].mxu1 }
 0x621   : > { %10423 = vmatmul.mubr.msk.bf16.gmra.mrb[140].mxu1 %vm386_vm0, %v5838_v38 }
 0x622   : > { %10430 = vmatprep.mubr.msk.bf16.mxu1 %vm386_vm0, %v13063_v62 }
 0x623   : > { %v10312_v28 = vpop.f32.mrb[36].mxu1 }
 0x624   : > { %v13246_v50 = vpop.f32.mrb[37].mxu1 }
 0x625   : > { %v13248_v47 = vpop.f32.mrb[38].mxu1 }
 0x626   : > { %v13250_v41 = vpop.f32.mrb[39].mxu1 }
 0x629   : > { %10431 = vmatmul.mubr.msk.bf16.vlgmr.msra.gmra.mrb[144].mxu1 %vm386_vm0, %v13067_v26 }
 0x62a   : > { %10479 = vmatpush3.bf16.msra.mxu1 %v13143_v11  ;;  %10434 = vmatprep.mubr.msk.bf16.mxu1 %vm386_vm0, %v13071_v27 }
 0x62b   : > { %10480 = vmatprep.subr.bf16.mxu1 %v11244_v48  ;;  %v13259_v62 = vpop.f32.mrb[40].mxu1 }
 0x62c   : > { %v13261_v14 = vpop.f32.mrb[41].mxu1 }
 0x62d   : > { %v13263_v52 = vpop.f32.mrb[42].mxu1 }
 0x62e   : > { %10481 = vmatpush3.bf16.msra.mxu1 %v11244_v48  ;;  %v5417_v24 = vpop.f32.mrb[43].mxu1 }
 0x62f   : > { %10530 = vmatprep.subr.bf16.mxu1 %v13257_v13 }
 0x631   : > { %10435 = vmatmul.mubr.msk.bf16.gmra.mrb[148].mxu1 %vm386_vm0, %v13075_v10 }
 0x632   : > { %10438 = vmatprep.mubr.msk.bf16.mxu1 %vm386_vm0, %v13079_v53 }
 0x634   : > { %v13270_v26 = vpop.f32.mrb[44].mxu1 }
 0x635   : > { %v5429_v27 = vpop.f32.mrb[45].mxu1 }
 0x636   : > { %v10321_v11 = vpop.f32.mrb[46].mxu1 }
 0x637   : > { %v13272_v32 = vpop.f32.mrb[47].mxu1 }
 0x639   : > { %10439 = vmatmul.mubr.msk.bf16.gmra.mrb[152].mxu1 %vm386_vm0, %v13083_v55 }
 0x63a   : > { %10442 = vmatprep.mubr.msk.bf16.mxu1 %vm386_vm0, %v13087_v56 }
 0x63c   : > { %v10328_v63 = vpop.f32.mrb[48].mxu1 }
 0x63d   : > { %v5560_v7 = vpop.f32.mrb[49].mxu1 }
 0x63e   : > { %v13279_v51 = vadd.f32 %v5560_v7, %v13009_v33  ;;  %v10329_v10 = vpop.f32.mrb[50].mxu1 }
 0x63f   : > { %v13282_v53 = vadd.f32 %v10329_v10, %v13013_v19  ;;  %v5563_v9 = vpop.f32.mrb[51].mxu1 }
 0x640   : > { %v13285_v0 = vadd.f32 %v5563_v9, %v13017_v35 }
 0x641   : > { %10443 = vmatmul.mubr.msk.bf16.gmra.mrb[156].mxu1 %vm386_vm0, %v13091_v6 }
 0x642   : > { %10446 = vmatprep.mubr.msk.bf16.mxu1 %vm386_vm0, %v13095_v12 }
 0x644   : > { %v10332_v55 = vpop.f32.mrb[52].mxu1 }
 0x645   : > { %v13292_v56 = vadd.f32 %v10332_v55, %v13031_v42  ;;  %v5575_v33 = vpop.f32.mrb[53].mxu1 }
 0x646   : > { %v13295_v39 = vadd.f32 %v5575_v33, %v13033_v4  ;;  %v10333_v19 = vpop.f32.mrb[54].mxu1 }
 0x647   : > { %v13298_v38 = vadd.f32 %v10333_v19, %v13038_v23  ;;  %v5578_v35 = vpop.f32.mrb[55].mxu1  ;;  %v13361_v19 = vld [vmem:[#allocation5 + $0xc8] sm:$0xff] }
 0x649   : > { %10447 = vmatmul.mubr.msk.bf16.gmra.mrb[160].mxu1 %vm386_vm0, %v13099_v15 }
 0x64a   : > { %10450 = vmatprep.mubr.msk.bf16.mxu1 %vm386_vm0, %v13103_v31 }
 0x64c   : > { %v10336_v6 = vpop.f32.mrb[56].mxu1 }
 0x64d   : > { %v13305_v12 = vadd.f32 %v10336_v6, %v13169_v40  ;;  %v5590_v42 = vpop.f32.mrb[57].mxu1 }
 0x64e   : > { %v10337_v28 = vpop.f32.mrb[58].mxu1 }
 0x64f   : > { %v5592_v48 = vpop.f32.mrb[59].mxu1 }
 0x650   : > { %v13308_v4 = vadd.f32 %v5592_v48, %v13173_v61  ;;  %v13378_v48 = vld [vmem:[#allocation5 + $0xd8] sm:$0xff] }
 0x651   : > { %10451 = vmatmul.mubr.msk.bf16.gmra.mrb[164].mxu1 %vm386_vm0, %v13107_v2 }
 0x652   : > { %10454 = vmatprep.mubr.msk.bf16.mxu1 %vm386_vm0, %v13111_v17 }
 0x654   : > { %v10340_v23 = vpop.f32.mrb[60].mxu1 }
 0x655   : > { %v5604_v15 = vpop.f32.mrb[61].mxu1  ;;  %v13382_v23 = vld [vmem:[#allocation5 + $0xe0] sm:$0xff] }
 0x656   : > { %v13315_v31 = vadd.f32 %v5604_v15, %v13180_v37  ;;  %v10341_v24 = vpop.f32.mrb[62].mxu1 }
 0x657   : > { %v13318_v40 = vadd.f32 %v10341_v24, %v13182_v34  ;;  %v5607_v27 = vpop.f32.mrb[63].mxu1  ;;  %v6518_v24 = vld [vmem:[#allocation4 + $0x30] sm:$0xf0] }
 0x658   : > { %v13321_v11 = vadd.f32 %v5607_v27, %v13185_v3 }
 0x659   : > { %10455 = vmatmul.mubr.msk.bf16.gmra.mrb[168].mxu1 %vm386_vm0, %v13115_v36 }
 0x65a   : > { %10458 = vmatprep.mubr.msk.bf16.mxu1 %vm386_vm0, %v13119_v22 }
 0x65c   : > { %v10344_v2 = vpop.f32.mrb[64].mxu1 }
 0x65d   : > { %v13328_v17 = vadd.f32 %v10344_v2, %v13192_v45  ;;  %v5619_v61 = vpop.f32.mrb[65].mxu1 }
 0x65e   : > { %v13331_v37 = vadd.f32 %v5619_v61, %v13195_v54  ;;  %v10345_v34 = vpop.f32.mrb[66].mxu1 }
 0x65f   : > { %v13334_v63 = vadd.f32 %v10345_v34, %v13198_v58  ;;  %v5622_v3 = vpop.f32.mrb[67].mxu1  ;;  %v13348_v58 = vld [vmem:[#allocation5 + $0xc0] sm:$0xff]  ;;  %v6573_v34 = vrot.slane %v6518_v24, 4  ;;  %v6522_v24 = vld [vmem:[#allocation4 + $0x50] sm:$0xff] }
 0x661   : > { %10459 = vmatmul.mubr.msk.bf16.gmra.mrb[172].mxu1 %vm386_vm0, %v13123_v1 }
 0x662   : > { %10462 = vmatprep.mubr.msk.bf16.mxu1 %vm386_vm0, %v13127_v30 }
 0x664   : > { %v10348_v36 = vpop.f32.mrb[68].mxu1 }
 0x665   : > { %v13341_v22 = vadd.f32 %v10348_v36, %v13204_v49  ;;  %v5634_v45 = vpop.f32.mrb[69].mxu1  ;;  %v13392_v36 = vld [vmem:[#allocation5 + $0xe8] sm:$0xff] }
 0x666   : > { %v10349_v7 = vpop.f32.mrb[70].mxu1 }
 0x667   : > { %v5636_v10 = vpop.f32.mrb[71].mxu1  ;;  %v6520_v7 = vld [vmem:[#allocation4 + $0x40] sm:$0xff] }
 0x668   : > { %v13344_v54 = vadd.f32 %v5636_v10, %v13208_v20 }
 0x669   : > { %10463 = vmatmul.mubr.msk.bf16.gmra.mrb[176].mxu1 %vm386_vm0, %v13134_v60  ;;  %v13365_v60 = vld [vmem:[#allocation5 + $0xd0] sm:$0xff] }
 0x66a   : > { %10466 = vmatprep.mubr.msk.bf16.mxu1 %vm386_vm0, %v13348_v58 }
 0x66c   : > { %v10352_v1 = vpop.f32.mrb[72].mxu1 }
 0x66d   : > { %v5648_v30 = vpop.f32.mrb[73].mxu1  ;;  %v6576_v1 = vrot.slane %v6520_v7, 4 }
 0x66e   : > { %v13353_v9 = vadd.f32 %v5648_v30, %v13215_v29  ;;  %v10353_v49 = vpop.f32.mrb[74].mxu1 }
 0x66f   : > { %v13356_v55 = vadd.f32 %v10353_v49, %v13218_v21  ;;  %v5651_v33 = vpop.f32.mrb[75].mxu1 }
 0x670   : > { %v13359_v20 = vadd.f32 %v5651_v33, %v13220_v44 }
 0x671   : > { %10467 = vmatmul.mubr.msk.bf16.gmra.mrb[180].mxu1 %vm386_vm0, %v13361_v19 }
 0x672   : > { %10470 = vmatprep.mubr.msk.bf16.mxu1 %vm386_vm0, %v13365_v60 }
 0x674   : > { %v10356_v29 = vpop.f32.mrb[76].mxu1 }
 0x675   : > { %v13370_v35 = vadd.f32 %v10356_v29, %v13226_v16  ;;  %v5663_v21 = vpop.f32.mrb[77].mxu1  ;;  %v6519_v16 = vld [vmem:[#allocation4 + $0x38] sm:$0xff] }
 0x676   : > { %v13373_v6 = vadd.f32 %v5663_v21, %v13229_v18  ;;  %v10357_v44 = vpop.f32.mrb[78].mxu1 }
 0x677   : > { %v13376_v42 = vadd.f32 %v10357_v44, %v13232_v57  ;;  %v5666_v28 = vpop.f32.mrb[79].mxu1  ;;  %v6574_v57 = vrot.slane %v6519_v16, 4  ;;  %v11246_v44 = vld [vmem:[#allocation12 + $0x58] sm:$0xff]  }
 0x679   : > { %10471 = vmatmul.mubr.msk.bf16.gmra.mrb[184].mxu1 %vm386_vm0, %v13378_v48  ;;  %v6575_v45 = vsel %vm773_vm3, %v6573_v34, %v6574_v57  ;;  %v6577_v16 = vsel %vm773_vm3, %v6574_v57, %v6576_v1 }
 0x67a   : > { %10474 = vmatprep.mubr.msk.bf16.mxu1 %vm386_vm0, %v13382_v23 }
 0x67c   : > { %v10360_v15 = vpop.f32.mrb[80].mxu1 }
 0x67d   : > { %v13387_v18 = vadd.f32 %v10360_v15, %v13238_v25  ;;  %v5678_v27 = vpop.f32.mrb[81].mxu1  ;;  %v6521_v25 = vld [vmem:[#allocation4 + $0x48] sm:$0xff] }
 0x67e   : > { %v10361_v2 = vpop.f32.mrb[82].mxu1  ;;  %v6578_v49 = vrot.slane %v6521_v25, 4 }
 0x67f   : > { %v5680_v61 = vpop.f32.mrb[83].mxu1  ;;  %v6580_v2 = vrot.slane %v6522_v24, 4 }
 0x680   : > { %v13390_v3 = vadd.f32 %v5680_v61, %v13240_v5  ;;  %v6579_v15 = vsel %vm773_vm3, %v6576_v1, %v6578_v49  ;;  %v6525_v1 = vld [vmem:[#allocation4 + $0x68] sm:$0xff] }
 0x681   : > { %10475 = vmatmul.mubr.msk.bf16.gmra.mrb[188].mxu1 %vm386_vm0, %v13392_v36  ;;  %v6581_v25 = vsel %vm773_vm3, %v6578_v49, %v6580_v2 }
 0x682   : > { %10482 = vmatprep.mubr.msk.bf16.mxu1 %vm386_vm0, %v6575_v45 }
 0x684   : > { %v10364_v10 = vpop.f32.mrb[84].mxu1 }
 0x685   : > { %v5692_v30 = vpop.f32.mrb[85].mxu1  ;;  %v6524_v10 = vld [vmem:[#allocation4 + $0x60] sm:$0xff] }
 0x686   : > { %v13399_v33 = vadd.f32 %v5692_v30, %v13246_v50  ;;  %v10365_v5 = vpop.f32.mrb[86].mxu1  ;;  %v6523_v50 = vld [vmem:[#allocation4 + $0x58] sm:$0xff]  ;;  %v6584_v30 = vrot.slane %v6524_v10, 4 }
 0x687   : > { %v13402_v29 = vadd.f32 %v10365_v5, %v13248_v47  ;;  %v5695_v21 = vpop.f32.mrb[87].mxu1  ;;  %v13412_v47 = vld [vmem:[#allocation12 + $0x60] sm:$0xff]   ;;  %v6582_v57 = vrot.slane %v6523_v50, 4  ;;  %v6526_v50 = vld [vmem:[#allocation4 + $0x70] sm:$0xff] }
 0x688   : > { %v13405_v28 = vadd.f32 %v5695_v21, %v13250_v41  ;;  %v13431_v21 = vrot.slane %v6525_v1, 4 }
 0x689   : > { %10483 = vmatmul.mubr.msk.bf16.vlgmr.msra.gmra.mrb[192].mxu1 %vm386_vm0, %v6577_v16 }
 0x68a   : > { %10531 = vmatpush3.bf16.msra.mxu1 %v13257_v13  ;;  %10486 = vmatprep.mubr.msk.bf16.mxu1 %vm386_vm0, %v6579_v15  ;;  %14679 = vst [vmem:[#allocation24_spill] sm:$0xff] %v13431_v21  ;;  %v6585_v15 = vsel %vm773_vm3, %v6582_v57, %v6584_v30  ;;  %v6587_v24 = vsel %vm773_vm3, %v6584_v30, %v13431_v21 }
 0x68b   : > { %10532 = vmatprep.subr.bf16.mxu1 %v11246_v44 }
 0x68c   : > { %v10368_v27 = vpop.f32.mrb[88].mxu1 }
 0x68d   : > { %v13415_v41 = vadd.f32 %v10368_v27, %v13259_v62  ;;  %v5707_v61 = vpop.f32.mrb[89].mxu1  ;;  %v6583_v62 = vsel %vm773_vm3, %v6580_v2, %v6582_v57  ;;  %v6588_v2 = vrot.slane %v6526_v50, 4 }
 0x68e   : > { %v13418_v34 = vadd.f32 %v5707_v61, %v13261_v14  ;;  %v10369_v45 = vpop.f32.mrb[90].mxu1  ;;  %10533 = vmatpush3.bf16.msra.mxu1 %v11246_v44 }
 0x68f   : > { %v13421_v13 = vadd.f32 %v10369_v45, %v13263_v52  ;;  %v5710_v7 = vpop.f32.mrb[91].mxu1  ;;  %10582 = vmatprep.subr.bf16.mxu1 %v13412_v47  ;;  %v13452_v10 = vsel %vm773_vm3, %v13431_v21, %v6588_v2  ;;  %v13743_v21 = vld [vmem:[#allocation4 + $0x108] sm:$0xff] }
 0x690   : > { %14680 = vst [vmem:[#allocation25_spill] sm:$0xff] %v13452_v10  ;;  %14707 = vst [vmem:[#allocation47_spill] sm:$0xff] %v13743_v21 }
 0x691   : > { %10487 = vmatmul.mubr.msk.bf16.gmra.mrb[196].mxu1 %vm386_vm0, %v6581_v25 }
 0x692   : > { %10490 = vmatprep.mubr.msk.bf16.mxu1 %vm386_vm0, %v6583_v62 }
 0x694   : > { %v10372_v14 = vpop.f32.mrb[92].mxu1 }
 0x695   : > { %v13429_v5 = vadd.f32 %v10372_v14, %v13270_v26  ;;  %v5722_v52 = vpop.f32.mrb[93].mxu1  ;;  %v6527_v26 = vld [vmem:[#allocation4 + $0x78] sm:$0xff] }
 0x696   : > { %v10373_v44 = vpop.f32.mrb[94].mxu1  ;;  %v6590_v45 = vrot.slane %v6527_v26, 4 }
 0x697   : > { %v5724_v16 = vpop.f32.mrb[95].mxu1 }
 0x698   : > { %v13434_v49 = vadd.f32 %v5724_v16, %v13272_v32  ;;  %v13457_v1 = vsel %vm773_vm3, %v6588_v2, %v6590_v45 }
 0x699   : > { %10491 = vmatmul.mubr.msk.bf16.gmra.mrb[200].mxu1 %vm386_vm0, %v6585_v15  ;;  %14681 = vst [vmem:[#allocation20_spill] sm:$0xff] %v13457_v1 }
 0x69a   : > { %10494 = vmatprep.mubr.msk.bf16.mxu1 %vm386_vm0, %v6587_v24 }
 0x69c   : > { %v10380_v27 = vpop.f32.mrb[96].mxu1 }
 0x69d   : > { %v5957_v61 = vpop.f32.mrb[97].mxu1 }
 0x69e   : > { %v13442_v7 = vadd.f32 %v5957_v61, %v13279_v51  ;;  %v10381_v32 = vpop.f32.mrb[98].mxu1  ;;  %v6528_v51 = vld [vmem:[#allocation4 + $0x80] sm:$0xff] }
 0x69f   : > { %v13445_v25 = vadd.f32 %v10381_v32, %v13282_v53  ;;  %v5960_v57 = vpop.f32.mrb[99].mxu1  ;;  %v6529_v53 = vld [vmem:[#allocation4 + $0x88] sm:$0xff]  ;;  %v6592_v30 = vrot.slane %v6528_v51, 4 }
 0x6a0   : > { %v13448_v62 = vadd.f32 %v5960_v57, %v13285_v0  ;;  %v6594_v44 = vrot.slane %v6529_v53, 4 }
 0x6a1   : > { %10495 = vmatmul.mubr.msk.bf16.gmra.mrb[204].mxu1 %vm386_vm0, %v13452_v10  ;;  %v13471_v26 = vsel %vm773_vm3, %v6590_v45, %v6592_v30 }
 0x6a2   : > { %10498 = vmatprep.mubr.msk.bf16.mxu1 %vm386_vm0, %v13457_v1  ;;  %14682 = vst [vmem:[#allocation21_spill] sm:$0xff] %v13471_v26  ;;  %v13476_v27 = vsel %vm773_vm3, %v6592_v30, %v6594_v44 }
 0x6a3   : > { %14683 = vst [vmem:[#allocation22_spill] sm:$0xff] %v13476_v27 }
 0x6a4   : > { %v10384_v14 = vpop.f32.mrb[100].mxu1 }
 0x6a5   : > { %v13462_v0 = vadd.f32 %v10384_v14, %v13292_v56  ;;  %v5972_v52 = vpop.f32.mrb[101].mxu1  ;;  %v6530_v56 = vld [vmem:[#allocation4 + $0x90] sm:$0xff] }
 0x6a6   : > { %v13465_v16 = vadd.f32 %v5972_v52, %v13295_v39  ;;  %v10385_v15 = vpop.f32.mrb[102].mxu1  ;;  %v6531_v39 = vld [vmem:[#allocation4 + $0x98] sm:$0xff]  ;;  %v6596_v61 = vrot.slane %v6530_v56, 4  ;;  %v6532_v52 = vld [vmem:[#allocation4 + $0xa0] sm:$0xff] }
 0x6a7   : > { %v13468_v24 = vadd.f32 %v10385_v15, %v13298_v38  ;;  %v5975_v50 = vpop.f32.mrb[103].mxu1  ;;  %v6598_v57 = vrot.slane %v6531_v39, 4 }
 0x6a8   : > { %v13487_v14 = vsel %vm773_vm3, %v6594_v44, %v6596_v61  ;;  %v6600_v50 = vrot.slane %v6532_v52, 4  ;;  %v6534_v52 = vld [vmem:[#allocation4 + $0xb0] sm:$0xff] }
 0x6a9   : > { %10499 = vmatmul.mubr.msk.bf16.gmra.mrb[208].mxu1 %vm386_vm0, %v13471_v26  ;;  %14684 = vst [vmem:[#allocation23_spill] sm:$0xff] %v13487_v14  ;;  %v13492_v30 = vsel %vm773_vm3, %v6596_v61, %v6598_v57  ;;  %v13721_v26 = vld [vmem:[#allocation5 + $0xa0] sm:$0xff] }
 0x6aa   : > { %10502 = vmatprep.mubr.msk.bf16.mxu1 %vm386_vm0, %v13476_v27  ;;  %14685 = vst [vmem:[#allocation26_spill] sm:$0xff] %v13492_v30 }
 0x6ac   : > { %v10388_v2 = vpop.f32.mrb[104].mxu1 }
 0x6ad   : > { %v13481_v38 = vadd.f32 %v10388_v2, %v13305_v12  ;;  %v5987_v32 = vpop.f32.mrb[105].mxu1  ;;  %v6533_v12 = vld [vmem:[#allocation4 + $0xa8] sm:$0xff] }
 0x6ae   : > { %v10389_v45 = vpop.f32.mrb[106].mxu1  ;;  %v6602_v39 = vrot.slane %v6533_v12, 4  ;;  %v6604_v12 = vrot.slane %v6534_v52, 4 }
 0x6af   : > { %v5989_v51 = vpop.f32.mrb[107].mxu1  ;;  %v13506_v45 = vsel %vm773_vm3, %v6598_v57, %v6600_v50 }
 0x6b0   : > { %v13484_v53 = vadd.f32 %v5989_v51, %v13308_v4  ;;  %14686 = vst [vmem:[#allocation27_spill] sm:$0xff] %v13506_v45  ;;  %v13511_v51 = vsel %vm773_vm3, %v6600_v50, %v6602_v39  ;;  %v13525_v8 = vsel %vm773_vm3, %v6602_v39, %v6604_v12 }
 0x6b1   : > { %10503 = vmatmul.mubr.msk.bf16.gmra.mrb[212].mxu1 %vm386_vm0, %v13487_v14  ;;  %14687 = vst [vmem:[#allocation28_spill] sm:$0xff] %v13511_v51  ;;  %14688 = vst [vmem:[#allocation29_spill] sm:$0xff] %v13525_v8  ;;  %v13697_v14 = vld [vmem:[#allocation5 + $0x90] sm:$0xff] }
 0x6b2   : > { %10506 = vmatprep.mubr.msk.bf16.mxu1 %vm386_vm0, %v13492_v30 }
 0x6b4   : > { %v10392_v15 = vpop.f32.mrb[108].mxu1 }
 0x6b5   : > { %v6001_v56 = vpop.f32.mrb[109].mxu1 }
 0x6b6   : > { %v13497_v4 = vadd.f32 %v6001_v56, %v13315_v31  ;;  %v10393_v44 = vpop.f32.mrb[110].mxu1  ;;  %v6535_v31 = vld [vmem:[#allocation4 + $0xb8] sm:$0xff] }
 0x6b7   : > { %v13500_v2 = vadd.f32 %v10393_v44, %v13318_v40  ;;  %v6004_v32 = vpop.f32.mrb[111].mxu1  ;;  %v6606_v56 = vrot.slane %v6535_v31, 4 }
 0x6b8   : > { %v13503_v61 = vadd.f32 %v6004_v32, %v13321_v11 }
 0x6b9   : > { %10507 = vmatmul.mubr.msk.bf16.gmra.mrb[216].mxu1 %vm386_vm0, %v13506_v45  ;;  %v13530_v52 = vsel %vm773_vm3, %v6604_v12, %v6606_v56 }
 0x6ba   : > { %10510 = vmatprep.mubr.msk.bf16.mxu1 %vm386_vm0, %v13511_v51  ;;  %14689 = vst [vmem:[#allocation30_spill] sm:$0xff] %v13530_v52 }
 0x6bc   : > { %v10396_v40 = vpop.f32.mrb[112].mxu1 }
 0x6bd   : > { %v13516_v15 = vadd.f32 %v10396_v40, %v13328_v17  ;;  %v6016_v11 = vpop.f32.mrb[113].mxu1  ;;  %v6536_v17 = vld [vmem:[#allocation4 + $0xc0] sm:$0xff] }
 0x6be   : > { %v13519_v57 = vadd.f32 %v6016_v11, %v13331_v37  ;;  %v10397_v44 = vpop.f32.mrb[114].mxu1  ;;  %v6537_v37 = vld [vmem:[#allocation4 + $0xc8] sm:$0xff]  ;;  %v6608_v40 = vrot.slane %v6536_v17, 4  ;;  %v6538_v17 = vld [vmem:[#allocation4 + $0xd0] sm:$0xff] }
 0x6bf   : > { %v13522_v32 = vadd.f32 %v10397_v44, %v13334_v63  ;;  %v6019_v50 = vpop.f32.mrb[115].mxu1  ;;  %v6610_v44 = vrot.slane %v6537_v37, 4 }
 0x6c0   : > { %v13541_v12 = vsel %vm773_vm3, %v6606_v56, %v6608_v40 }
 0x6c1   : > { %10511 = vmatmul.mubr.msk.bf16.gmra.mrb[220].mxu1 %vm386_vm0, %v13525_v8  ;;  %14690 = vst [vmem:[#allocation31_spill] sm:$0xff] %v13541_v12 }
 0x6c2   : > { %10514 = vmatprep.mubr.msk.bf16.mxu1 %vm386_vm0, %v13530_v52  ;;  %v13546_v52 = vsel %vm773_vm3, %v6608_v40, %v6610_v44 }
 0x6c3   : > { %14691 = vst [vmem:[#allocation32_spill] sm:$0xff] %v13546_v52 }
 0x6c4   : > { %v10400_v31 = vpop.f32.mrb[116].mxu1 }
 0x6c5   : > { %v13535_v63 = vadd.f32 %v10400_v31, %v13341_v22  ;;  %v6031_v11 = vpop.f32.mrb[117].mxu1  ;;  %v6539_v22 = vld [vmem:[#allocation4 + $0xd8] sm:$0xff]  ;;  %v6612_v31 = vrot.slane %v6538_v17, 4 }
 0x6c6   : > { %v10401_v39 = vpop.f32.mrb[118].mxu1 }
 0x6c7   : > { %v6033_v50 = vpop.f32.mrb[119].mxu1  ;;  %v6614_v39 = vrot.slane %v6539_v22, 4  ;;  %v13560_v8 = vsel %vm773_vm3, %v6610_v44, %v6612_v31  ;;  %v6540_v22 = vld [vmem:[#allocation4 + $0xe0] sm:$0xff] }
 0x6c8   : > { %v13538_v59 = vadd.f32 %v6033_v50, %v13344_v54  ;;  %14692 = vst [vmem:[#allocation33_spill] sm:$0xff] %v13560_v8 }
 0x6c9   : > { %10515 = vmatmul.mubr.msk.bf16.gmra.mrb[224].mxu1 %vm386_vm0, %v13541_v12  ;;  %v13565_v17 = vsel %vm773_vm3, %v6612_v31, %v6614_v39 }
 0x6ca   : > { %10518 = vmatprep.mubr.msk.bf16.mxu1 %vm386_vm0, %v13546_v52  ;;  %14693 = vst [vmem:[#allocation34_spill] sm:$0xff] %v13565_v17 }
 0x6cc   : > { %v10404_v37 = vpop.f32.mrb[120].mxu1 }
 0x6cd   : > { %v6045_v11 = vpop.f32.mrb[121].mxu1  ;;  %v6616_v37 = vrot.slane %v6540_v22, 4  ;;  %v6542_v22 = vld [vmem:[#allocation4 + $0xf0] sm:$0xf] }
 0x6ce   : > { %v13551_v54 = vadd.f32 %v6045_v11, %v13353_v9  ;;  %v10405_v56 = vpop.f32.mrb[122].mxu1  ;;  %v6541_v9 = vld [vmem:[#allocation4 + $0xe8] sm:$0xff] }
 0x6cf   : > { %v13554_v50 = vadd.f32 %v10405_v56, %v13356_v55  ;;  %v6048_v12 = vpop.f32.mrb[123].mxu1  ;;  %v13581_v52 = vsel %vm773_vm3, %v6614_v39, %v6616_v37 }
 0x6d0   : > { %v13557_v40 = vadd.f32 %v6048_v12, %v13359_v20  ;;  %v13572_v12 = vrot.slane %v6541_v9, 4  ;;  %14695 = vst [vmem:[#allocation36_spill] sm:$0xff] %v13581_v52 }
 0x6d1   : > { %10519 = vmatmul.mubr.msk.bf16.gmra.mrb[228].mxu1 %vm386_vm0, %v13560_v8 }
 0x6d2   : > { %10522 = vmatprep.mubr.msk.bf16.mxu1 %vm386_vm0, %v13565_v17  ;;  %14694 = vst [vmem:[#allocation35_spill] sm:$0xff] %v13572_v12 }
 0x6d4   : > { %v10408_v55 = vpop.f32.mrb[124].mxu1 }
 0x6d5   : > { %v13570_v11 = vadd.f32 %v10408_v55, %v13370_v35  ;;  %v6060_v20 = vpop.f32.mrb[125].mxu1  ;;  %v13587_v35 = vsel %vm773_vm3, %v6616_v37, %v13572_v12  ;;  %v6620_v55 = vrot.slane %v6542_v22, 4  ;;  %v6949_v22 = vld [vmem:[#allocation5 + $0x40] sm:$0xff] }
 0x6d6   : > { %v13575_v44 = vadd.f32 %v6060_v20, %v13373_v6  ;;  %v10409_v56 = vpop.f32.mrb[126].mxu1  ;;  %14696 = vst [vmem:[#allocation37_spill] sm:$0xff] %v13587_v35  ;;  %v6948_v6 = vld [vmem:[#allocation5 + $0x38] sm:$0xff] }
 0x6d7   : > { %v13578_v31 = vadd.f32 %v10409_v56, %v13376_v42  ;;  %v6063_v8 = vpop.f32.mrb[127].mxu1  ;;  %v6947_v42 = vld [vmem:[#allocation5 + $0x30] sm:$0xf0]  ;;  %v6621_v37 = vsel %vm773_vm3, %v13572_v12, %v6620_v55  ;;  %v11248_v12 = vld [vmem:[#allocation12 + $0x68] sm:$0xff]  }
 0x6d8   : > { %v7003_v8 = vrot.slane %v6948_v6, 4  ;;  %v6950_v6 = vld [vmem:[#allocation5 + $0x48] sm:$0xff] }
 0x6d9   : > { %10523 = vmatmul.mubr.msk.bf16.gmra.mrb[232].mxu1 %vm386_vm0, %v13581_v52  ;;  %v7002_v52 = vrot.slane %v6947_v42, 4 }
 0x6da   : > { %10526 = vmatprep.mubr.msk.bf16.mxu1 %vm386_vm0, %v13587_v35 }
 0x6db   : > { %v7004_v35 = vsel %vm773_vm3, %v7002_v52, %v7003_v8 }
 0x6dc   : > { %v10412_v9 = vpop.f32.mrb[128].mxu1 }
 0x6dd   : > { %v6075_v20 = vpop.f32.mrb[129].mxu1  ;;  %v13592_v39 = vadd.f32 %v10412_v9, %v13387_v18  ;;  %v7005_v18 = vrot.slane %v6949_v22, 4  ;;  %v13616_v22 = vld [vmem:[#allocation12 + $0x70] sm:$0xff]  }
 0x6de   : > { %v10413_v56 = vpop.f32.mrb[130].mxu1 }
 0x6df   : > { %v6077_v17 = vpop.f32.mrb[131].mxu1  ;;  %v7007_v56 = vrot.slane %v6950_v6, 4 }
 0x6e0   : > { %v13597_v51 = vadd.f32 %v6077_v17, %v13390_v3  ;;  %v7006_v17 = vsel %vm773_vm3, %v7003_v8, %v7005_v18 }
 0x6e1   : > { %10527 = vmatmul.mubr.msk.bf16.gmra.mrb[236].mxu1 %vm386_vm0, %v6621_v37  ;;  %v6951_v37 = vld [vmem:[#allocation5 + $0x50] sm:$0xff] }
 0x6e2   : > { %10534 = vmatprep.mubr.msk.bf16.mxu1 %vm386_vm0, %v7004_v35  ;;  %v7008_v35 = vsel %vm773_vm3, %v7005_v18, %v7007_v56 }
 0x6e4   : > { %v10416_v20 = vpop.f32.mrb[132].mxu1 }
 0x6e5   : > { %v6089_v9 = vpop.f32.mrb[133].mxu1 }
 0x6e6   : > { %v10417_v45 = vpop.f32.mrb[134].mxu1  ;;  %v13603_v42 = vadd.f32 %v6089_v9, %v13399_v33  ;;  %v6952_v33 = vld [vmem:[#allocation5 + $0x58] sm:$0xff] }
 0x6e7   : > { %v6092_v55 = vpop.f32.mrb[135].mxu1  ;;  %v13606_v3 = vadd.f32 %v10417_v45, %v13402_v29  ;;  %v7009_v45 = vrot.slane %v6951_v37, 4  ;;  %v7011_v8 = vrot.slane %v6952_v33, 4 }
 0x6e8   : > { %v13610_v52 = vadd.f32 %v6092_v55, %v13405_v28 }
 0x6e9   : > { %10535 = vmatmul.mubr.msk.bf16.vlgmr.msra.gmra.mrb[240].mxu1 %vm386_vm0, %v7006_v17  ;;  %v7010_v55 = vsel %vm773_vm3, %v7007_v56, %v7009_v45  ;;  %v7012_v17 = vsel %vm773_vm3, %v7009_v45, %v7011_v8 }
 0x6ea   : > { %10583 = vmatpush3.bf16.msra.mxu1 %v13412_v47  ;;  %10538 = vmatprep.mubr.msk.bf16.mxu1 %vm386_vm0, %v7008_v35  ;;  %v13631_v35 = vld [vmem:[#allocation5 + $0x60] sm:$0xff] }
 0x6eb   : > { %10584 = vmatprep.subr.bf16.mxu1 %v11248_v12 }
 0x6ec   : > { %v10420_v29 = vpop.f32.mrb[136].mxu1 }
 0x6ed   : > { %v6104_v6 = vpop.f32.mrb[137].mxu1  ;;  %v13619_v28 = vadd.f32 %v10420_v29, %v13415_v41  ;;  %v13634_v41 = vld [vmem:[#allocation5 + $0x68] sm:$0xff] }
 0x6ee   : > { %v10421_v20 = vpop.f32.mrb[138].mxu1  ;;  %10585 = vmatpush3.bf16.msra.mxu1 %v11248_v12  ;;  %v13622_v18 = vadd.f32 %v6104_v6, %v13418_v34  ;;  %v7013_v12 = vrot.slane %v13631_v35, 4  ;;  %v13638_v33 = vrot.slane %v13634_v41, 4 }
 0x6ef   : > { %v6107_v9 = vpop.f32.mrb[139].mxu1  ;;  %10634 = vmatprep.subr.bf16.mxu1 %v13616_v22  ;;  %v13626_v47 = vadd.f32 %v10421_v20, %v13421_v13 }
 0x6f0   : > { %14697 = vst [vmem:[#allocation38_spill] sm:$0xff] %v13638_v33  ;;  %v7014_v45 = vsel %vm773_vm3, %v7011_v8, %v7013_v12  ;;  %v7016_v20 = vsel %vm773_vm3, %v7013_v12, %v13638_v33  ;;  %v13650_v9 = vld [vmem:[#allocation5 + $0x70] sm:$0xff] }
 0x6f1   : > { %10539 = vmatmul.mubr.msk.bf16.gmra.mrb[244].mxu1 %vm386_vm0, %v7010_v55  ;;  %v13653_v55 = vld [vmem:[#allocation5 + $0x78] sm:$0xff] }
 0x6f2   : > { %10542 = vmatprep.mubr.msk.bf16.mxu1 %vm386_vm0, %v7012_v17  ;;  %v7017_v17 = vrot.slane %v13650_v9, 4  ;;  %v7019_v8 = vrot.slane %v13653_v55, 4 }
 0x6f4   : > { %v10424_v34 = vpop.f32.mrb[140].mxu1  ;;  %v13665_v12 = vsel %vm773_vm3, %v13638_v33, %v7017_v17 }
 0x6f5   : > { %v6119_v37 = vpop.f32.mrb[141].mxu1  ;;  %v13641_v13 = vadd.f32 %v10424_v34, %v13429_v5  ;;  %14698 = vst [vmem:[#allocation39_spill] sm:$0xff] %v13665_v12 }
 0x6f6   : > { %v10425_v56 = vpop.f32.mrb[142].mxu1 }
 0x6f7   : > { %v6121_v29 = vpop.f32.mrb[143].mxu1 }
 0x6f8   : > { %v13645_v6 = vadd.f32 %v6121_v29, %v13434_v49 }
 0x6f9   : > { %10543 = vmatmul.mubr.msk.bf16.gmra.mrb[248].mxu1 %vm386_vm0, %v7014_v45 }
 0x6fa   : > { %10546 = vmatprep.mubr.msk.bf16.mxu1 %vm386_vm0, %v7016_v20  ;;  %v13672_v20 = vld [vmem:[#allocation5 + $0x80] sm:$0xff] }
 0x6fc   : > { %v10432_v5 = vpop.f32.mrb[144].mxu1 }
 0x6fd   : > { %v6311_v34 = vpop.f32.mrb[145].mxu1  ;;  %v13675_v5 = vsel %vm773_vm3, %v7017_v17, %v7019_v8 }
 0x6fe   : > { %v10433_v37 = vpop.f32.mrb[146].mxu1  ;;  %v13658_v49 = vadd.f32 %v6311_v34, %v13442_v7  ;;  %14699 = vst [vmem:[#allocation40_spill] sm:$0xff] %v13675_v5  ;;  %v13679_v7 = vld [vmem:[#allocation5 + $0x88] sm:$0xff] }
 0x6ff   : > { %v6314_v56 = vpop.f32.mrb[147].mxu1  ;;  %v13661_v29 = vadd.f32 %v10433_v37, %v13445_v25  ;;  %v7021_v25 = vrot.slane %v13672_v20, 4 }
 0x700   : > { %v13668_v45 = vadd.f32 %v6314_v56, %v13448_v62  ;;  %v7023_v62 = vrot.slane %v13679_v7, 4 }
 0x701   : > { %10547 = vmatmul.mubr.msk.bf16.gmra.mrb[252].mxu1 %vm386_vm0, %v13665_v12 }
 0x702   : > { %10550 = vmatprep.mubr.msk.bf16.mxu1 %vm386_vm0, %v13675_v5  ;;  %v13693_v5 = vsel %vm773_vm3, %v7019_v8, %v7021_v25  ;;  %v13700_v27 = vsel %vm773_vm3, %v7021_v25, %v7023_v62 }
 0x703   : > { %14700 = vst [vmem:[#allocation41_spill] sm:$0xff] %v13693_v5  ;;  %14701 = vst [vmem:[#allocation42_spill] sm:$0xff] %v13700_v27 }
 0x704   : > { %v10436_v34 = vpop.f32.mrb[148].mxu1 }
 0x705   : > { %v6326_v37 = vpop.f32.mrb[149].mxu1  ;;  %v13684_v56 = vadd.f32 %v10436_v34, %v13462_v0  ;;  %v13704_v0 = vld [vmem:[#allocation5 + $0x98] sm:$0xff] }
 0x706   : > { %v10437_v12 = vpop.f32.mrb[150].mxu1  ;;  %v13687_v33 = vadd.f32 %v6326_v37, %v13465_v16  ;;  %v7025_v16 = vrot.slane %v13697_v14, 4  ;;  %v7027_v8 = vrot.slane %v13704_v0, 4 }
 0x707   : > { %v6329_v17 = vpop.f32.mrb[151].mxu1  ;;  %v13690_v30 = vadd.f32 %v10437_v12, %v13468_v24 }
 0x709   : > { %10551 = vmatmul.mubr.msk.bf16.gmra.mrb[0].mxu1 %vm386_vm0, %v13693_v5  ;;  %v13712_v5 = vsel %vm773_vm3, %v7023_v62, %v7025_v16  ;;  %v13729_v62 = vld [vmem:[#allocation5 + $0xa8] sm:$0xff] }
 0x70a   : > { %10554 = vmatprep.mubr.msk.bf16.mxu1 %vm386_vm0, %v13700_v27  ;;  %14702 = vst [vmem:[#allocation43_spill] sm:$0xff] %v13712_v5  ;;  %v13717_v27 = vld [vmem:[#allocation4 + $0x100] sm:$0xff] }
 0x70b   : > { %14704 = vst [vmem:[#allocation45_spill] sm:$0xff] %v13717_v27 }
 0x70c   : > { %v10440_v24 = vpop.f32.mrb[152].mxu1 }
 0x70d   : > { %v6341_v12 = vpop.f32.mrb[153].mxu1  ;;  %v13709_v34 = vadd.f32 %v10440_v24, %v13481_v38  ;;  %v4933_v38 = vrot.slane %v13717_v27, 2 }
 0x70e   : > { %v10441_v37 = vpop.f32.mrb[154].mxu1  ;;  %v13724_v12 = vsel %vm773_vm3, %v7025_v16, %v7027_v8  ;;  %v7031_v16 = vrot.slane %v13729_v62, 4 }
 0x70f   : > { %v6343_v17 = vpop.f32.mrb[155].mxu1  ;;  %14705 = vst [vmem:[#allocation46_spill] sm:$0xff] %v13724_v12  ;;  %v7029_v37 = vrot.slane %v13721_v26, 4 }
 0x710   : > { %v13715_v25 = vadd.f32 %v6343_v17, %v13484_v53  ;;  %v14706_v53 = vrot.slane %v13036_v43, 2  ;;  %v13745_v43 = vld [vmem:[#allocation4 + $0x110] sm:$0xff] }
 0x711   : > { %10555 = vmatmul.mubr.msk.bf16.gmra.mrb[4].mxu1 %vm386_vm0, %v13712_v5  ;;  %14708 = vst [vmem:[#allocation48_spill] sm:$0xff] %v13745_v43 }
 0x712   : > { %14703 = vst [vmem:[#allocation44_spill] sm:$0xff] %v13715_v25  ;;  %10558 = vmatprep.mubr.msk.bf16.mxu1 %vm386_vm0, %v13724_v12  ;;  %v4934_v24 = vsel %vm541_vm4, %v14706_v53, %v4933_v38  ;;  %v13748_v53 = vsel %vm773_vm3, %v7027_v8, %v7029_v37  ;;  %v4937_v25 = vrot.slane %v13745_v43, 2 }
 0x713   : > { %5011 = vst.msk [vmem:[#allocation5 + $0xf8] sm:$0xff] %vm386_vm0, %v4934_v24  ;;  %14709 = vst [vmem:[#allocation49_spill] sm:$0xff] %v13748_v53 }
 0x714   : > { %v10444_v17 = vpop.f32.mrb[156].mxu1 }
 0x715   : > { %v6355_v5 = vpop.f32.mrb[157].mxu1  ;;  %v4935_v17 = vrot.slane %v13743_v21, 2 }
 0x716   : > { %v10445_v1 = vpop.f32.mrb[158].mxu1  ;;  %v13738_v27 = vadd.f32 %v6355_v5, %v13497_v4  ;;  %v13757_v4 = vld [vmem:[#allocation5 + $0xb0] sm:$0xff] }
 0x717   : > { %v6358_v10 = vpop.f32.mrb[159].mxu1  ;;  %v13741_v12 = vadd.f32 %v10445_v1, %v13500_v2  ;;  %v13760_v1 = vsel %vm773_vm3, %v7029_v37, %v7031_v16  ;;  %v13764_v2 = vld [vmem:[#allocation5 + $0xb8] sm:$0xff]  ;;  %v7033_v5 = vrot.slane %v13757_v4, 4 }
 0x718   : > { %v13751_v24 = vadd.f32 %v6358_v10, %v13503_v61  ;;  %14710 = vst [vmem:[#allocation50_spill] sm:$0xff] %v13760_v1  ;;  %v4936_v10 = vsel %vm541_vm4, %v4933_v38, %v4935_v17  ;;  %v4938_v61 = vsel %vm541_vm4, %v4935_v17, %v4937_v25  ;;  %v13772_v37 = vrot.slane %v13764_v2, 4 }
 0x719   : > { %10559 = vmatmul.mubr.msk.bf16.gmra.mrb[8].mxu1 %vm386_vm0, %v13748_v53  ;;  %5012 = vst.msk [vmem:[#allocation5 + $0x100] sm:$0xff] %vm386_vm0, %v4936_v10  ;;  %5013 = vst.msk [vmem:[#allocation5 + $0x108] sm:$0xff] %vm386_vm0, %v4938_v61  ;;  %v13784_v10 = vsel %vm773_vm3, %v7031_v16, %v7033_v5  ;;  %v13786_v61 = vld [vmem:[#allocation4 + $0x118] sm:$0xff] }
 0x71a   : > { %10562 = vmatprep.mubr.msk.bf16.mxu1 %vm386_vm0, %v13760_v1  ;;  %14711 = vst [vmem:[#allocation51_spill] sm:$0xff] %v13772_v37  ;;  %14712 = vst [vmem:[#allocation52_spill] sm:$0xff] %v13784_v10 }
 0x71b   : > { %14713 = vst [vmem:[#allocation53_spill] sm:$0xff] %v13786_v61 }
 0x71c   : > { %v10448_v8 = vpop.f32.mrb[160].mxu1 }
 0x71d   : > { %v6370_v53 = vpop.f32.mrb[161].mxu1  ;;  %v13775_v43 = vadd.f32 %v10448_v8, %v13516_v15  ;;  %v13792_v15 = vsel %vm773_vm3, %v7033_v5, %v13772_v37  ;;  %v4939_v8 = vrot.slane %v13786_v61, 2 }
 0x71e   : > { %v10449_v1 = vpop.f32.mrb[162].mxu1  ;;  %v13778_v21 = vadd.f32 %v6370_v53, %v13519_v57  ;;  %14714 = vst [vmem:[#allocation54_spill] sm:$0xff] %v13792_v15  ;;  %v7037_v53 = vrot.slane %v13348_v58, 4 }
 0x71f   : > { %v6373_v38 = vpop.f32.mrb[163].mxu1  ;;  %v13781_v17 = vadd.f32 %v10449_v1, %v13522_v32  ;;  %v4940_v57 = vsel %vm541_vm4, %v4937_v25, %v4939_v8  ;;  %v14715_v32 = vrot.slane %v12673_v46, 2 }
 0x720   : > { %5014 = vst.msk [vmem:[#allocation5 + $0x110] sm:$0xff] %vm386_vm0, %v4940_v57  ;;  %v7039_v38 = vrot.slane %v13361_v19, 4  ;;  %v7038_v46 = vsel %vm773_vm3, %v13772_v37, %v7037_v53  ;;  %v7041_v57 = vrot.slane %v13365_v60, 4 }
 0x721   : > { %10563 = vmatmul.mubr.msk.bf16.gmra.mrb[12].mxu1 %vm386_vm0, %v13784_v10  ;;  %v4942_v16 = vsel %vm541_vm4, %v4939_v8, %v14715_v32 }
 0x722   : > { %10566 = vmatprep.mubr.msk.bf16.mxu1 %vm386_vm0, %v13792_v15  ;;  %5015 = vst.msk [vmem:[#allocation5 + $0x118] sm:$0xff] %vm386_vm0, %v4942_v16  ;;  %v7040_v8 = vsel %vm773_vm3, %v7037_v53, %v7039_v38 }
 0x724   : > { %v10452_v1 = vpop.f32.mrb[164].mxu1 }
 0x725   : > { %v6385_v5 = vpop.f32.mrb[165].mxu1  ;;  %v13806_v10 = vadd.f32 %v10452_v1, %v13535_v63  ;;  %v7043_v63 = vrot.slane %v13378_v48, 4 }
 0x726   : > { %v10453_v15 = vpop.f32.mrb[166].mxu1 }
 0x727   : > { %v6387_v61 = vpop.f32.mrb[167].mxu1 }
 0x728   : > { %v13811_v25 = vadd.f32 %v6387_v61, %v13538_v59  ;;  %v7042_v61 = vsel %vm773_vm3, %v7039_v38, %v7041_v57 }
 0x729   : > { %10567 = vmatmul.mubr.msk.bf16.gmra.mrb[16].mxu1 %vm386_vm0, %v7038_v46  ;;  %v7044_v46 = vsel %vm773_vm3, %v7041_v57, %v7043_v63 }
 0x72a   : > { %10570 = vmatprep.mubr.msk.bf16.mxu1 %vm386_vm0, %v7040_v8  ;;  %v7045_v8 = vrot.slane %v13382_v23, 4 }
 0x72c   : > { %v10456_v32 = vpop.f32.mrb[168].mxu1  ;;  %v7046_v57 = vsel %vm773_vm3, %v7043_v63, %v7045_v8 }
 0x72d   : > { %v6399_v16 = vpop.f32.mrb[169].mxu1 }
 0x72e   : > { %v10457_v15 = vpop.f32.mrb[170].mxu1  ;;  %v13819_v1 = vadd.f32 %v6399_v16, %v13551_v54  ;;  %v7047_v16 = vrot.slane %v13392_v36, 4 }
 0x72f   : > { %v6402_v5 = vpop.f32.mrb[171].mxu1  ;;  %v13822_v59 = vadd.f32 %v10457_v15, %v13554_v50 }
 0x730   : > { %v13826_v53 = vadd.f32 %v6402_v5, %v13557_v40 }
 0x731   : > { %10571 = vmatmul.mubr.msk.bf16.gmra.mrb[20].mxu1 %vm386_vm0, %v7042_v61  ;;  %v6971_v61 = vld [vmem:[#allocation5 + $0xf0] sm:$0xf] }
 0x732   : > { %10574 = vmatprep.mubr.msk.bf16.mxu1 %vm386_vm0, %v7044_v46  ;;  %v7048_v46 = vsel %vm773_vm3, %v7045_v8, %v7047_v16  ;;  %v7049_v37 = vrot.slane %v6971_v61, 4 }
 0x734   : > { %v10460_v32 = vpop.f32.mrb[172].mxu1 }
 0x735   : > { %v6414_v54 = vpop.f32.mrb[173].mxu1  ;;  %v13834_v50 = vadd.f32 %v10460_v32, %v13570_v11 }
 0x736   : > { %v10461_v15 = vpop.f32.mrb[174].mxu1  ;;  %v13837_v38 = vadd.f32 %v6414_v54, %v13575_v44 }
 0x737   : > { %v6417_v40 = vpop.f32.mrb[175].mxu1  ;;  %v13840_v5 = vadd.f32 %v10461_v15, %v13578_v31  ;;  %v7050_v31 = vsel %vm773_vm3, %v7047_v16, %v7049_v37 }
 0x739   : > { %10575 = vmatmul.mubr.msk.bf16.gmra.mrb[24].mxu1 %vm386_vm0, %v7046_v57 }
 0x73a   : > { %10578 = vmatprep.mubr.msk.bf16.mxu1 %vm386_vm0, %v7048_v46 }
 0x73c   : > { %v10464_v11 = vpop.f32.mrb[176].mxu1 }
 0x73d   : > { %v13847_v32 = vadd.f32 %v10464_v11, %v13592_v39  ;;  %v6429_v44 = vpop.f32.mrb[177].mxu1  ;;  %v11250_v11 = vld [vmem:[#allocation12 + $0x78] sm:$0xff]  }
 0x73e   : > { %v10465_v54 = vpop.f32.mrb[178].mxu1 }
 0x73f   : > { %v6431_v40 = vpop.f32.mrb[179].mxu1 }
 0x740   : > { %v13851_v15 = vadd.f32 %v6431_v40, %v13597_v51  ;;  %v13870_v51 = vld [vmem:[#allocation12 + $0x80] sm:$0xff]  }
 0x741   : > { %10579 = vmatmul.mubr.msk.bf16.gmra.mrb[28].mxu1 %vm386_vm0, %v7050_v31 }
 0x742   : > { %10586 = vmatprep.mubr.msk.bf16.mxu1 %vm386_vm0, %v13631_v35 }
 0x744   : > { %v10468_v63 = vpop.f32.mrb[180].mxu1 }
 0x745   : > { %v6443_v8 = vpop.f32.mrb[181].mxu1 }
 0x746   : > { %v13857_v57 = vadd.f32 %v6443_v8, %v13603_v42  ;;  %v10469_v39 = vpop.f32.mrb[182].mxu1 }
 0x747   : > { %v13860_v61 = vadd.f32 %v10469_v39, %v13606_v3  ;;  %v6446_v46 = vpop.f32.mrb[183].mxu1 }
 0x748   : > { %v13863_v37 = vadd.f32 %v6446_v46, %v13610_v52 }
 0x749   : > { %10587 = vmatmul.mubr.msk.bf16.vlgmr.msra.gmra.mrb[32].mxu1 %vm386_vm0, %v13634_v41 }
 0x74a   : > { %10635 = vmatpush3.bf16.msra.mxu1 %v13616_v22  ;;  %10590 = vmatprep.mubr.msk.bf16.mxu1 %vm386_vm0, %v13650_v9 }
 0x74b   : > { %10636 = vmatprep.subr.bf16.mxu1 %v11250_v11 }
 0x74c   : > { %v10472_v42 = vpop.f32.mrb[184].mxu1 }
 0x74d   : > { %v13873_v3 = vadd.f32 %v10472_v42, %v13619_v28  ;;  %v6458_v35 = vpop.f32.mrb[185].mxu1 }
 0x74e   : > { %v13876_v16 = vadd.f32 %v6458_v35, %v13622_v18  ;;  %v10473_v52 = vpop.f32.mrb[186].mxu1  ;;  %10637 = vmatpush3.bf16.msra.mxu1 %v11250_v11 }
 0x74f   : > { %v13879_v41 = vadd.f32 %v10473_v52, %v13626_v47  ;;  %v6461_v22 = vpop.f32.mrb[187].mxu1  ;;  %10686 = vmatprep.subr.bf16.mxu1 %v13870_v51 }
 0x751   : > { %10591 = vmatmul.mubr.msk.bf16.gmra.mrb[36].mxu1 %vm386_vm0, %v13653_v55 }
 0x752   : > { %10594 = vmatprep.mubr.msk.bf16.mxu1 %vm386_vm0, %v13672_v20 }
 0x754   : > { %v10476_v28 = vpop.f32.mrb[188].mxu1 }
 0x755   : > { %v13887_v9 = vadd.f32 %v10476_v28, %v13641_v13  ;;  %v6473_v18 = vpop.f32.mrb[189].mxu1 }
 0x756   : > { %v10477_v44 = vpop.f32.mrb[190].mxu1 }
 0x757   : > { %v6475_v54 = vpop.f32.mrb[191].mxu1 }
 0x758   : > { %v13890_v40 = vadd.f32 %v6475_v54, %v13645_v6 }
 0x759   : > { %10595 = vmatmul.mubr.msk.bf16.gmra.mrb[40].mxu1 %vm386_vm0, %v13679_v7 }
 0x75a   : > { %10598 = vmatprep.mubr.msk.bf16.mxu1 %vm386_vm0, %v13697_v14 }
 0x75c   : > { %v10484_v47 = vpop.f32.mrb[192].mxu1 }
 0x75d   : > { %v6740_v55 = vpop.f32.mrb[193].mxu1 }
 0x75e   : > { %v13897_v20 = vadd.f32 %v6740_v55, %v13658_v49  ;;  %v10485_v31 = vpop.f32.mrb[194].mxu1  ;;  %v13973_v55 = vld [vmem:[#allocation5 + $0xf8] sm:$0xff] }
 0x75f   : > { %v13900_v13 = vadd.f32 %v10485_v31, %v13661_v29  ;;  %v6743_v63 = vpop.f32.mrb[195].mxu1 }
 0x760   : > { %v13903_v8 = vadd.f32 %v6743_v63, %v13668_v45  ;;  %v13978_v63 = vld [vmem:[#allocation5 + $0x100] sm:$0xff] }
 0x761   : > { %10599 = vmatmul.mubr.msk.bf16.gmra.mrb[44].mxu1 %vm386_vm0, %v13704_v0 }
 0x762   : > { %10602 = vmatprep.mubr.msk.bf16.mxu1 %vm386_vm0, %v13721_v26 }
 0x764   : > { %v10488_v14 = vpop.f32.mrb[196].mxu1 }
 0x765   : > { %v13910_v6 = vadd.f32 %v10488_v14, %v13684_v56  ;;  %v6755_v49 = vpop.f32.mrb[197].mxu1 }
 0x766   : > { %v13913_v7 = vadd.f32 %v6755_v49, %v13687_v33  ;;  %v10489_v29 = vpop.f32.mrb[198].mxu1  ;;  %v14716_v33 = vld [vmem:[#allocation44_spill] sm:$0xff] }
 0x767   : > { %v13916_v39 = vadd.f32 %v10489_v29, %v13690_v30  ;;  %v6758_v45 = vpop.f32.mrb[199].mxu1 }
 0x768   : > { %v13993_v45 = vld [vmem:[#allocation5 + $0x108] sm:$0xff] }
 0x769   : > { %10603 = vmatmul.mubr.msk.bf16.gmra.mrb[48].mxu1 %vm386_vm0, %v13729_v62 }
 0x76a   : > { %10606 = vmatprep.mubr.msk.bf16.mxu1 %vm386_vm0, %v13757_v4 }
 0x76c   : > { %v10492_v26 = vpop.f32.mrb[200].mxu1 }
 0x76d   : > { %v13923_v0 = vadd.f32 %v10492_v26, %v13709_v34  ;;  %v6770_v56 = vpop.f32.mrb[201].mxu1 }
 0x76e   : > { %v10493_v46 = vpop.f32.mrb[202].mxu1  ;;  %v13998_v56 = vld [vmem:[#allocation5 + $0x110] sm:$0xff] }
 0x76f   : > { %v6772_v11 = vpop.f32.mrb[203].mxu1 }
 0x770   : > { %v13926_v42 = vadd.f32 %v6772_v11, %v14716_v33 }
 0x771   : > { %10607 = vmatmul.mubr.msk.bf16.gmra.mrb[52].mxu1 %vm386_vm0, %v13764_v2 }
 0x772   : > { %10610 = vmatprep.mubr.msk.bf16.mxu1 %vm386_vm0, %v13348_v58 }
 0x774   : > { %v10496_v30 = vpop.f32.mrb[204].mxu1 }
 0x775   : > { %v6784_v62 = vpop.f32.mrb[205].mxu1 }
 0x776   : > { %v13933_v4 = vadd.f32 %v6784_v62, %v13738_v27  ;;  %v10497_v35 = vpop.f32.mrb[206].mxu1  ;;  %v14007_v62 = vld [vmem:[#allocation5 + $0x118] sm:$0xff] }
 0x777   : > { %v13936_v34 = vadd.f32 %v10497_v35, %v13741_v12  ;;  %v6787_v52 = vpop.f32.mrb[207].mxu1 }
 0x778   : > { %v13939_v22 = vadd.f32 %v6787_v52, %v13751_v24  ;;  %v14717_v52 = vld [vmem:[#allocation24_spill] sm:$0xff] }
 0x779   : > { %10611 = vmatmul.mubr.msk.bf16.gmra.mrb[56].mxu1 %vm386_vm0, %v13361_v19 }
 0x77a   : > { %10614 = vmatprep.mubr.msk.bf16.mxu1 %vm386_vm0, %v13365_v60 }
 0x77c   : > { %v10500_v58 = vpop.f32.mrb[208].mxu1 }
 0x77d   : > { %v13946_v2 = vadd.f32 %v10500_v58, %v13775_v43  ;;  %v6799_v27 = vpop.f32.mrb[209].mxu1 }
 0x77e   : > { %v13949_v28 = vadd.f32 %v6799_v27, %v13778_v21  ;;  %v10501_v12 = vpop.f32.mrb[210].mxu1 }
 0x77f   : > { %v13952_v18 = vadd.f32 %v10501_v12, %v13781_v17  ;;  %v6802_v24 = vpop.f32.mrb[211].mxu1  ;;  %v13966_v17 = vld [vmem:[#allocation5 + $0xf0] sm:$0xff] }
 0x781   : > { %10615 = vmatmul.mubr.msk.bf16.gmra.mrb[60].mxu1 %vm386_vm0, %v13378_v48 }
 0x782   : > { %10618 = vmatprep.mubr.msk.bf16.mxu1 %vm386_vm0, %v13382_v23 }
 0x784   : > { %v10504_v19 = vpop.f32.mrb[212].mxu1 }
 0x785   : > { %v13959_v60 = vadd.f32 %v10504_v19, %v13806_v10  ;;  %v6814_v43 = vpop.f32.mrb[213].mxu1 }
 0x786   : > { %v10505_v44 = vpop.f32.mrb[214].mxu1 }
 0x787   : > { %v6816_v54 = vpop.f32.mrb[215].mxu1 }
 0x788   : > { %v13962_v21 = vadd.f32 %v6816_v54, %v13811_v25  ;;  %v14718_v54 = vld [vmem:[#allocation25_spill] sm:$0xff] }
 0x789   : > { %10619 = vmatmul.mubr.msk.bf16.gmra.mrb[64].mxu1 %vm386_vm0, %v13392_v36 }
 0x78a   : > { %10622 = vmatprep.mubr.msk.bf16.mxu1 %vm386_vm0, %v13966_v17 }
 0x78c   : > { %v10508_v48 = vpop.f32.mrb[216].mxu1 }
 0x78d   : > { %v6828_v23 = vpop.f32.mrb[217].mxu1  ;;  %v14719_v48 = vld [vmem:[#allocation20_spill] sm:$0xff] }
 0x78e   : > { %v13971_v47 = vadd.f32 %v6828_v23, %v13819_v1  ;;  %v10509_v10 = vpop.f32.mrb[218].mxu1 }
 0x78f   : > { %v13976_v31 = vadd.f32 %v10509_v10, %v13822_v59  ;;  %v6831_v25 = vpop.f32.mrb[219].mxu1 }
 0x790   : > { %v13981_v36 = vadd.f32 %v6831_v25, %v13826_v53 }
 0x791   : > { %10623 = vmatmul.mubr.msk.bf16.gmra.mrb[68].mxu1 %vm386_vm0, %v13973_v55 }
 0x792   : > { %10626 = vmatprep.mubr.msk.bf16.mxu1 %vm386_vm0, %v13978_v63 }
 0x794   : > { %v10512_v1 = vpop.f32.mrb[220].mxu1 }
 0x795   : > { %v13988_v14 = vadd.f32 %v10512_v1, %v13834_v50  ;;  %v6843_v49 = vpop.f32.mrb[221].mxu1  ;;  %v7730_v50 = vld [vmem:[#allocation4 + $0x60] sm:$0xf0] }
 0x796   : > { %v13991_v59 = vadd.f32 %v6843_v49, %v13837_v38  ;;  %v10513_v29 = vpop.f32.mrb[222].mxu1  ;;  %v7785_v33 = vrot.slane %v7730_v50, 4  ;;  %v14720_v49 = vld [vmem:[#allocation21_spill] sm:$0xff] }
 0x797   : > { %v13996_v53 = vadd.f32 %v10513_v29, %v13840_v5  ;;  %v6846_v26 = vpop.f32.mrb[223].mxu1 }
 0x798   : > { %v7787_v58 = vsel %vm773_vm3, %v7785_v33, %v14717_v52 }
 0x799   : > { %10627 = vmatmul.mubr.msk.bf16.gmra.mrb[72].mxu1 %vm386_vm0, %v13993_v45 }
 0x79a   : > { %10630 = vmatprep.mubr.msk.bf16.mxu1 %vm386_vm0, %v13998_v56 }
 0x79c   : > { %v10516_v46 = vpop.f32.mrb[224].mxu1 }
 0x79d   : > { %v14005_v38 = vadd.f32 %v10516_v46, %v13847_v32  ;;  %v6858_v11 = vpop.f32.mrb[225].mxu1 }
 0x79e   : > { %v10517_v30 = vpop.f32.mrb[226].mxu1  ;;  %v14722_v11 = vld [vmem:[#allocation23_spill] sm:$0xff] }
 0x79f   : > { %v6860_v5 = vpop.f32.mrb[227].mxu1 }
 0x7a0   : > { %v14010_v35 = vadd.f32 %v6860_v5, %v13851_v15  ;;  %v11252_v15 = vld [vmem:[#allocation12 + $0x88] sm:$0xff]  }
 0x7a1   : > { %10631 = vmatmul.mubr.msk.bf16.gmra.mrb[76].mxu1 %vm386_vm0, %v14007_v62 }
 0x7a2   : > { %10638 = vmatprep.mubr.msk.bf16.mxu1 %vm386_vm0, %v7787_v58 }
 0x7a4   : > { %v10520_v27 = vpop.f32.mrb[228].mxu1 }
 0x7a5   : > { %v6872_v32 = vpop.f32.mrb[229].mxu1 }
 0x7a6   : > { %v14018_v12 = vadd.f32 %v6872_v32, %v13857_v57  ;;  %v10521_v24 = vpop.f32.mrb[230].mxu1  ;;  %v14725_v32 = vld [vmem:[#allocation28_spill] sm:$0xff] }
 0x7a7   : > { %v14021_v19 = vadd.f32 %v10521_v24, %v13860_v61  ;;  %v6875_v43 = vpop.f32.mrb[231].mxu1 }
 0x7a8   : > { %v14024_v44 = vadd.f32 %v6875_v43, %v13863_v37 }
 0x7a9   : > { %10639 = vmatmul.mubr.msk.bf16.vlgmr.msra.gmra.mrb[80].mxu1 %vm386_vm0, %v14718_v54 }
 0x7aa   : > { %10687 = vmatpush3.bf16.msra.mxu1 %v13870_v51  ;;  %10642 = vmatprep.mubr.msk.bf16.mxu1 %vm386_vm0, %v14719_v48  ;;  %v14721_v51 = vld [vmem:[#allocation22_spill] sm:$0xff]  ;;  %v14726_v48 = vld [vmem:[#allocation29_spill] sm:$0xff] }
 0x7ab   : > { %10688 = vmatprep.subr.bf16.mxu1 %v11252_v15 }
 0x7ac   : > { %v10524_v57 = vpop.f32.mrb[232].mxu1 }
 0x7ad   : > { %v14032_v23 = vadd.f32 %v10524_v57, %v13873_v3  ;;  %v6887_v61 = vpop.f32.mrb[233].mxu1  ;;  %v14727_v57 = vld [vmem:[#allocation30_spill] sm:$0xff] }
 0x7ae   : > { %v14035_v10 = vadd.f32 %v6887_v61, %v13876_v16  ;;  %v10525_v25 = vpop.f32.mrb[234].mxu1  ;;  %10689 = vmatpush3.bf16.msra.mxu1 %v11252_v15 }
 0x7af   : > { %v14038_v37 = vadd.f32 %v10525_v25, %v13879_v41  ;;  %v6890_v1 = vpop.f32.mrb[235].mxu1  ;;  %v14723_v41 = vld [vmem:[#allocation26_spill] sm:$0xff] }
 0x7b1   : > { %10643 = vmatmul.mubr.msk.bf16.gmra.mrb[84].mxu1 %vm386_vm0, %v14720_v49 }
 0x7b2   : > { %10646 = vmatprep.mubr.msk.bf16.mxu1 %vm386_vm0, %v14721_v51  ;;  %v8253_v51 = vrot.slane %v13978_v63, 4 }
 0x7b4   : > { %v10528_v29 = vpop.f32.mrb[236].mxu1 }
 0x7b5   : > { %v14045_v3 = vadd.f32 %v10528_v29, %v13887_v9  ;;  %v6902_v26 = vpop.f32.mrb[237].mxu1  ;;  %v14728_v29 = vld [vmem:[#allocation31_spill] sm:$0xff] }
 0x7b6   : > { %v10529_v50 = vpop.f32.mrb[238].mxu1  ;;  %v14729_v26 = vld [vmem:[#allocation32_spill] sm:$0xff] }
 0x7b7   : > { %v6904_v16 = vpop.f32.mrb[239].mxu1 }
 0x7b8   : > { %v14048_v46 = vadd.f32 %v6904_v16, %v13890_v40  ;;  %v14724_v40 = vld [vmem:[#allocation27_spill] sm:$0xff] }
 0x7b9   : > { %10647 = vmatmul.mubr.msk.bf16.gmra.mrb[88].mxu1 %vm386_vm0, %v14722_v11 }
 0x7ba   : > { %10650 = vmatprep.mubr.msk.bf16.mxu1 %vm386_vm0, %v14723_v41 }
 0x7bc   : > { %v10536_v33 = vpop.f32.mrb[240].mxu1 }
 0x7bd   : > { %v7169_v30 = vpop.f32.mrb[241].mxu1  ;;  %v8255_v33 = vrot.slane %v13993_v45, 4 }
 0x7be   : > { %v14055_v5 = vadd.f32 %v7169_v30, %v13897_v20  ;;  %v10537_v52 = vpop.f32.mrb[242].mxu1  ;;  %v8257_v30 = vrot.slane %v13998_v56, 4 }
 0x7bf   : > { %v14058_v9 = vadd.f32 %v10537_v52, %v13900_v13  ;;  %v7172_v58 = vpop.f32.mrb[243].mxu1 }
 0x7c0   : > { %v14061_v27 = vadd.f32 %v7172_v58, %v13903_v8  ;;  %v14730_v58 = vld [vmem:[#allocation33_spill] sm:$0xff] }
 0x7c1   : > { %10651 = vmatmul.mubr.msk.bf16.gmra.mrb[92].mxu1 %vm386_vm0, %v14724_v40  ;;  %v14111_v40 = vsel %vm773_vm3, %v8253_v51, %v8255_v33 }
 0x7c2   : > { %10654 = vmatprep.mubr.msk.bf16.mxu1 %vm386_vm0, %v14725_v32  ;;  %v14731_v32 = vld [vmem:[#allocation34_spill] sm:$0xff] }
 0x7c4   : > { %v10540_v24 = vpop.f32.mrb[244].mxu1 }
 0x7c5   : > { %v14068_v43 = vadd.f32 %v10540_v24, %v13910_v6  ;;  %v7184_v20 = vpop.f32.mrb[245].mxu1 }
 0x7c6   : > { %v14071_v15 = vadd.f32 %v7184_v20, %v13913_v7  ;;  %v10541_v13 = vpop.f32.mrb[246].mxu1 }
 0x7c7   : > { %v14074_v54 = vadd.f32 %v10541_v13, %v13916_v39  ;;  %v7187_v8 = vpop.f32.mrb[247].mxu1  ;;  %v8251_v39 = vrot.slane %v13973_v55, 4 }
 0x7c8   : > { %v7749_v8 = vld [vmem:[#allocation4 + $0xf8] sm:$0xff] }
 0x7c9   : > { %10655 = vmatmul.mubr.msk.bf16.gmra.mrb[96].mxu1 %vm386_vm0, %v14726_v48  ;;  %v8259_v48 = vrot.slane %v14007_v62, 4 }
 0x7ca   : > { %10658 = vmatprep.mubr.msk.bf16.mxu1 %vm386_vm0, %v14727_v57  ;;  %v14732_v57 = vld [vmem:[#allocation36_spill] sm:$0xff] }
 0x7cc   : > { %v10544_v61 = vpop.f32.mrb[248].mxu1 }
 0x7cd   : > { %v14081_v25 = vadd.f32 %v10544_v61, %v13923_v0  ;;  %v7199_v6 = vpop.f32.mrb[249].mxu1  ;;  %v14095_v0 = vsel %vm773_vm3, %v8251_v39, %v8253_v51  ;;  %v7748_v61 = vld [vmem:[#allocation4 + $0xf0] sm:$0xff] }
 0x7ce   : > { %v10545_v1 = vpop.f32.mrb[250].mxu1  ;;  %v14733_v6 = vld [vmem:[#allocation37_spill] sm:$0xff] }
 0x7cf   : > { %v7201_v49 = vpop.f32.mrb[251].mxu1  ;;  %v7820_v1 = vrot.slane %v7748_v61, 4 }
 0x7d0   : > { %v14084_v7 = vadd.f32 %v7201_v49, %v13926_v42 }
 0x7d1   : > { %10659 = vmatmul.mubr.msk.bf16.gmra.mrb[100].mxu1 %vm386_vm0, %v14728_v29 }
 0x7d2   : > { %10662 = vmatprep.mubr.msk.bf16.mxu1 %vm386_vm0, %v14729_v26 }
 0x7d4   : > { %v10548_v50 = vpop.f32.mrb[252].mxu1 }
 0x7d5   : > { %v7213_v16 = vpop.f32.mrb[253].mxu1 }
 0x7d6   : > { %v14098_v42 = vadd.f32 %v7213_v16, %v13933_v4  ;;  %v10549_v11 = vpop.f32.mrb[254].mxu1  ;;  %v14114_v4 = vsel %vm773_vm3, %v8255_v33, %v8257_v30  ;;  %v14734_v16 = vld [vmem:[#allocation35_spill] sm:$0xff]  ;;  %v14735_v33 = vld [vmem:[#allocation45_spill] sm:$0xff] }
 0x7d7   : > { %v14101_v41 = vadd.f32 %v10549_v11, %v13936_v34  ;;  %v7216_v63 = vpop.f32.mrb[255].mxu1  ;;  %v7821_v11 = vsel %vm773_vm3, %v14734_v16, %v7820_v1 }
 0x7d8   : > { %v14106_v52 = vadd.f32 %v7216_v63, %v13939_v22 }
 0x7d9   : > { %10663 = vmatmul.mubr.msk.bf16.gmra.mrb[104].mxu1 %vm386_vm0, %v14730_v58  ;;  %v14736_v58 = vld [vmem:[#allocation47_spill] sm:$0xff] }
 0x7da   : > { %10666 = vmatprep.mubr.msk.bf16.mxu1 %vm386_vm0, %v14731_v32 }
 0x7dc   : > { %v10552_v34 = vpop.f32.mrb[0].mxu1 }
 0x7dd   : > { %v14119_v45 = vadd.f32 %v10552_v34, %v13946_v2  ;;  %v7228_v56 = vpop.f32.mrb[1].mxu1  ;;  %v14135_v2 = vsel %vm773_vm3, %v8257_v30, %v8259_v48  ;;  %v7824_v30 = vrot.slane %v14735_v33, 4 }
 0x7de   : > { %v14122_v22 = vadd.f32 %v7228_v56, %v13949_v28  ;;  %v10553_v24 = vpop.f32.mrb[2].mxu1  ;;  %v7822_v28 = vrot.slane %v7749_v8, 4 }
 0x7df   : > { %v14125_v20 = vadd.f32 %v10553_v24, %v13952_v18  ;;  %v7231_v13 = vpop.f32.mrb[3].mxu1 }
 0x7e0   : > { %v7823_v50 = vsel %vm773_vm3, %v7820_v1, %v7822_v28  ;;  %v7825_v13 = vsel %vm773_vm3, %v7822_v28, %v7824_v30 }
 0x7e1   : > { %10667 = vmatmul.mubr.msk.bf16.gmra.mrb[108].mxu1 %vm386_vm0, %v14732_v57 }
 0x7e2   : > { %10670 = vmatprep.mubr.msk.bf16.mxu1 %vm386_vm0, %v14733_v6  ;;  %v14737_v6 = vld [vmem:[#allocation48_spill] sm:$0xff] }
 0x7e3   : > { %v7828_v1 = vrot.slane %v14737_v6, 4 }
 0x7e4   : > { %v10556_v18 = vpop.f32.mrb[4].mxu1 }
 0x7e5   : > { %v14138_v49 = vadd.f32 %v10556_v18, %v13959_v60  ;;  %v7243_v51 = vpop.f32.mrb[5].mxu1  ;;  %v7826_v60 = vrot.slane %v14736_v58, 4  ;;  %v8159_v58 = vld [vmem:[#allocation5 + $0x60] sm:$0xf0] }
 0x7e6   : > { %v10557_v29 = vpop.f32.mrb[6].mxu1 }
 0x7e7   : > { %v7245_v26 = vpop.f32.mrb[7].mxu1  ;;  %v7827_v57 = vsel %vm773_vm3, %v7824_v30, %v7826_v60 }
 0x7e8   : > { %v14144_v63 = vadd.f32 %v7245_v26, %v13962_v21 }
 0x7e9   : > { %10671 = vmatmul.mubr.msk.bf16.gmra.mrb[112].mxu1 %vm386_vm0, %v7821_v11  ;;  %v7754_v11 = vld [vmem:[#allocation4 + $0x120] sm:$0xf] }
 0x7ea   : > { %10674 = vmatprep.mubr.msk.bf16.mxu1 %vm386_vm0, %v7823_v50  ;;  %v7832_v30 = vrot.slane %v7754_v11, 4 }
 0x7ec   : > { %v10560_v32 = vpop.f32.mrb[8].mxu1 }
 0x7ed   : > { %v7257_v34 = vpop.f32.mrb[9].mxu1 }
 0x7ee   : > { %v14151_v56 = vadd.f32 %v7257_v34, %v13971_v47  ;;  %v10561_v24 = vpop.f32.mrb[10].mxu1  ;;  %v14738_v47 = vld [vmem:[#allocation53_spill] sm:$0xff] }
 0x7ef   : > { %v14155_v8 = vadd.f32 %v10561_v24, %v13976_v31  ;;  %v7260_v21 = vpop.f32.mrb[11].mxu1  ;;  %v7830_v18 = vrot.slane %v14738_v47, 4  ;;  %v8214_v24 = vrot.slane %v8159_v58, 4 }
 0x7f0   : > { %v14159_v61 = vadd.f32 %v7260_v21, %v13981_v36  ;;  %v7829_v36 = vsel %vm773_vm3, %v7826_v60, %v7828_v1  ;;  %v14739_v21 = vld [vmem:[#allocation38_spill] sm:$0xff] }
 0x7f1   : > { %10675 = vmatmul.mubr.msk.bf16.gmra.mrb[116].mxu1 %vm386_vm0, %v7825_v13  ;;  %v7831_v33 = vsel %vm773_vm3, %v7828_v1, %v7830_v18  ;;  %v7833_v60 = vsel %vm773_vm3, %v7830_v18, %v7832_v30  ;;  %v14742_v30 = vld [vmem:[#allocation41_spill] sm:$0xff] }
 0x7f2   : > { %10678 = vmatprep.mubr.msk.bf16.mxu1 %vm386_vm0, %v7827_v57  ;;  %v8216_v57 = vsel %vm773_vm3, %v8214_v24, %v14739_v21 }
 0x7f4   : > { %v10564_v51 = vpop.f32.mrb[12].mxu1 }
 0x7f5   : > { %v14166_v28 = vadd.f32 %v10564_v51, %v13988_v14  ;;  %v7272_v31 = vpop.f32.mrb[13].mxu1 }
 0x7f6   : > { %v14169_v29 = vadd.f32 %v7272_v31, %v13991_v59  ;;  %v10565_v26 = vpop.f32.mrb[14].mxu1  ;;  %v14740_v31 = vld [vmem:[#allocation39_spill] sm:$0xff] }
 0x7f7   : > { %v14173_v50 = vadd.f32 %v10565_v26, %v13996_v53  ;;  %v7275_v16 = vpop.f32.mrb[15].mxu1  ;;  %v14741_v26 = vld [vmem:[#allocation40_spill] sm:$0xff] }
 0x7f9   : > { %10679 = vmatmul.mubr.msk.bf16.gmra.mrb[120].mxu1 %vm386_vm0, %v7829_v36 }
 0x7fa   : > { %10682 = vmatprep.mubr.msk.bf16.mxu1 %vm386_vm0, %v7831_v33 }
 0x7fc   : > { %v10568_v14 = vpop.f32.mrb[16].mxu1 }
 0x7fd   : > { %v14179_v59 = vadd.f32 %v10568_v14, %v14005_v38  ;;  %v7287_v32 = vpop.f32.mrb[17].mxu1  ;;  %v14743_v14 = vld [vmem:[#allocation42_spill] sm:$0xff] }
 0x7fe   : > { %v10569_v34 = vpop.f32.mrb[18].mxu1 }
 0x7ff   : > { %v7289_v53 = vpop.f32.mrb[19].mxu1 }
 0x800   : > { %v14183_v13 = vadd.f32 %v7289_v53, %v14010_v35  ;;  %v14744_v53 = vld [vmem:[#allocation43_spill] sm:$0xff] }
 0x801   : > { %10683 = vmatmul.mubr.msk.bf16.gmra.mrb[124].mxu1 %vm386_vm0, %v7833_v60 }
 0x802   : > { %10690 = vmatprep.mubr.msk.bf16.mxu1 %vm386_vm0, %v8216_v57 }
 0x804   : > { %v10572_v6 = vpop.f32.mrb[20].mxu1 }
 0x805   : > { %v7301_v1 = vpop.f32.mrb[21].mxu1 }
 0x806   : > { %v14190_v38 = vadd.f32 %v7301_v1, %v14018_v12  ;;  %v10573_v47 = vpop.f32.mrb[22].mxu1 }
 0x807   : > { %v14193_v18 = vadd.f32 %v10573_v47, %v14021_v19  ;;  %v7304_v51 = vpop.f32.mrb[23].mxu1 }
 0x808   : > { %v14196_v35 = vadd.f32 %v7304_v51, %v14024_v44  ;;  %v14747_v51 = vld [vmem:[#allocation50_spill] sm:$0xff] }
 0x809   : > { %10691 = vmatmul.mubr.msk.bf16.vlgmr.msra.gmra.mrb[128].mxu1 %vm386_vm0, %v14740_v31 }
 0x80a   : > { %10694 = vmatprep.mubr.msk.bf16.mxu1 %vm386_vm0, %v14741_v26 }
 0x80c   : > { %v10576_v36 = vpop.f32.mrb[24].mxu1 }
 0x80d   : > { %v14203_v16 = vadd.f32 %v10576_v36, %v14032_v23  ;;  %v7316_v12 = vpop.f32.mrb[25].mxu1 }
 0x80e   : > { %v14206_v11 = vadd.f32 %v7316_v12, %v14035_v10  ;;  %v10577_v19 = vpop.f32.mrb[26].mxu1 }
 0x80f   : > { %v14209_v33 = vadd.f32 %v10577_v19, %v14038_v37  ;;  %v7319_v44 = vpop.f32.mrb[27].mxu1  ;;  %v14745_v37 = vld [vmem:[#allocation46_spill] sm:$0xff]  ;;  %v14748_v19 = vld [vmem:[#allocation52_spill] sm:$0xff] }
 0x810   : > { %v8171_v44 = vld [vmem:[#allocation5 + $0xc0] sm:$0xff] }
 0x811   : > { %10695 = vmatmul.mubr.msk.bf16.gmra.mrb[132].mxu1 %vm386_vm0, %v14742_v30  ;;  %v14749_v30 = vld [vmem:[#allocation54_spill] sm:$0xff] }
 0x812   : > { %10698 = vmatprep.mubr.msk.bf16.mxu1 %vm386_vm0, %v14743_v14  ;;  %v8172_v14 = vld [vmem:[#allocation5 + $0xc8] sm:$0xff] }
 0x814   : > { %v10580_v58 = vpop.f32.mrb[28].mxu1 }
 0x815   : > { %v14216_v32 = vadd.f32 %v10580_v58, %v14045_v3  ;;  %v7331_v23 = vpop.f32.mrb[29].mxu1  ;;  %v8237_v58 = vrot.slane %v8171_v44, 4 }
 0x816   : > { %v10581_v34 = vpop.f32.mrb[30].mxu1 }
 0x817   : > { %v7333_v60 = vpop.f32.mrb[31].mxu1  ;;  %v8239_v34 = vrot.slane %v8172_v14, 4 }
 0x818   : > { %v14219_v10 = vadd.f32 %v7333_v60, %v14048_v46  ;;  %v14746_v46 = vld [vmem:[#allocation49_spill] sm:$0xff] }
 0x819   : > { %10699 = vmatmul.mubr.msk.bf16.gmra.mrb[136].mxu1 %vm386_vm0, %v14744_v53 }
 0x81a   : > { %10702 = vmatprep.mubr.msk.bf16.mxu1 %vm386_vm0, %v14745_v37 }
 0x81c   : > { %v10588_v24 = vpop.f32.mrb[32].mxu1 }
 0x81d   : > { %v7523_v21 = vpop.f32.mrb[33].mxu1 }
 0x81e   : > { %v14226_v57 = vadd.f32 %v7523_v21, %v14055_v5  ;;  %v10589_v6 = vpop.f32.mrb[34].mxu1  ;;  %v8173_v21 = vld [vmem:[#allocation5 + $0xd0] sm:$0xff] }
 0x81f   : > { %v14229_v3 = vadd.f32 %v10589_v6, %v14058_v9  ;;  %v7526_v1 = vpop.f32.mrb[35].mxu1  ;;  %v8240_v6 = vsel %vm773_vm3, %v8237_v58, %v8239_v34 }
 0x820   : > { %v14232_v47 = vadd.f32 %v7526_v1, %v14061_v27  ;;  %v8174_v1 = vld [vmem:[#allocation5 + $0xd8] sm:$0xff] }
 0x821   : > { %10703 = vmatmul.mubr.msk.bf16.gmra.mrb[140].mxu1 %vm386_vm0, %v14746_v46 }
 0x822   : > { %10706 = vmatprep.mubr.msk.bf16.mxu1 %vm386_vm0, %v14747_v51 }
 0x824   : > { %v10592_v31 = vpop.f32.mrb[36].mxu1 }
 0x825   : > { %v14239_v26 = vadd.f32 %v10592_v31, %v14068_v43  ;;  %v7538_v5 = vpop.f32.mrb[37].mxu1  ;;  %v8243_v31 = vrot.slane %v8174_v1, 4 }
 0x826   : > { %v14242_v36 = vadd.f32 %v7538_v5, %v14071_v15  ;;  %v10593_v9 = vpop.f32.mrb[38].mxu1 }
 0x827   : > { %v14245_v12 = vadd.f32 %v10593_v9, %v14074_v54  ;;  %v7541_v27 = vpop.f32.mrb[39].mxu1  ;;  %v14750_v54 = vld [vmem:[#allocation51_spill] sm:$0xff] }
 0x828   : > { %v8238_v37 = vsel %vm773_vm3, %v14750_v54, %v8237_v58  ;;  %v8176_v58 = vld [vmem:[#allocation5 + $0xe8] sm:$0xff] }
 0x829   : > { %10707 = vmatmul.mubr.msk.bf16.gmra.mrb[144].mxu1 %vm386_vm0, %v14748_v19 }
 0x82a   : > { %10710 = vmatprep.mubr.msk.bf16.mxu1 %vm386_vm0, %v14749_v30  ;;  %v8175_v30 = vld [vmem:[#allocation5 + $0xe0] sm:$0xff] }
 0x82c   : > { %v10596_v43 = vpop.f32.mrb[40].mxu1 }
 0x82d   : > { %v14252_v23 = vadd.f32 %v10596_v43, %v14081_v25  ;;  %v7553_v15 = vpop.f32.mrb[41].mxu1  ;;  %v8241_v25 = vrot.slane %v8173_v21, 4 }
 0x82e   : > { %v10597_v60 = vpop.f32.mrb[42].mxu1 }
 0x82f   : > { %v7555_v53 = vpop.f32.mrb[43].mxu1  ;;  %v8242_v19 = vsel %vm773_vm3, %v8239_v34, %v8241_v25  ;;  %v8244_v14 = vsel %vm773_vm3, %v8241_v25, %v8243_v31  ;;  %v8247_v60 = vrot.slane %v8176_v58, 4 }
 0x830   : > { %v14257_v24 = vadd.f32 %v7555_v53, %v14084_v7 }
 0x831   : > { %10711 = vmatmul.mubr.msk.bf16.gmra.mrb[148].mxu1 %vm386_vm0, %v8238_v37 }
 0x832   : > { %10714 = vmatprep.mubr.msk.bf16.mxu1 %vm386_vm0, %v8240_v6 }
 0x834   : > { %v10600_v46 = vpop.f32.mrb[44].mxu1 }
 0x835   : > { %v7567_v51 = vpop.f32.mrb[45].mxu1 }
 0x836   : > { %v14263_v5 = vadd.f32 %v7567_v51, %v14098_v42  ;;  %v10601_v9 = vpop.f32.mrb[46].mxu1  ;;  %v8245_v42 = vrot.slane %v8175_v30, 4 }
 0x837   : > { %v14266_v27 = vadd.f32 %v10601_v9, %v14101_v41  ;;  %v7570_v7 = vpop.f32.mrb[47].mxu1 }
 0x838   : > { %v14270_v44 = vadd.f32 %v7570_v7, %v14106_v52  ;;  %v8246_v37 = vsel %vm773_vm3, %v8243_v31, %v8245_v42  ;;  %v8248_v21 = vsel %vm773_vm3, %v8245_v42, %v8247_v60  ;;  %v8183_v42 = vld [vmem:[#allocation5 + $0x120] sm:$0xf] }
 0x839   : > { %10715 = vmatmul.mubr.msk.bf16.gmra.mrb[152].mxu1 %vm386_vm0, %v8242_v19 }
 0x83a   : > { %10718 = vmatprep.mubr.msk.bf16.mxu1 %vm386_vm0, %v8244_v14 }
 0x83c   : > { %v10604_v43 = vpop.f32.mrb[48].mxu1 }
 0x83d   : > { %v14276_v15 = vadd.f32 %v10604_v43, %v14119_v45  ;;  %v7582_v41 = vpop.f32.mrb[49].mxu1  ;;  %v8249_v45 = vrot.slane %v13966_v17, 4 }
 0x83e   : > { %v14279_v34 = vadd.f32 %v7582_v41, %v14122_v22  ;;  %v10605_v52 = vpop.f32.mrb[50].mxu1 }
 0x83f   : > { %v14282_v53 = vadd.f32 %v10605_v52, %v14125_v20  ;;  %v7585_v54 = vpop.f32.mrb[51].mxu1  ;;  %v8252_v20 = vsel %vm773_vm3, %v8249_v45, %v8251_v39  ;;  %v8250_v51 = vsel %vm773_vm3, %v8247_v60, %v8249_v45 }
 0x841   : > { %10719 = vmatmul.mubr.msk.bf16.gmra.mrb[156].mxu1 %vm386_vm0, %v8246_v37 }
 0x842   : > { %10722 = vmatprep.mubr.msk.bf16.mxu1 %vm386_vm0, %v8248_v21 }
 0x844   : > { %v10608_v6 = vpop.f32.mrb[52].mxu1 }
 0x845   : > { %v14290_v1 = vadd.f32 %v10608_v6, %v14138_v49  ;;  %v7597_v22 = vpop.f32.mrb[53].mxu1 }
 0x846   : > { %v10609_v25 = vpop.f32.mrb[54].mxu1 }
 0x847   : > { %v7599_v46 = vpop.f32.mrb[55].mxu1 }
 0x848   : > { %v14297_v31 = vadd.f32 %v7599_v46, %v14144_v63 }
 0x849   : > { %10723 = vmatmul.mubr.msk.bf16.gmra.mrb[160].mxu1 %vm386_vm0, %v8250_v51 }
 0x84a   : > { %10726 = vmatprep.mubr.msk.bf16.mxu1 %vm386_vm0, %v8252_v20 }
 0x84c   : > { %v10612_v17 = vpop.f32.mrb[56].mxu1 }
 0x84d   : > { %v7611_v9 = vpop.f32.mrb[57].mxu1 }
 0x84e   : > { %v14302_v49 = vadd.f32 %v7611_v9, %v14151_v56  ;;  %v10613_v7 = vpop.f32.mrb[58].mxu1 }
 0x84f   : > { %v14305_v19 = vadd.f32 %v10613_v7, %v14155_v8  ;;  %v7614_v55 = vpop.f32.mrb[59].mxu1 }
 0x850   : > { %v14308_v39 = vadd.f32 %v7614_v55, %v14159_v61 }
 0x851   : > { %10727 = vmatmul.mubr.msk.bf16.gmra.mrb[164].mxu1 %vm386_vm0, %v14095_v0  ;;  %v8261_v0 = vrot.slane %v8183_v42, 4 }
 0x852   : > { %10730 = vmatprep.mubr.msk.bf16.mxu1 %vm386_vm0, %v14111_v40 }
 0x854   : > { %v10616_v63 = vpop.f32.mrb[60].mxu1 }
 0x855   : > { %v14315_v30 = vadd.f32 %v10616_v63, %v14166_v28  ;;  %v7626_v56 = vpop.f32.mrb[61].mxu1 }
 0x856   : > { %v14318_v14 = vadd.f32 %v7626_v56, %v14169_v29  ;;  %v10617_v8 = vpop.f32.mrb[62].mxu1 }
 0x857   : > { %v14321_v58 = vadd.f32 %v10617_v8, %v14173_v50  ;;  %v7629_v61 = vpop.f32.mrb[63].mxu1  ;;  %v8262_v50 = vsel %vm773_vm3, %v8259_v48, %v8261_v0 }
 0x859   : > { %10731 = vmatmul.mubr.msk.bf16.gmra.mrb[168].mxu1 %vm386_vm0, %v14114_v4 }
 0x85a   : > { %10734 = vmatprep.mubr.msk.bf16.mxu1 %vm386_vm0, %v14135_v2 }
 0x85c   : > { %v10620_v40 = vpop.f32.mrb[64].mxu1 }
 0x85d   : > { %v14328_v28 = vadd.f32 %v10620_v40, %v14179_v59  ;;  %v7641_v43 = vpop.f32.mrb[65].mxu1 }
 0x85e   : > { %v10621_v29 = vpop.f32.mrb[66].mxu1 }
 0x85f   : > { %v7643_v41 = vpop.f32.mrb[67].mxu1 }
 0x860   : > { %v14334_v60 = vadd.f32 %v7643_v41, %v14183_v13 }
 0x861   : > { %10735 = vmatmul.mubr.msk.bf16.gmra.mrb[172].mxu1 %vm386_vm0, %v8262_v50 }
 0x864   : > { %v10624_v4 = vpop.f32.mrb[68].mxu1 }
 0x865   : > { %v7655_v52 = vpop.f32.mrb[69].mxu1 }
 0x866   : > { %v14338_v2 = vadd.f32 %v7655_v52, %v14190_v38  ;;  %v10625_v54 = vpop.f32.mrb[70].mxu1 }
 0x867   : > { %v14341_v59 = vadd.f32 %v10625_v54, %v14193_v18  ;;  %v7658_v37 = vpop.f32.mrb[71].mxu1 }
 0x868   : > { %v14344_v62 = vadd.f32 %v7658_v37, %v14196_v35 }
 0x86c   : > { %v10628_v48 = vpop.f32.mrb[72].mxu1 }
 0x86d   : > { %v14347_v21 = vadd.f32 %v10628_v48, %v14203_v16  ;;  %v7670_v13 = vpop.f32.mrb[73].mxu1 }
 0x86e   : > { %v14350_v45 = vadd.f32 %v7670_v13, %v14206_v11  ;;  %v10629_v6 = vpop.f32.mrb[74].mxu1 }
 0x86f   : > { %v14353_v38 = vadd.f32 %v10629_v6, %v14209_v33  ;;  %v7673_v22 = vpop.f32.mrb[75].mxu1 }
 0x874   : > { %v10632_v25 = vpop.f32.mrb[76].mxu1 }
 0x875   : > { %v14356_v18 = vadd.f32 %v10632_v25, %v14216_v32  ;;  %v7685_v46 = vpop.f32.mrb[77].mxu1 }
 0x876   : > { %v10633_v35 = vpop.f32.mrb[78].mxu1 }
 0x877   : > { %v7687_v20 = vpop.f32.mrb[79].mxu1 }
 0x878   : > { %v14359_v51 = vadd.f32 %v7687_v20, %v14219_v10 }
 0x87c   : > { %v10640_v16 = vpop.f32.mrb[80].mxu1 }
 0x87d   : > { %v7952_v17 = vpop.f32.mrb[81].mxu1 }
 0x87e   : > { %v14362_v11 = vadd.f32 %v7952_v17, %v14226_v57  ;;  %v10641_v9 = vpop.f32.mrb[82].mxu1 }
 0x87f   : > { %v14365_v33 = vadd.f32 %v10641_v9, %v14229_v3  ;;  %v7955_v7 = vpop.f32.mrb[83].mxu1 }
 0x880   : > { %v14368_v55 = vadd.f32 %v7955_v7, %v14232_v47 }
 0x884   : > { %v10644_v32 = vpop.f32.mrb[84].mxu1 }
 0x885   : > { %v14371_v63 = vadd.f32 %v10644_v32, %v14239_v26  ;;  %v7967_v56 = vpop.f32.mrb[85].mxu1 }
 0x886   : > { %v14374_v10 = vadd.f32 %v7967_v56, %v14242_v36  ;;  %v10645_v8 = vpop.f32.mrb[86].mxu1 }
 0x887   : > { %v14377_v57 = vadd.f32 %v10645_v8, %v14245_v12  ;;  %v7970_v61 = vpop.f32.mrb[87].mxu1 }
 0x88c   : > { %v10648_v42 = vpop.f32.mrb[88].mxu1 }
 0x88d   : > { %v14380_v3 = vadd.f32 %v10648_v42, %v14252_v23  ;;  %v7982_v0 = vpop.f32.mrb[89].mxu1 }
 0x88e   : > { %v10649_v47 = vpop.f32.mrb[90].mxu1 }
 0x88f   : > { %v7984_v40 = vpop.f32.mrb[91].mxu1 }
 0x890   : > { %v14383_v43 = vadd.f32 %v7984_v40, %v14257_v24 }
 0x894   : > { %v10652_v26 = vpop.f32.mrb[92].mxu1 }
 0x895   : > { %v7996_v29 = vpop.f32.mrb[93].mxu1 }
 0x896   : > { %v14386_v36 = vadd.f32 %v7996_v29, %v14263_v5  ;;  %v10653_v50 = vpop.f32.mrb[94].mxu1 }
 0x897   : > { %v14389_v12 = vadd.f32 %v10653_v50, %v14266_v27  ;;  %v7999_v41 = vpop.f32.mrb[95].mxu1 }
 0x898   : > { %v14392_v4 = vadd.f32 %v7999_v41, %v14270_v44 }
 0x89c   : > { %v10656_v23 = vpop.f32.mrb[96].mxu1 }
 0x89d   : > { %v14395_v52 = vadd.f32 %v10656_v23, %v14276_v15  ;;  %v8011_v54 = vpop.f32.mrb[97].mxu1 }
 0x89e   : > { %v14398_v24 = vadd.f32 %v8011_v54, %v14279_v34  ;;  %v10657_v37 = vpop.f32.mrb[98].mxu1 }
 0x89f   : > { %v14401_v5 = vadd.f32 %v10657_v37, %v14282_v53  ;;  %v8014_v48 = vpop.f32.mrb[99].mxu1 }
 0x8a4   : > { %v10660_v13 = vpop.f32.mrb[100].mxu1 }
 0x8a5   : > { %v14404_v27 = vadd.f32 %v10660_v13, %v14290_v1  ;;  %v8026_v6 = vpop.f32.mrb[101].mxu1 }
 0x8a6   : > { %v10661_v44 = vpop.f32.mrb[102].mxu1 }
 0x8a7   : > { %v8028_v22 = vpop.f32.mrb[103].mxu1  ;;  %v14457_v44 = vld [vmem:[#allocation14] ss:$0 sm:$0xff] }
 0x8a8   : > { %v14407_v25 = vadd.f32 %v8028_v22, %v14297_v31 }
 0x8ac   : > { %v10664_v15 = vpop.f32.mrb[104].mxu1 }
 0x8ad   : > { %v8040_v46 = vpop.f32.mrb[105].mxu1 }
 0x8ae   : > { %v14410_v34 = vadd.f32 %v8040_v46, %v14302_v49  ;;  %v10665_v35 = vpop.f32.mrb[106].mxu1 }
 0x8af   : > { %v14413_v53 = vadd.f32 %v10665_v35, %v14305_v19  ;;  %v8043_v20 = vpop.f32.mrb[107].mxu1 }
 0x8b0   : > { %v14416_v16 = vadd.f32 %v8043_v20, %v14308_v39 }
 0x8b4   : > { %v10668_v1 = vpop.f32.mrb[108].mxu1 }
 0x8b5   : > { %v14419_v17 = vadd.f32 %v10668_v1, %v14315_v30  ;;  %v8055_v9 = vpop.f32.mrb[109].mxu1 }
 0x8b6   : > { %v14422_v31 = vadd.f32 %v8055_v9, %v14318_v14  ;;  %v10669_v7 = vpop.f32.mrb[110].mxu1 }
 0x8b7   : > { %v14425_v49 = vadd.f32 %v10669_v7, %v14321_v58  ;;  %v8058_v32 = vpop.f32.mrb[111].mxu1 }
 0x8bc   : > { %v10672_v56 = vpop.f32.mrb[112].mxu1 }
 0x8bd   : > { %v14428_v19 = vadd.f32 %v10672_v56, %v14328_v28  ;;  %v8070_v8 = vpop.f32.mrb[113].mxu1 }
 0x8be   : > { %v10673_v39 = vpop.f32.mrb[114].mxu1 }
 0x8bf   : > { %v8072_v61 = vpop.f32.mrb[115].mxu1 }
 0x8c0   : > { %v14431_v42 = vadd.f32 %v8072_v61, %v14334_v60 }
 0x8c4   : > { %v10676_v30 = vpop.f32.mrb[116].mxu1 }
 0x8c5   : > { %v8084_v0 = vpop.f32.mrb[117].mxu1 }
 0x8c6   : > { %v14434_v14 = vadd.f32 %v8084_v0, %v14338_v2  ;;  %v10677_v47 = vpop.f32.mrb[118].mxu1 }
 0x8c7   : > { %v14437_v58 = vadd.f32 %v10677_v47, %v14341_v59  ;;  %v8087_v40 = vpop.f32.mrb[119].mxu1 }
 0x8c8   : > { %v14440_v26 = vadd.f32 %v8087_v40, %v14344_v62 }
 0x8cc   : > { %v10680_v28 = vpop.f32.mrb[120].mxu1 }
 0x8cd   : > { %v14443_v29 = vadd.f32 %v10680_v28, %v14347_v21  ;;  %v8099_v50 = vpop.f32.mrb[121].mxu1 }
 0x8ce   : > { %v14446_v60 = vadd.f32 %v8099_v50, %v14350_v45  ;;  %v10681_v41 = vpop.f32.mrb[122].mxu1 }
 0x8cf   : > { %v14449_v2 = vadd.f32 %v10681_v41, %v14353_v38  ;;  %v8102_v23 = vpop.f32.mrb[123].mxu1 }
 0x8d4   : > { %v10684_v54 = vpop.f32.mrb[124].mxu1 }
 0x8d5   : > { %v14452_v59 = vadd.f32 %v10684_v54, %v14356_v18  ;;  %v8114_v37 = vpop.f32.mrb[125].mxu1 }
 0x8d6   : > { %v10685_v62 = vpop.f32.mrb[126].mxu1 }
 0x8d7   : > { %v8116_v48 = vpop.f32.mrb[127].mxu1 }
 0x8d8   : > { %v14455_v13 = vadd.f32 %v8116_v48, %v14359_v51 }
 0x8dc   : > { %v10692_v21 = vpop.f32.mrb[128].mxu1 }
 0x8dd   : > { %v8381_v6 = vpop.f32.mrb[129].mxu1 }
 0x8de   : > { %v8556_v45 = vadd.f32 %v8381_v6, %v14362_v11  ;;  %v10693_v22 = vpop.f32.mrb[130].mxu1 }
 0x8df   : > { %v8558_v38 = vadd.f32 %v10693_v22, %v14365_v33  ;;  %v8384_v15 = vpop.f32.mrb[131].mxu1 }
 0x8e0   : > { %v8557_v46 = vadd.f32 %v8384_v15, %v14368_v55  ;;  %v8595_v18 = vadd.f32 %v14457_v44, %v8556_v45 }
 0x8e1   : > { %v8597_v33 = vadd.f32 %v14457_v44, %v8558_v38 }
 0x8e2   : > { %8635 = vxpose.xlu0.b32.start [1/16] (narrow) %v8595_v18, 32  ;;  %v8596_v35 = vadd.f32 %v14457_v44, %v8557_v46 }
 0x8e4   : > { %v10696_v20 = vpop.f32.mrb[132].mxu1 }
 0x8e5   : > { %v8560_v51 = vadd.f32 %v10696_v20, %v14371_v63  ;;  %v8396_v1 = vpop.f32.mrb[133].mxu1 }
 0x8e6   : > { %v8559_v9 = vadd.f32 %v8396_v1, %v14374_v10  ;;  %8636 = vxpose.xlu0.b32.cont [2/16] (narrow) %v8596_v35, 32  ;;  %v10697_v7 = vpop.f32.mrb[134].mxu1 }
 0x8e7   : > { %v8561_v11 = vadd.f32 %v10697_v7, %v14377_v57  ;;  %v8399_v32 = vpop.f32.mrb[135].mxu1  ;;  %v8599_v30 = vadd.f32 %v14457_v44, %v8560_v51 }
 0x8e8   : > { %v8598_v55 = vadd.f32 %v14457_v44, %v8559_v9 }
 0x8e9   : > { %v8600_v57 = vadd.f32 %v14457_v44, %v8561_v11 }
 0x8ea   : > { %8637 = vxpose.xlu0.b32.cont [3/16] (narrow) %v8597_v33, 32 }
 0x8ec   : > { %v10700_v56 = vpop.f32.mrb[136].mxu1 }
 0x8ed   : > { %v8563_v8 = vadd.f32 %v10700_v56, %v14380_v3  ;;  %v8411_v39 = vpop.f32.mrb[137].mxu1 }
 0x8ee   : > { %8638 = vxpose.xlu0.b32.cont [4/16] (narrow) %v8598_v55, 32  ;;  %v10701_v61 = vpop.f32.mrb[138].mxu1 }
 0x8ef   : > { %v8413_v63 = vpop.f32.mrb[139].mxu1  ;;  %v8602_v54 = vadd.f32 %v14457_v44, %v8563_v8 }
 0x8f0   : > { %v8562_v10 = vadd.f32 %v8413_v63, %v14383_v43 }
 0x8f2   : > { %8639 = vxpose.xlu0.b32.cont [5/16] (narrow) %v8599_v30, 32  ;;  %v8601_v41 = vadd.f32 %v14457_v44, %v8562_v10 }
 0x8f4   : > { %v10704_v0 = vpop.f32.mrb[140].mxu1 }
 0x8f5   : > { %v8425_v47 = vpop.f32.mrb[141].mxu1 }
 0x8f6   : > { %v8564_v40 = vadd.f32 %v8425_v47, %v14386_v36  ;;  %8640 = vxpose.xlu0.b32.cont [6/16] (narrow) %v8600_v57, 32  ;;  %v10705_v28 = vpop.f32.mrb[142].mxu1 }
 0x8f7   : > { %v8566_v50 = vadd.f32 %v10705_v28, %v14389_v12  ;;  %v8428_v3 = vpop.f32.mrb[143].mxu1 }
 0x8f8   : > { %v8565_v23 = vadd.f32 %v8428_v3, %v14392_v4  ;;  %v8603_v12 = vadd.f32 %v14457_v44, %v8564_v40 }
 0x8f9   : > { %v8605_v46 = vadd.f32 %v14457_v44, %v8566_v50 }
 0x8fa   : > { %8641 = vxpose.xlu0.b32.cont [7/16] (narrow) %v8601_v41, 32  ;;  %v8604_v45 = vadd.f32 %v14457_v44, %v8565_v23 }
 0x8fc   : > { %v10708_v43 = vpop.f32.mrb[144].mxu1 }
 0x8fd   : > { %v8568_v37 = vadd.f32 %v10708_v43, %v14395_v52  ;;  %v8440_v62 = vpop.f32.mrb[145].mxu1 }
 0x8fe   : > { %v8567_v48 = vadd.f32 %v8440_v62, %v14398_v24  ;;  %8642 = vxpose.xlu0.b32.cont [8/16] (narrow) %v8602_v54, 32  ;;  %v10709_v36 = vpop.f32.mrb[146].mxu1 }
 0x8ff   : > { %v8569_v21 = vadd.f32 %v10709_v36, %v14401_v5  ;;  %v8443_v6 = vpop.f32.mrb[147].mxu1  ;;  %v8607_v9 = vadd.f32 %v14457_v44, %v8568_v37 }
 0x900   : > { %v8606_v5 = vadd.f32 %v14457_v44, %v8567_v48 }
 0x902   : > { %8643 = vxpose.xlu0.b32.cont [9/16] (narrow) %v8603_v12, 32 }
 0x904   : > { %v10712_v4 = vpop.f32.mrb[148].mxu1 }
 0x905   : > { %v8571_v22 = vadd.f32 %v10712_v4, %v14404_v27  ;;  %v8455_v38 = vpop.f32.mrb[149].mxu1 }
 0x906   : > { %8644 = vxpose.xlu0.b32.cont [10/16] (narrow) %v8604_v45, 32  ;;  %v10713_v15 = vpop.f32.mrb[150].mxu1 }
 0x907   : > { %v8457_v52 = vpop.f32.mrb[151].mxu1  ;;  %v8610_v63 = vadd.f32 %v14457_v44, %v8571_v22 }
 0x908   : > { %v8570_v24 = vadd.f32 %v8457_v52, %v14407_v25  ;;  %v8608_v25 = vadd.f32 %v14457_v44, %v8569_v21 }
 0x90a   : > { %8645 = vxpose.xlu0.b32.cont [11/16] (narrow) %v8605_v46, 32  ;;  %v8609_v39 = vadd.f32 %v14457_v44, %v8570_v24 }
 0x90c   : > { %v10716_v18 = vpop.f32.mrb[152].mxu1 }
 0x90d   : > { %v8469_v35 = vpop.f32.mrb[153].mxu1  ;;  %v8629_v18 = vld [vmem:[%s11731_s17 + $0x10] sm:$0xff] }
 0x90e   : > { %v8572_v20 = vadd.f32 %v8469_v35, %v14410_v34  ;;  %8646 = vxpose.xlu0.b32.cont [12/16] (narrow) %v8606_v5, 32  ;;  %v10717_v51 = vpop.f32.mrb[154].mxu1 }
 0x90f   : > { %v8574_v1 = vadd.f32 %v10717_v51, %v14413_v53  ;;  %v8472_v27 = vpop.f32.mrb[155].mxu1  ;;  %v8631_v51 = vld [vmem:[%s11731_s17 + $0x20] sm:$0xff] }
 0x910   : > { %v8573_v7 = vadd.f32 %v8472_v27, %v14416_v16  ;;  %v8611_v11 = vadd.f32 %v14457_v44, %v8572_v20  ;;  %v8633_v27 = vld [vmem:[%s11731_s17 + $0x30] sm:$0xff] }
 0x911   : > { %v8613_v61 = vadd.f32 %v14457_v44, %v8574_v1 }
 0x912   : > { %8647 = vxpose.xlu0.b32.cont [13/16] (narrow) %v8607_v9, 32  ;;  %8667 = vxpose.xlu1.b32.start [1/16] (narrow) %v8611_v11, 32  ;;  %v8612_v32 = vadd.f32 %v14457_v44, %v8573_v7  ;;  %v8628_v11 = vld [vmem:[%s11731_s17 + $0x8] sm:$0xff] }
 0x914   : > { %v10720_v33 = vpop.f32.mrb[156].mxu1 }
 0x915   : > { %v8576_v34 = vadd.f32 %v10720_v33, %v14419_v17  ;;  %v8484_v55 = vpop.f32.mrb[157].mxu1  ;;  %v8630_v33 = vld [vmem:[%s11731_s17 + $0x18] sm:$0xff] }
 0x916   : > { %v8575_v56 = vadd.f32 %v8484_v55, %v14422_v31  ;;  %8648 = vxpose.xlu0.b32.cont [14/16] (narrow) %v8608_v25, 32  ;;  %8668 = vxpose.xlu1.b32.cont [2/16] (narrow) %v8612_v32, 32  ;;  %v10721_v53 = vpop.f32.mrb[158].mxu1 }
 0x917   : > { %v8577_v8 = vadd.f32 %v10721_v53, %v14425_v49  ;;  %v8487_v16 = vpop.f32.mrb[159].mxu1  ;;  %v8615_v49 = vadd.f32 %v14457_v44, %v8576_v34 }
 0x918   : > { %v8614_v30 = vadd.f32 %v14457_v44, %v8575_v56  ;;  %v8632_v56 = vld [vmem:[%s11731_s17 + $0x28] sm:$0xff]  ;;  %v8634_v16 = vld [vmem:[%s11731_s17 + $0x38] sm:$0xff] }
 0x919   : > { %v8616_v40 = vadd.f32 %v14457_v44, %v8577_v8 }
 0x91a   : > { %8649 = vxpose.xlu0.b32.cont [15/16] (narrow) %v8609_v39, 32  ;;  %8669 = vxpose.xlu1.b32.cont [3/16] (narrow) %v8613_v61, 32 }
 0x91c   : > { %v10724_v17 = vpop.f32.mrb[160].mxu1 }
 0x91d   : > { %v8579_v10 = vadd.f32 %v10724_v17, %v14428_v19  ;;  %v8499_v31 = vpop.f32.mrb[161].mxu1 }
 0x91e   : > { %8650 = vxpose.xlu0.b32.end [16/16] (narrow) %v8610_v63, 32  ;;  %8670 = vxpose.xlu1.b32.cont [4/16] (narrow) %v8614_v30, 32  ;;  %v10725_v57 = vpop.f32.mrb[162].mxu1 }
 0x91f   : > { %v8501_v0 = vpop.f32.mrb[163].mxu1  ;;  %v8618_v37 = vadd.f32 %v14457_v44, %v8579_v10 }
 0x920   : > { %v8578_v47 = vadd.f32 %v8501_v0, %v14431_v42 }
 0x922   : > { %8671 = vxpose.xlu1.b32.cont [5/16] (narrow) %v8615_v49, 32  ;;  %v8617_v54 = vadd.f32 %v14457_v44, %v8578_v47 }
 0x924   : > { %v10728_v28 = vpop.f32.mrb[164].mxu1 }
 0x925   : > { %v8513_v50 = vpop.f32.mrb[165].mxu1 }
 0x926   : > { %v8580_v3 = vadd.f32 %v8513_v50, %v14434_v14  ;;  %8672 = vxpose.xlu1.b32.cont [6/16] (narrow) %v8616_v40, 32  ;;  %v10729_v41 = vpop.f32.mrb[166].mxu1 }
 0x927   : > { %v8582_v19 = vadd.f32 %v10729_v41, %v14437_v58  ;;  %v8516_v23 = vpop.f32.mrb[167].mxu1 }
 0x928   : > { %v8581_v43 = vadd.f32 %v8516_v23, %v14440_v26  ;;  %v8619_v58 = vadd.f32 %v14457_v44, %v8580_v3 }
 0x92a   : > { %8673 = vxpose.xlu1.b32.cont [7/16] (narrow) %v8617_v54, 32  ;;  %v8620_v12 = vadd.f32 %v14457_v44, %v8581_v43 }
 0x92c   : > { %v10732_v42 = vpop.f32.mrb[168].mxu1 }
 0x92d   : > { %v8584_v62 = vadd.f32 %v10732_v42, %v14443_v29  ;;  %v8528_v48 = vpop.f32.mrb[169].mxu1 }
 0x92e   : > { %v8583_v36 = vadd.f32 %v8528_v48, %v14446_v60  ;;  %8674 = vxpose.xlu1.b32.cont [8/16] (narrow) %v8618_v37, 32  ;;  %v10733_v14 = vpop.f32.mrb[170].mxu1  ;;  %v8621_v60 = vadd.f32 %v14457_v44, %v8582_v19 }
 0x92f   : > { %v8585_v21 = vadd.f32 %v10733_v14, %v14449_v2  ;;  %v8531_v6 = vpop.f32.mrb[171].mxu1  ;;  %v8623_v15 = vadd.f32 %v14457_v44, %v8584_v62 }
 0x930   : > { %v8622_v2 = vadd.f32 %v14457_v44, %v8583_v36 }
 0x932   : > { %8675 = vxpose.xlu1.b32.cont [9/16] (narrow) %v8619_v58, 32 }
 0x934   : > { %v10736_v26 = vpop.f32.mrb[172].mxu1 }
 0x935   : > { %v8587_v45 = vadd.f32 %v10736_v26, %v14452_v59  ;;  %v8543_v4 = vpop.f32.mrb[173].mxu1  ;;  %v8624_v59 = vadd.f32 %v14457_v44, %v8585_v21 }
 0x936   : > { %8676 = vxpose.xlu1.b32.cont [10/16] (narrow) %v8620_v12, 32  ;;  %v10737_v29 = vpop.f32.mrb[174].mxu1 }
 0x937   : > { %v8545_v22 = vpop.f32.mrb[175].mxu1  ;;  %v8626_v46 = vadd.f32 %v14457_v44, %v8587_v45 }
 0x938   : > { %v8586_v38 = vadd.f32 %v8545_v22, %v14455_v13  ;;  %v8627_v13 = vld [vmem:[%s11731_s17] sm:$0xff] }
 0x93a   : > { %8677 = vxpose.xlu1.b32.cont [11/16] (narrow) %v8621_v60, 32  ;;  %v8625_v52 = vadd.f32 %v14457_v44, %v8586_v38 }
 0x93e   : > { %8678 = vxpose.xlu1.b32.cont [12/16] (narrow) %v8622_v2, 32 }
 0x942   : > { %8679 = vxpose.xlu1.b32.cont [13/16] (narrow) %v8623_v15, 32 }
 0x946   : > { %8680 = vxpose.xlu1.b32.cont [14/16] (narrow) %v8624_v59, 32 }
 0x94a   : > { %8681 = vxpose.xlu1.b32.cont [15/16] (narrow) %v8625_v52, 32 }
 0x94e   : > { %8682 = vxpose.xlu1.b32.end [16/16] (narrow) %v8626_v46, 32 }
 0x962   : > { %v8651_v24 = vpop.trf.xlu0 }
 0x963   : > { %v8699_v5 = vadd.f32 %v8651_v24, %v8627_v13 }
 0x965   : > { %8707 = vst [vmem:[%s14527_s24] sm:$0xff] %v8699_v5 }
 0x966   : > { %v8652_v35 = vpop.trf.xlu0 }
 0x967   : > { %v8701_v20 = vadd.f32 %v8652_v35, %v8629_v18 }
 0x969   : > { %8709 = vst [vmem:[%s14527_s24 + $0x10] sm:$0xff] %v8701_v20 }
 0x96a   : > { %v8653_v44 = vpop.trf.xlu0 }
 0x96b   : > { %v8703_v1 = vadd.f32 %v8653_v44, %v8631_v51 }
 0x96d   : > { %8711 = vst [vmem:[%s14527_s24 + $0x20] sm:$0xff] %v8703_v1 }
 0x96e   : > { %v8654_v9 = vpop.trf.xlu0 }
 0x96f   : > { %v8705_v7 = vadd.f32 %v8654_v9, %v8633_v27 }
 0x971   : > { %8713 = vst [vmem:[%s14527_s24 + $0x30] sm:$0xff] %v8705_v7 }
 0x992   : > { %v8683_v25 = vpop.trf.xlu1 }
 0x993   : > { %v8700_v32 = vadd.f32 %v8683_v25, %v8628_v11 }
 0x995   : > { %8708 = vst [vmem:[%s14527_s24 + $0x8] sm:$0xff] %v8700_v32 }
 0x996   : > { %v8684_v34 = vpop.trf.xlu1 }
 0x997   : > { %v8702_v55 = vadd.f32 %v8684_v34, %v8630_v33 }
 0x999   : > { %8710 = vst [vmem:[%s14527_s24 + $0x18] sm:$0xff] %v8702_v55 }
 0x99a   : > { %v8685_v53 = vpop.trf.xlu1 }
 0x99b   : > { %v8704_v8 = vadd.f32 %v8685_v53, %v8632_v56 }
 0x99d   : > { %8712 = vst [vmem:[%s14527_s24 + $0x28] sm:$0xff] %v8704_v8 }
 0x99e   : > { %v8686_v39 = vpop.trf.xlu1 }
 0x99f   : > { %v8706_v61 = vadd.f32 %v8686_v39, %v8634_v16 }
 0x9a1   : > { %8714 = vst [vmem:[%s14527_s24 + $0x38] sm:$0xff] %v8706_v61 }
 0x9a2   : > { %11408 = shalt.err (!%p11405_p13)
}
 0x9a3   : > { %s11409_s16 = scalar_lea.hbm %s14549_s15, 1024  ;;  %s11413_s7 = scalar_lea.hbm %s14599_s5, 2048 }
 0x9a4   : > { %p11410_p9 = scmp.ne.s32.totalorder %s14549_s15, %s11409_s16  ;;  %p11414_p6 = scmp.lt.u32.totalorder %s14549_s15, %s14599_s5 }
 0x9a5   : > { %p11415_p4 = scmp.lt.u32.totalorder %s11413_s7, %s11409_s16  ;;  %p11417_p3 = scmp.lt.u32.totalorder %s11409_s16, %s14549_s15 }
 0x9a6   : > { %p11411_p0 = pnand %p11410_p9, %p11673_p10 }
 0x9a7   : > { %p11416_p8 = por %p11415_p4, %p11414_p6 }
 0x9a8   : > { %p11412_p11 = pneg %p11411_p0 }
 0x9a9   : > { %p11418_p5 = por %p11417_p3, %p11416_p8 }
 0x9ab   : > { %p11419_p7 = pnand %p11418_p5, %p11412_p11 }
 0x9ad   : > { %11422 = shalt.err (!%p11419_p7)
}
 0x9ae   : > { %s11482_s11 = smov 256   ;;  %s11483_s13 = smov 16  }
 0x9af   : > { %11140 = dma.vmem_to_hbm [thread:$0]  (%p11673_p10), %s14543_s26, 1024, %s14549_s15, %s8716_s30, %s11482_s11, %s11482_s11, %s11483_s13  }
 0x9b0 PF: > { %s8744_s8 = sand.u32 1, %s11457_s18   ;;  %p14751_p12 = scmp.ne.s32.totalorder %s14650_s25, 0 }
 0x9b1   : > { %p14752_p2 = scmp.ge.s32.totalorder %s11469_s21, 2  ;;  %s8745_s9 = scalar_lea.sflag [#allocation8], %s8744_s8 }
 0x9b3   : > { %p11160_p1 = pnand %p14752_p2, %p14751_p12 }
 0x9b5   : > { %11452 = dma.done.wait (!%p11160_p1), %s8745_s9, 1024  }
 0x9b6   : > { %11454 = vsyncadd (!%p11160_p1), %s8745_s9, 4294966272  ;;  %p20_p13 = scmp.ge.s32.totalorder %s11663_s14, 4   ;;  %s14753_s18 = smov %s11461_s19 }
 0x9b7   : > { %s14754_s19 = smov %s11465_s20  ;;  %s14755_s20 = smov %s11679_s28 }
 0x9b8   : > { %s14756_s21 = smov %s11663_s14  ;;  %22 = sbr.rel (!%p20_p13) target bundleno = 7 (0x7), region = 117 }
 0x9bf   :  { %8750 = vsyncpa [#allocation7], 1 }
 0x9c0   :  { %8752 = vsyncpa [#allocation7 + $0x1], 1 }
 0x9c1   :  { %8753 = vsyncpa [#allocation10], 1 }
 0x9c2   :  { %8754 = vsyncpa [#allocation13], 1 }
 0x9c3   :  { %8755 = vsyncpa [#allocation8], 1 }
 0x9c4   :  { %8757 = vsyncpa [#allocation8 + $0x1], 1 }

</bundles_post_ra>
